<compile_context>
chip_gen: v5e
topology: v5e:2x2
jax: 0.10.0
libtpu: 0.0.40
codegen_flags: <defaults>
</compile_context>

<pallas_src>
import functools

import jax
import jax.numpy as jnp
from jax.experimental import pallas as pl
from jax.experimental.pallas import tpu as pltpu


def _round_up(v, m):
    return (v + m - 1) // m * m


def _vmem_limit_bytes():
    """Per-generation VMEM budget: ~75% of physical, capped at 100 MiB."""
    try:
        cap = pltpu.get_tpu_info().vmem_capacity_bytes
    except Exception:  # conservative fallback (safe on v7x's 64 MiB)
        cap = 64 * 1024 * 1024
    return int(min(cap * 3 // 4, 100 * 1024 * 1024))


# ---------------------------------------------------------------------------
# Pallas kernel: one grid step = one (batch-tile, layer).  Inside: hoisted
# input projection for all timesteps, then the sequential LSTM recurrence.
# ---------------------------------------------------------------------------
def _encoder_lstm_kernel(x_ref, wx_ref, wh_ref, b_ref,     # inputs
                         h_out_ref, c_out_ref,             # outputs
                         xg_ref, hseq_ref,                 # VMEM scratch
                         *, seq_len, b_tile, e_pad, h_pad):
    layer = pl.program_id(1)
    f32 = jnp.float32

    # ---- Hoisted input projection (big-M matmul, off the recurrence) ----------
    @pl.when(layer == 0)
    def _():
        xin = x_ref[...].astype(wx_ref.dtype).reshape(seq_len * b_tile, e_pad)
        xg = jnp.dot(xin, wx_ref[0, :e_pad, :], preferred_element_type=f32)
        xg_ref[...] = xg.reshape(seq_len, b_tile, 4 * h_pad)

    @pl.when(layer > 0)
    def _():
        # Input of layer l>0 is layer l-1's hidden sequence (VMEM-resident scratch).
        hin = hseq_ref[...].astype(wx_ref.dtype).reshape(seq_len * b_tile, h_pad)
        xg = jnp.dot(hin, wx_ref[0, :h_pad, :], preferred_element_type=f32)
        xg_ref[...] = xg.reshape(seq_len, b_tile, 4 * h_pad)

    # ---- Sequential recurrence: only h @ W_hh^T on the critical path ----------
    def step(t, carry):
        h, c = carry
        gates = (xg_ref[t]
                 + jnp.dot(h.astype(wh_ref.dtype), wh_ref[0],
                           preferred_element_type=f32)
                 + b_ref[0])
        # Lane-aligned gate slices (each gate padded to a 128-multiple slot).
        i = jax.nn.sigmoid(gates[:, 0 * h_pad:1 * h_pad])
        f = jax.nn.sigmoid(gates[:, 1 * h_pad:2 * h_pad])
        g = jnp.tanh(gates[:, 2 * h_pad:3 * h_pad])
        o = jax.nn.sigmoid(gates[:, 3 * h_pad:4 * h_pad])
        c_new = f * c + i * g
        h_new = o * jnp.tanh(c_new)
        hseq_ref[t] = h_new                      # feed next layer
        return (h_new, c_new)

    h0 = jnp.zeros((b_tile, h_pad), f32)
    hT, cT = jax.lax.fori_loop(0, seq_len, step, (h0, h0),
                               unroll=bool(seq_len <= 32))
    h_out_ref[0] = hT
    c_out_ref[0] = cT


# ---------------------------------------------------------------------------
# Jitted wrapper: embedding lookup (glue) + one fused pallas_call.
# ---------------------------------------------------------------------------
@functools.partial(jax.jit, static_argnames=("emb_dim", "hidden_size", "num_layers"))
def encoder_forward(params, src, *, emb_dim, hidden_size, num_layers):
    S, B = src.shape
    H_pad = _round_up(hidden_size, 128)
    E_pad = _round_up(emb_dim, 128)
    IN_MAX = max(E_pad, H_pad)
    B_pad = _round_up(B, 8)
    # Batch tile for the parallel grid axis (v7x second TensorCore).
    b_tile = 128 if (B_pad % 128 == 0) else B_pad
    n_btiles = B_pad // b_tile

    # Pad token ids (cheap) instead of padding the embedded activations; the
    # embedding table columns were padded to E_pad at pack time.
    src_p = jnp.pad(src, ((0, 0), (0, B_pad - B)))
    x = jnp.take(params["embed"], src_p, axis=0)            # (S, B_pad, E_pad)

    kernel = functools.partial(_encoder_lstm_kernel, seq_len=S, b_tile=b_tile,
                               e_pad=E_pad, h_pad=H_pad)

    hc_shape = jax.ShapeDtypeStruct((num_layers, B_pad, H_pad), jnp.float32)
    hc_spec = pl.BlockSpec((1, b_tile, H_pad), lambda bt, l: (l, bt, 0))

    h, c = pl.pallas_call(
        kernel,
        grid=(n_btiles, num_layers),
        in_specs=[
            # embedded tokens, whole sequence per batch tile (constant over layers)
            pl.BlockSpec((S, b_tile, E_pad), lambda bt, l: (0, bt, 0)),
            # per-layer weight/bias blocks -> only one layer resident at a time,
            # next layer prefetched behind the current layer's time loop
            pl.BlockSpec((1, IN_MAX, 4 * H_pad), lambda bt, l: (l, 0, 0)),
            pl.BlockSpec((1, H_pad, 4 * H_pad), lambda bt, l: (l, 0, 0)),
            pl.BlockSpec((1, 1, 4 * H_pad), lambda bt, l: (l, 0, 0)),
        ],
        out_specs=(hc_spec, hc_spec),
        out_shape=(hc_shape, hc_shape),
        scratch_shapes=[
            pltpu.VMEM((S, b_tile, 4 * H_pad), jnp.float32),  # hoisted projection
            pltpu.VMEM((S, b_tile, H_pad), jnp.float32),      # inter-layer h seq
        ],
        compiler_params=pltpu.CompilerParams(
            dimension_semantics=("parallel", "arbitrary"),
            vmem_limit_bytes=_vmem_limit_bytes()),
    )(x, params["w_x"], params["w_h"], params["b"])

    return h[:, :B, :hidden_size], c[:, :B, :hidden_size]


# ---------------------------------------------------------------------------
# Parameters: PyTorch-layout raw params + packed/padded kernel params.
# ---------------------------------------------------------------------------
def make_raw_params(key, vocab, emb_dim, hidden, num_layers):
    keys = iter(jax.random.split(key, 1 + 4 * num_layers))
    k = 1.0 / float(hidden) ** 0.5
    embed = jax.random.normal(next(keys), (vocab, emb_dim), jnp.float32)
    layers = []
    for layer in range(num_layers):
        in_dim = emb_dim if layer == 0 else hidden
        layers.append(dict(
            w_ih=jax.random.uniform(next(keys), (4 * hidden, in_dim), jnp.float32, -k, k),
            w_hh=jax.random.uniform(next(keys), (4 * hidden, hidden), jnp.float32, -k, k),
            b_ih=jax.random.uniform(next(keys), (4 * hidden,), jnp.float32, -k, k),
            b_hh=jax.random.uniform(next(keys), (4 * hidden,), jnp.float32, -k, k),
        ))
    return dict(embed=embed, layers=layers)


def pack_params(raw, emb_dim, hidden, num_layers, mxu_dtype=jnp.bfloat16):
    """Pre-transpose W_ih / W_hh into separate (input, hidden) slabs, zero-pad each
    gate to a lane-aligned 128-wide slot, combine the two biases, and pad the
    embedding table columns so jnp.take produces the kernel layout directly."""
    H_pad = _round_up(hidden, 128)
    E_pad = _round_up(emb_dim, 128)
    IN_MAX = max(E_pad, H_pad)
    wx_all, wh_all, b_all = [], [], []
    for layer, p in enumerate(raw["layers"]):
        in_dim = emb_dim if layer == 0 else hidden
        w_ih_t = p["w_ih"].T                      # (in_dim, 4H)
        w_hh_t = p["w_hh"].T                      # (H, 4H)
        bias = p["b_ih"] + p["b_hh"]              # (4H,)
        wx = jnp.zeros((IN_MAX, 4 * H_pad), jnp.float32)
        wh = jnp.zeros((H_pad, 4 * H_pad), jnp.float32)
        bp = jnp.zeros((1, 4 * H_pad), jnp.float32)
        for g in range(4):
            wx = wx.at[:in_dim, g * H_pad:g * H_pad + hidden].set(
                w_ih_t[:, g * hidden:(g + 1) * hidden])
            wh = wh.at[:hidden, g * H_pad:g * H_pad + hidden].set(
                w_hh_t[:, g * hidden:(g + 1) * hidden])
            bp = bp.at[0, g * H_pad:g * H_pad + hidden].set(
                bias[g * hidden:(g + 1) * hidden])
        wx_all.append(wx)
        wh_all.append(wh)
        b_all.append(bp)
    embed = jnp.zeros((raw["embed"].shape[0], E_pad), jnp.float32)
    embed = embed.at[:, :emb_dim].set(raw["embed"])
    return dict(embed=embed,
                w_x=jnp.stack(wx_all, axis=0).astype(mxu_dtype),
                w_h=jnp.stack(wh_all, axis=0).astype(mxu_dtype),
                b=jnp.stack(b_all, axis=0))


# ---------------------------------------------------------------------------
# Pure-JAX reference (unpadded, PyTorch LSTM semantics) for verification.
# ---------------------------------------------------------------------------
def _dot_hi(a, b):
    return jnp.dot(a, b, precision=jax.lax.Precision.HIGHEST)


def encoder_reference(raw, src, hidden_size, num_layers):
    S, B = src.shape
    x_seq = jnp.take(raw["embed"], src, axis=0)
    h = jnp.zeros((num_layers, B, hidden_size), jnp.float32)
    c = jnp.zeros_like(h)
    for t in range(S):
        x = x_seq[t]
        for l, p in enumerate(raw["layers"]):
            gates = (_dot_hi(x, p["w_ih"].T) + _dot_hi(h[l], p["w_hh"].T)
                     + p["b_ih"] + p["b_hh"])
            H = hidden_size
            i = jax.nn.sigmoid(gates[:, 0 * H:1 * H])
            f = jax.nn.sigmoid(gates[:, 1 * H:2 * H])
            g = jnp.tanh(gates[:, 2 * H:3 * H])
            o = jax.nn.sigmoid(gates[:, 3 * H:4 * H])
            c_new = f * c[l] + i * g
            h_new = o * jnp.tanh(c_new)
            h = h.at[l].set(h_new)
            c = c.at[l].set(c_new)
            x = h_new
    return h, c


# ---------------------------------------------------------------------------
# Main
# ---------------------------------------------------------------------------
if __name__ == "__main__":
    # NOTE: demo shapes are intentionally small; with H=32/EMB=32 most MXU work
    # is on padding.  For production H >= 128 the padding is exact-fit.
    VOCAB = 50
    EMB = 32
    HIDDEN = 32
    NUM_LAYERS = 2
    SRC_LEN = 7
    BATCH = 4

    root = jax.random.PRNGKey(0)
    k_params, k_src = jax.random.split(root, 2)

    raw = make_raw_params(k_params, VOCAB, EMB, HIDDEN, NUM_LAYERS)
    src = jax.random.randint(k_src, (SRC_LEN, BATCH), 0, VOCAB, dtype=jnp.int32)
    h_ref, c_ref = encoder_reference(raw, src, HIDDEN, NUM_LAYERS)

    # --- f32 MXU operands (portable, tightest check) ------------------------
    packed_f32 = pack_params(raw, EMB, HIDDEN, NUM_LAYERS, mxu_dtype=jnp.float32)
    h32, c32 = encoder_forward(packed_f32, src, emb_dim=EMB,
                               hidden_size=HIDDEN, num_layers=NUM_LAYERS)
    h32, c32 = jax.block_until_ready((h32, c32))
    assert h32.shape == (NUM_LAYERS, BATCH, HIDDEN)
    assert c32.shape == (NUM_LAYERS, BATCH, HIDDEN)
    assert bool(jnp.all(jnp.isfinite(h32))) and bool(jnp.all(jnp.isfinite(c32)))
    # Tolerance accounts for kernel's default MXU precision vs HIGHEST reference.
    assert jnp.allclose(h32, h_ref, atol=2e-2, rtol=2e-2)
    assert jnp.allclose(c32, c_ref, atol=2e-2, rtol=2e-2)

    # --- bf16 MXU operands (v6e/v7x fast path), f32 accumulation ------------
    packed_bf16 = pack_params(raw, EMB, HIDDEN, NUM_LAYERS, mxu_dtype=jnp.bfloat16)
    h16, c16 = encoder_forward(packed_bf16, src, emb_dim=EMB,
                               hidden_size=HIDDEN, num_layers=NUM_LAYERS)
    h16, c16 = jax.block_until_ready((h16, c16))
    assert bool(jnp.all(jnp.isfinite(h16))) and bool(jnp.all(jnp.isfinite(c16)))
    assert jnp.allclose(h16, h_ref, atol=3e-2, rtol=3e-2)
    assert jnp.allclose(c16, c_ref, atol=3e-2, rtol=3e-2)

    print("KERNEL_OK")
</pallas_src>

<mosaic_0001>
module attributes {stable_mosaic.version = 11 : i64} {
  func.func @_encoder_lstm_kernel(%arg0: i32, %arg1: i32, %arg2: memref<7x8x128xf32, #tpu.memory_space<vmem>>, %arg3: memref<1x128x512xf32, #tpu.memory_space<vmem>>, %arg4: memref<1x128x512xf32, #tpu.memory_space<vmem>>, %arg5: memref<1x1x512xf32, #tpu.memory_space<vmem>>, %arg6: memref<1x8x128xf32, #tpu.memory_space<vmem>>, %arg7: memref<1x8x128xf32, #tpu.memory_space<vmem>>, %arg8: memref<7x8x512xf32, #tpu.memory_space<vmem>>, %arg9: memref<7x8x128xf32, #tpu.memory_space<vmem>>) attributes {dimension_semantics = [#tpu.dimension_semantics<parallel>, #tpu.dimension_semantics<arbitrary>], iteration_bounds = array<i64: 1, 2>, scalar_prefetch = 0 : i64, scratch_operands = 2 : i64, tpu.core_type = #tpu.core_type<tc>, window_params = [{transform_indices = @transform_0, window_bounds = array<i64: 7, 8, 128>}, {transform_indices = @transform_1, window_bounds = array<i64: 1, 128, 512>}, {transform_indices = @transform_2, window_bounds = array<i64: 1, 128, 512>}, {transform_indices = @transform_3, window_bounds = array<i64: 1, 1, 512>}, {transform_indices = @transform_4, window_bounds = array<i64: 1, 8, 128>}, {transform_indices = @transform_5, window_bounds = array<i64: 1, 8, 128>}]} {
    %c0_i32 = arith.constant 0 : i32
    %0 = arith.cmpi eq, %arg1, %c0_i32 : i32
    %1 = arith.extui %0 : i1 to i32
    %c0_i32_0 = arith.constant 0 : i32
    %2 = arith.cmpi ne, %1, %c0_i32_0 : i32
    scf.if %2 {
      %c0_107 = arith.constant 0 : index
      %c0_108 = arith.constant 0 : index
      %c0_109 = arith.constant 0 : index
      %293 = vector.load %arg2[%c0_107, %c0_108, %c0_109] : memref<7x8x128xf32, #tpu.memory_space<vmem>>, vector<7x8x128xf32>
      %294 = vector.shape_cast %293 : vector<7x8x128xf32> to vector<56x128xf32>
      %c0_110 = arith.constant 0 : index
      %c0_111 = arith.constant 0 : index
      %c0_112 = arith.constant 0 : index
      %295 = vector.load %arg3[%c0_110, %c0_111, %c0_112] : memref<1x128x512xf32, #tpu.memory_space<vmem>>, vector<1x128x512xf32>
      %296 = vector.shape_cast %295 : vector<1x128x512xf32> to vector<128x512xf32>
      %cst_113 = arith.constant dense<0.000000e+00> : vector<56x512xf32>
      %297 = tpu.matmul %294, %296, %cst_113 {dimension_numbers = #tpu.dot_dimension_numbers<[1], [0], [0], [1], [0, 0, 1, 1], [], []>} : vector<56x128xf32>, vector<128x512xf32>, vector<56x512xf32> -> vector<56x512xf32>
      %298 = vector.shape_cast %297 : vector<56x512xf32> to vector<7x8x512xf32>
      %c0_114 = arith.constant 0 : index
      %c0_115 = arith.constant 0 : index
      %c0_116 = arith.constant 0 : index
      %299 = vector.load %arg8[%c0_114, %c0_115, %c0_116] : memref<7x8x512xf32, #tpu.memory_space<vmem>>, vector<7x8x512xf32>
      tpu.vector_store %arg8[%c0_114, %c0_115, %c0_116], %298 {strides = array<i32>} : memref<7x8x512xf32, #tpu.memory_space<vmem>>, vector<7x8x512xf32>,
    } else {
    }
    %c0_i32_1 = arith.constant 0 : i32
    %3 = arith.cmpi sgt, %arg1, %c0_i32_1 : i32
    %4 = arith.extui %3 : i1 to i32
    %c0_i32_2 = arith.constant 0 : i32
    %5 = arith.cmpi ne, %4, %c0_i32_2 : i32
    scf.if %5 {
      %c0_107 = arith.constant 0 : index
      %c0_108 = arith.constant 0 : index
      %c0_109 = arith.constant 0 : index
      %293 = vector.load %arg9[%c0_107, %c0_108, %c0_109] : memref<7x8x128xf32, #tpu.memory_space<vmem>>, vector<7x8x128xf32>
      %294 = vector.shape_cast %293 : vector<7x8x128xf32> to vector<56x128xf32>
      %c0_110 = arith.constant 0 : index
      %c0_111 = arith.constant 0 : index
      %c0_112 = arith.constant 0 : index
      %295 = vector.load %arg3[%c0_110, %c0_111, %c0_112] : memref<1x128x512xf32, #tpu.memory_space<vmem>>, vector<1x128x512xf32>
      %296 = vector.shape_cast %295 : vector<1x128x512xf32> to vector<128x512xf32>
      %cst_113 = arith.constant dense<0.000000e+00> : vector<56x512xf32>
      %297 = tpu.matmul %294, %296, %cst_113 {dimension_numbers = #tpu.dot_dimension_numbers<[1], [0], [0], [1], [0, 0, 1, 1], [], []>} : vector<56x128xf32>, vector<128x512xf32>, vector<56x512xf32> -> vector<56x512xf32>
      %298 = vector.shape_cast %297 : vector<56x512xf32> to vector<7x8x512xf32>
      %c0_114 = arith.constant 0 : index
      %c0_115 = arith.constant 0 : index
      %c0_116 = arith.constant 0 : index
      %299 = vector.load %arg8[%c0_114, %c0_115, %c0_116] : memref<7x8x512xf32, #tpu.memory_space<vmem>>, vector<7x8x512xf32>
      tpu.vector_store %arg8[%c0_114, %c0_115, %c0_116], %298 {strides = array<i32>} : memref<7x8x512xf32, #tpu.memory_space<vmem>>, vector<7x8x512xf32>,
    } else {
    }
    %cst = arith.constant 0.000000e+00 : f32
    %6 = vector.broadcast %cst : f32 to vector<8x128xf32>
    %c0_i32_3 = arith.constant 0 : i32
    %7 = arith.index_cast %c0_i32_3 : i32 to index
    %c0 = arith.constant 0 : index
    %c0_4 = arith.constant 0 : index
    %8 = vector.load %arg8[%7, %c0, %c0_4] : memref<7x8x512xf32, #tpu.memory_space<vmem>>, vector<1x8x512xf32>
    %9 = vector.shape_cast %8 : vector<1x8x512xf32> to vector<8x512xf32>
    %c0_5 = arith.constant 0 : index
    %c0_6 = arith.constant 0 : index
    %c0_7 = arith.constant 0 : index
    %10 = vector.load %arg4[%c0_5, %c0_6, %c0_7] : memref<1x128x512xf32, #tpu.memory_space<vmem>>, vector<1x128x512xf32>
    %11 = vector.shape_cast %10 : vector<1x128x512xf32> to vector<128x512xf32>
    %cst_8 = arith.constant dense<0.000000e+00> : vector<8x512xf32>
    %12 = tpu.matmul %6, %11, %cst_8 {dimension_numbers = #tpu.dot_dimension_numbers<[1], [0], [0], [1], [0, 0, 1, 1], [], []>} : vector<8x128xf32>, vector<128x512xf32>, vector<8x512xf32> -> vector<8x512xf32>
    %13 = arith.addf %9, %12 : vector<8x512xf32>
    %c0_9 = arith.constant 0 : index
    %c0_10 = arith.constant 0 : index
    %c0_11 = arith.constant 0 : index
    %14 = vector.load %arg5[%c0_9, %c0_10, %c0_11] : memref<1x1x512xf32, #tpu.memory_space<vmem>>, vector<1x1x512xf32>
    %15 = vector.shape_cast %14 : vector<1x1x512xf32> to vector<1x512xf32>
    %16 = vector.broadcast %15 : vector<1x512xf32> to vector<8x512xf32>
    %17 = arith.addf %13, %16 : vector<8x512xf32>
    %18 = vector.extract_strided_slice %17 {offsets = [0, 0], sizes = [8, 128], strides = [1, 1]} : vector<8x512xf32> to vector<8x128xf32>
    %19 = arith.negf %18 : vector<8x128xf32>
    %20 = math.exp %19 : vector<8x128xf32>
    %cst_12 = arith.constant 1.000000e+00 : f32
    %21 = vector.broadcast %cst_12 : f32 to vector<8x128xf32>
    %22 = arith.addf %21, %20 : vector<8x128xf32>
    %23 = arith.divf %21, %22 : vector<8x128xf32>
    %24 = vector.extract_strided_slice %17 {offsets = [0, 128], sizes = [8, 128], strides = [1, 1]} : vector<8x512xf32> to vector<8x128xf32>
    %25 = arith.negf %24 : vector<8x128xf32>
    %26 = math.exp %25 : vector<8x128xf32>
    %cst_13 = arith.constant 1.000000e+00 : f32
    %27 = vector.broadcast %cst_13 : f32 to vector<8x128xf32>
    %28 = arith.addf %27, %26 : vector<8x128xf32>
    %29 = arith.divf %27, %28 : vector<8x128xf32>
    %30 = vector.extract_strided_slice %17 {offsets = [0, 256], sizes = [8, 128], strides = [1, 1]} : vector<8x512xf32> to vector<8x128xf32>
    %31 = math.tanh %30 : vector<8x128xf32>
    %32 = vector.extract_strided_slice %17 {offsets = [0, 384], sizes = [8, 128], strides = [1, 1]} : vector<8x512xf32> to vector<8x128xf32>
    %33 = arith.negf %32 : vector<8x128xf32>
    %34 = math.exp %33 : vector<8x128xf32>
    %cst_14 = arith.constant 1.000000e+00 : f32
    %35 = vector.broadcast %cst_14 : f32 to vector<8x128xf32>
    %36 = arith.addf %35, %34 : vector<8x128xf32>
    %37 = arith.divf %35, %36 : vector<8x128xf32>
    %38 = arith.mulf %29, %6 : vector<8x128xf32>
    %39 = arith.mulf %23, %31 : vector<8x128xf32>
    %40 = arith.addf %38, %39 : vector<8x128xf32>
    %41 = math.tanh %40 : vector<8x128xf32>
    %42 = arith.mulf %37, %41 : vector<8x128xf32>
    %43 = arith.index_cast %c0_i32_3 : i32 to index
    %c0_15 = arith.constant 0 : index
    %c0_16 = arith.constant 0 : index
    %44 = vector.load %arg9[%43, %c0_15, %c0_16] : memref<7x8x128xf32, #tpu.memory_space<vmem>>, vector<1x8x128xf32>
    %45 = vector.shape_cast %44 : vector<1x8x128xf32> to vector<8x128xf32>
    %46 = vector.shape_cast %42 : vector<8x128xf32> to vector<1x8x128xf32>
    tpu.vector_store %arg9[%43, %c0_15, %c0_16], %46 {strides = array<i32>} : memref<7x8x128xf32, #tpu.memory_space<vmem>>, vector<1x8x128xf32>,
    %c1_i32 = arith.constant 1 : i32
    %47 = arith.index_cast %c1_i32 : i32 to index
    %c0_17 = arith.constant 0 : index
    %c0_18 = arith.constant 0 : index
    %48 = vector.load %arg8[%47, %c0_17, %c0_18] : memref<7x8x512xf32, #tpu.memory_space<vmem>>, vector<1x8x512xf32>
    %49 = vector.shape_cast %48 : vector<1x8x512xf32> to vector<8x512xf32>
    %c0_19 = arith.constant 0 : index
    %c0_20 = arith.constant 0 : index
    %c0_21 = arith.constant 0 : index
    %50 = vector.load %arg4[%c0_19, %c0_20, %c0_21] : memref<1x128x512xf32, #tpu.memory_space<vmem>>, vector<1x128x512xf32>
    %51 = vector.shape_cast %50 : vector<1x128x512xf32> to vector<128x512xf32>
    %cst_22 = arith.constant dense<0.000000e+00> : vector<8x512xf32>
    %52 = tpu.matmul %42, %51, %cst_22 {dimension_numbers = #tpu.dot_dimension_numbers<[1], [0], [0], [1], [0, 0, 1, 1], [], []>} : vector<8x128xf32>, vector<128x512xf32>, vector<8x512xf32> -> vector<8x512xf32>
    %53 = arith.addf %49, %52 : vector<8x512xf32>
    %c0_23 = arith.constant 0 : index
    %c0_24 = arith.constant 0 : index
    %c0_25 = arith.constant 0 : index
    %54 = vector.load %arg5[%c0_23, %c0_24, %c0_25] : memref<1x1x512xf32, #tpu.memory_space<vmem>>, vector<1x1x512xf32>
    %55 = vector.shape_cast %54 : vector<1x1x512xf32> to vector<1x512xf32>
    %56 = vector.broadcast %55 : vector<1x512xf32> to vector<8x512xf32>
    %57 = arith.addf %53, %56 : vector<8x512xf32>
    %58 = vector.extract_strided_slice %57 {offsets = [0, 0], sizes = [8, 128], strides = [1, 1]} : vector<8x512xf32> to vector<8x128xf32>
    %59 = arith.negf %58 : vector<8x128xf32>
    %60 = math.exp %59 : vector<8x128xf32>
    %cst_26 = arith.constant 1.000000e+00 : f32
    %61 = vector.broadcast %cst_26 : f32 to vector<8x128xf32>
    %62 = arith.addf %61, %60 : vector<8x128xf32>
    %63 = arith.divf %61, %62 : vector<8x128xf32>
    %64 = vector.extract_strided_slice %57 {offsets = [0, 128], sizes = [8, 128], strides = [1, 1]} : vector<8x512xf32> to vector<8x128xf32>
    %65 = arith.negf %64 : vector<8x128xf32>
    %66 = math.exp %65 : vector<8x128xf32>
    %cst_27 = arith.constant 1.000000e+00 : f32
    %67 = vector.broadcast %cst_27 : f32 to vector<8x128xf32>
    %68 = arith.addf %67, %66 : vector<8x128xf32>
    %69 = arith.divf %67, %68 : vector<8x128xf32>
    %70 = vector.extract_strided_slice %57 {offsets = [0, 256], sizes = [8, 128], strides = [1, 1]} : vector<8x512xf32> to vector<8x128xf32>
    %71 = math.tanh %70 : vector<8x128xf32>
    %72 = vector.extract_strided_slice %57 {offsets = [0, 384], sizes = [8, 128], strides = [1, 1]} : vector<8x512xf32> to vector<8x128xf32>
    %73 = arith.negf %72 : vector<8x128xf32>
    %74 = math.exp %73 : vector<8x128xf32>
    %cst_28 = arith.constant 1.000000e+00 : f32
    %75 = vector.broadcast %cst_28 : f32 to vector<8x128xf32>
    %76 = arith.addf %75, %74 : vector<8x128xf32>
    %77 = arith.divf %75, %76 : vector<8x128xf32>
    %78 = arith.mulf %69, %40 : vector<8x128xf32>
    %79 = arith.mulf %63, %71 : vector<8x128xf32>
    %80 = arith.addf %78, %79 : vector<8x128xf32>
    %81 = math.tanh %80 : vector<8x128xf32>
    %82 = arith.mulf %77, %81 : vector<8x128xf32>
    %83 = arith.index_cast %c1_i32 : i32 to index
    %c0_29 = arith.constant 0 : index
    %c0_30 = arith.constant 0 : index
    %84 = vector.load %arg9[%83, %c0_29, %c0_30] : memref<7x8x128xf32, #tpu.memory_space<vmem>>, vector<1x8x128xf32>
    %85 = vector.shape_cast %84 : vector<1x8x128xf32> to vector<8x128xf32>
    %86 = vector.shape_cast %82 : vector<8x128xf32> to vector<1x8x128xf32>
    tpu.vector_store %arg9[%83, %c0_29, %c0_30], %86 {strides = array<i32>} : memref<7x8x128xf32, #tpu.memory_space<vmem>>, vector<1x8x128xf32>,
    %c2_i32 = arith.constant 2 : i32
    %87 = arith.index_cast %c2_i32 : i32 to index
    %c0_31 = arith.constant 0 : index
    %c0_32 = arith.constant 0 : index
    %88 = vector.load %arg8[%87, %c0_31, %c0_32] : memref<7x8x512xf32, #tpu.memory_space<vmem>>, vector<1x8x512xf32>
    %89 = vector.shape_cast %88 : vector<1x8x512xf32> to vector<8x512xf32>
    %c0_33 = arith.constant 0 : index
    %c0_34 = arith.constant 0 : index
    %c0_35 = arith.constant 0 : index
    %90 = vector.load %arg4[%c0_33, %c0_34, %c0_35] : memref<1x128x512xf32, #tpu.memory_space<vmem>>, vector<1x128x512xf32>
    %91 = vector.shape_cast %90 : vector<1x128x512xf32> to vector<128x512xf32>
    %cst_36 = arith.constant dense<0.000000e+00> : vector<8x512xf32>
    %92 = tpu.matmul %82, %91, %cst_36 {dimension_numbers = #tpu.dot_dimension_numbers<[1], [0], [0], [1], [0, 0, 1, 1], [], []>} : vector<8x128xf32>, vector<128x512xf32>, vector<8x512xf32> -> vector<8x512xf32>
    %93 = arith.addf %89, %92 : vector<8x512xf32>
    %c0_37 = arith.constant 0 : index
    %c0_38 = arith.constant 0 : index
    %c0_39 = arith.constant 0 : index
    %94 = vector.load %arg5[%c0_37, %c0_38, %c0_39] : memref<1x1x512xf32, #tpu.memory_space<vmem>>, vector<1x1x512xf32>
    %95 = vector.shape_cast %94 : vector<1x1x512xf32> to vector<1x512xf32>
    %96 = vector.broadcast %95 : vector<1x512xf32> to vector<8x512xf32>
    %97 = arith.addf %93, %96 : vector<8x512xf32>
    %98 = vector.extract_strided_slice %97 {offsets = [0, 0], sizes = [8, 128], strides = [1, 1]} : vector<8x512xf32> to vector<8x128xf32>
    %99 = arith.negf %98 : vector<8x128xf32>
    %100 = math.exp %99 : vector<8x128xf32>
    %cst_40 = arith.constant 1.000000e+00 : f32
    %101 = vector.broadcast %cst_40 : f32 to vector<8x128xf32>
    %102 = arith.addf %101, %100 : vector<8x128xf32>
    %103 = arith.divf %101, %102 : vector<8x128xf32>
    %104 = vector.extract_strided_slice %97 {offsets = [0, 128], sizes = [8, 128], strides = [1, 1]} : vector<8x512xf32> to vector<8x128xf32>
    %105 = arith.negf %104 : vector<8x128xf32>
    %106 = math.exp %105 : vector<8x128xf32>
    %cst_41 = arith.constant 1.000000e+00 : f32
    %107 = vector.broadcast %cst_41 : f32 to vector<8x128xf32>
    %108 = arith.addf %107, %106 : vector<8x128xf32>
    %109 = arith.divf %107, %108 : vector<8x128xf32>
    %110 = vector.extract_strided_slice %97 {offsets = [0, 256], sizes = [8, 128], strides = [1, 1]} : vector<8x512xf32> to vector<8x128xf32>
    %111 = math.tanh %110 : vector<8x128xf32>
    %112 = vector.extract_strided_slice %97 {offsets = [0, 384], sizes = [8, 128], strides = [1, 1]} : vector<8x512xf32> to vector<8x128xf32>
    %113 = arith.negf %112 : vector<8x128xf32>
    %114 = math.exp %113 : vector<8x128xf32>
    %cst_42 = arith.constant 1.000000e+00 : f32
    %115 = vector.broadcast %cst_42 : f32 to vector<8x128xf32>
    %116 = arith.addf %115, %114 : vector<8x128xf32>
    %117 = arith.divf %115, %116 : vector<8x128xf32>
    %118 = arith.mulf %109, %80 : vector<8x128xf32>
    %119 = arith.mulf %103, %111 : vector<8x128xf32>
    %120 = arith.addf %118, %119 : vector<8x128xf32>
    %121 = math.tanh %120 : vector<8x128xf32>
    %122 = arith.mulf %117, %121 : vector<8x128xf32>
    %123 = arith.index_cast %c2_i32 : i32 to index
    %c0_43 = arith.constant 0 : index
    %c0_44 = arith.constant 0 : index
    %124 = vector.load %arg9[%123, %c0_43, %c0_44] : memref<7x8x128xf32, #tpu.memory_space<vmem>>, vector<1x8x128xf32>
    %125 = vector.shape_cast %124 : vector<1x8x128xf32> to vector<8x128xf32>
    %126 = vector.shape_cast %122 : vector<8x128xf32> to vector<1x8x128xf32>
    tpu.vector_store %arg9[%123, %c0_43, %c0_44], %126 {strides = array<i32>} : memref<7x8x128xf32, #tpu.memory_space<vmem>>, vector<1x8x128xf32>,
    %c3_i32 = arith.constant 3 : i32
    %127 = arith.index_cast %c3_i32 : i32 to index
    %c0_45 = arith.constant 0 : index
    %c0_46 = arith.constant 0 : index
    %128 = vector.load %arg8[%127, %c0_45, %c0_46] : memref<7x8x512xf32, #tpu.memory_space<vmem>>, vector<1x8x512xf32>
    %129 = vector.shape_cast %128 : vector<1x8x512xf32> to vector<8x512xf32>
    %c0_47 = arith.constant 0 : index
    %c0_48 = arith.constant 0 : index
    %c0_49 = arith.constant 0 : index
    %130 = vector.load %arg4[%c0_47, %c0_48, %c0_49] : memref<1x128x512xf32, #tpu.memory_space<vmem>>, vector<1x128x512xf32>
    %131 = vector.shape_cast %130 : vector<1x128x512xf32> to vector<128x512xf32>
    %cst_50 = arith.constant dense<0.000000e+00> : vector<8x512xf32>
    %132 = tpu.matmul %122, %131, %cst_50 {dimension_numbers = #tpu.dot_dimension_numbers<[1], [0], [0], [1], [0, 0, 1, 1], [], []>} : vector<8x128xf32>, vector<128x512xf32>, vector<8x512xf32> -> vector<8x512xf32>
    %133 = arith.addf %129, %132 : vector<8x512xf32>
    %c0_51 = arith.constant 0 : index
    %c0_52 = arith.constant 0 : index
    %c0_53 = arith.constant 0 : index
    %134 = vector.load %arg5[%c0_51, %c0_52, %c0_53] : memref<1x1x512xf32, #tpu.memory_space<vmem>>, vector<1x1x512xf32>
    %135 = vector.shape_cast %134 : vector<1x1x512xf32> to vector<1x512xf32>
    %136 = vector.broadcast %135 : vector<1x512xf32> to vector<8x512xf32>
    %137 = arith.addf %133, %136 : vector<8x512xf32>
    %138 = vector.extract_strided_slice %137 {offsets = [0, 0], sizes = [8, 128], strides = [1, 1]} : vector<8x512xf32> to vector<8x128xf32>
    %139 = arith.negf %138 : vector<8x128xf32>
    %140 = math.exp %139 : vector<8x128xf32>
    %cst_54 = arith.constant 1.000000e+00 : f32
    %141 = vector.broadcast %cst_54 : f32 to vector<8x128xf32>
    %142 = arith.addf %141, %140 : vector<8x128xf32>
    %143 = arith.divf %141, %142 : vector<8x128xf32>
    %144 = vector.extract_strided_slice %137 {offsets = [0, 128], sizes = [8, 128], strides = [1, 1]} : vector<8x512xf32> to vector<8x128xf32>
    %145 = arith.negf %144 : vector<8x128xf32>
    %146 = math.exp %145 : vector<8x128xf32>
    %cst_55 = arith.constant 1.000000e+00 : f32
    %147 = vector.broadcast %cst_55 : f32 to vector<8x128xf32>
    %148 = arith.addf %147, %146 : vector<8x128xf32>
    %149 = arith.divf %147, %148 : vector<8x128xf32>
    %150 = vector.extract_strided_slice %137 {offsets = [0, 256], sizes = [8, 128], strides = [1, 1]} : vector<8x512xf32> to vector<8x128xf32>
    %151 = math.tanh %150 : vector<8x128xf32>
    %152 = vector.extract_strided_slice %137 {offsets = [0, 384], sizes = [8, 128], strides = [1, 1]} : vector<8x512xf32> to vector<8x128xf32>
    %153 = arith.negf %152 : vector<8x128xf32>
    %154 = math.exp %153 : vector<8x128xf32>
    %cst_56 = arith.constant 1.000000e+00 : f32
    %155 = vector.broadcast %cst_56 : f32 to vector<8x128xf32>
    %156 = arith.addf %155, %154 : vector<8x128xf32>
    %157 = arith.divf %155, %156 : vector<8x128xf32>
    %158 = arith.mulf %149, %120 : vector<8x128xf32>
    %159 = arith.mulf %143, %151 : vector<8x128xf32>
    %160 = arith.addf %158, %159 : vector<8x128xf32>
    %161 = math.tanh %160 : vector<8x128xf32>
    %162 = arith.mulf %157, %161 : vector<8x128xf32>
    %163 = arith.index_cast %c3_i32 : i32 to index
    %c0_57 = arith.constant 0 : index
    %c0_58 = arith.constant 0 : index
    %164 = vector.load %arg9[%163, %c0_57, %c0_58] : memref<7x8x128xf32, #tpu.memory_space<vmem>>, vector<1x8x128xf32>
    %165 = vector.shape_cast %164 : vector<1x8x128xf32> to vector<8x128xf32>
    %166 = vector.shape_cast %162 : vector<8x128xf32> to vector<1x8x128xf32>
    tpu.vector_store %arg9[%163, %c0_57, %c0_58], %166 {strides = array<i32>} : memref<7x8x128xf32, #tpu.memory_space<vmem>>, vector<1x8x128xf32>,
    %c4_i32 = arith.constant 4 : i32
    %167 = arith.index_cast %c4_i32 : i32 to index
    %c0_59 = arith.constant 0 : index
    %c0_60 = arith.constant 0 : index
    %168 = vector.load %arg8[%167, %c0_59, %c0_60] : memref<7x8x512xf32, #tpu.memory_space<vmem>>, vector<1x8x512xf32>
    %169 = vector.shape_cast %168 : vector<1x8x512xf32> to vector<8x512xf32>
    %c0_61 = arith.constant 0 : index
    %c0_62 = arith.constant 0 : index
    %c0_63 = arith.constant 0 : index
    %170 = vector.load %arg4[%c0_61, %c0_62, %c0_63] : memref<1x128x512xf32, #tpu.memory_space<vmem>>, vector<1x128x512xf32>
    %171 = vector.shape_cast %170 : vector<1x128x512xf32> to vector<128x512xf32>
    %cst_64 = arith.constant dense<0.000000e+00> : vector<8x512xf32>
    %172 = tpu.matmul %162, %171, %cst_64 {dimension_numbers = #tpu.dot_dimension_numbers<[1], [0], [0], [1], [0, 0, 1, 1], [], []>} : vector<8x128xf32>, vector<128x512xf32>, vector<8x512xf32> -> vector<8x512xf32>
    %173 = arith.addf %169, %172 : vector<8x512xf32>
    %c0_65 = arith.constant 0 : index
    %c0_66 = arith.constant 0 : index
    %c0_67 = arith.constant 0 : index
    %174 = vector.load %arg5[%c0_65, %c0_66, %c0_67] : memref<1x1x512xf32, #tpu.memory_space<vmem>>, vector<1x1x512xf32>
    %175 = vector.shape_cast %174 : vector<1x1x512xf32> to vector<1x512xf32>
    %176 = vector.broadcast %175 : vector<1x512xf32> to vector<8x512xf32>
    %177 = arith.addf %173, %176 : vector<8x512xf32>
    %178 = vector.extract_strided_slice %177 {offsets = [0, 0], sizes = [8, 128], strides = [1, 1]} : vector<8x512xf32> to vector<8x128xf32>
    %179 = arith.negf %178 : vector<8x128xf32>
    %180 = math.exp %179 : vector<8x128xf32>
    %cst_68 = arith.constant 1.000000e+00 : f32
    %181 = vector.broadcast %cst_68 : f32 to vector<8x128xf32>
    %182 = arith.addf %181, %180 : vector<8x128xf32>
    %183 = arith.divf %181, %182 : vector<8x128xf32>
    %184 = vector.extract_strided_slice %177 {offsets = [0, 128], sizes = [8, 128], strides = [1, 1]} : vector<8x512xf32> to vector<8x128xf32>
    %185 = arith.negf %184 : vector<8x128xf32>
    %186 = math.exp %185 : vector<8x128xf32>
    %cst_69 = arith.constant 1.000000e+00 : f32
    %187 = vector.broadcast %cst_69 : f32 to vector<8x128xf32>
    %188 = arith.addf %187, %186 : vector<8x128xf32>
    %189 = arith.divf %187, %188 : vector<8x128xf32>
    %190 = vector.extract_strided_slice %177 {offsets = [0, 256], sizes = [8, 128], strides = [1, 1]} : vector<8x512xf32> to vector<8x128xf32>
    %191 = math.tanh %190 : vector<8x128xf32>
    %192 = vector.extract_strided_slice %177 {offsets = [0, 384], sizes = [8, 128], strides = [1, 1]} : vector<8x512xf32> to vector<8x128xf32>
    %193 = arith.negf %192 : vector<8x128xf32>
    %194 = math.exp %193 : vector<8x128xf32>
    %cst_70 = arith.constant 1.000000e+00 : f32
    %195 = vector.broadcast %cst_70 : f32 to vector<8x128xf32>
    %196 = arith.addf %195, %194 : vector<8x128xf32>
    %197 = arith.divf %195, %196 : vector<8x128xf32>
    %198 = arith.mulf %189, %160 : vector<8x128xf32>
    %199 = arith.mulf %183, %191 : vector<8x128xf32>
    %200 = arith.addf %198, %199 : vector<8x128xf32>
    %201 = math.tanh %200 : vector<8x128xf32>
    %202 = arith.mulf %197, %201 : vector<8x128xf32>
    %203 = arith.index_cast %c4_i32 : i32 to index
    %c0_71 = arith.constant 0 : index
    %c0_72 = arith.constant 0 : index
    %204 = vector.load %arg9[%203, %c0_71, %c0_72] : memref<7x8x128xf32, #tpu.memory_space<vmem>>, vector<1x8x128xf32>
    %205 = vector.shape_cast %204 : vector<1x8x128xf32> to vector<8x128xf32>
    %206 = vector.shape_cast %202 : vector<8x128xf32> to vector<1x8x128xf32>
    tpu.vector_store %arg9[%203, %c0_71, %c0_72], %206 {strides = array<i32>} : memref<7x8x128xf32, #tpu.memory_space<vmem>>, vector<1x8x128xf32>,
    %c5_i32 = arith.constant 5 : i32
    %207 = arith.index_cast %c5_i32 : i32 to index
    %c0_73 = arith.constant 0 : index
    %c0_74 = arith.constant 0 : index
    %208 = vector.load %arg8[%207, %c0_73, %c0_74] : memref<7x8x512xf32, #tpu.memory_space<vmem>>, vector<1x8x512xf32>
    %209 = vector.shape_cast %208 : vector<1x8x512xf32> to vector<8x512xf32>
    %c0_75 = arith.constant 0 : index
    %c0_76 = arith.constant 0 : index
    %c0_77 = arith.constant 0 : index
    %210 = vector.load %arg4[%c0_75, %c0_76, %c0_77] : memref<1x128x512xf32, #tpu.memory_space<vmem>>, vector<1x128x512xf32>
    %211 = vector.shape_cast %210 : vector<1x128x512xf32> to vector<128x512xf32>
    %cst_78 = arith.constant dense<0.000000e+00> : vector<8x512xf32>
    %212 = tpu.matmul %202, %211, %cst_78 {dimension_numbers = #tpu.dot_dimension_numbers<[1], [0], [0], [1], [0, 0, 1, 1], [], []>} : vector<8x128xf32>, vector<128x512xf32>, vector<8x512xf32> -> vector<8x512xf32>
    %213 = arith.addf %209, %212 : vector<8x512xf32>
    %c0_79 = arith.constant 0 : index
    %c0_80 = arith.constant 0 : index
    %c0_81 = arith.constant 0 : index
    %214 = vector.load %arg5[%c0_79, %c0_80, %c0_81] : memref<1x1x512xf32, #tpu.memory_space<vmem>>, vector<1x1x512xf32>
    %215 = vector.shape_cast %214 : vector<1x1x512xf32> to vector<1x512xf32>
    %216 = vector.broadcast %215 : vector<1x512xf32> to vector<8x512xf32>
    %217 = arith.addf %213, %216 : vector<8x512xf32>
    %218 = vector.extract_strided_slice %217 {offsets = [0, 0], sizes = [8, 128], strides = [1, 1]} : vector<8x512xf32> to vector<8x128xf32>
    %219 = arith.negf %218 : vector<8x128xf32>
    %220 = math.exp %219 : vector<8x128xf32>
    %cst_82 = arith.constant 1.000000e+00 : f32
    %221 = vector.broadcast %cst_82 : f32 to vector<8x128xf32>
    %222 = arith.addf %221, %220 : vector<8x128xf32>
    %223 = arith.divf %221, %222 : vector<8x128xf32>
    %224 = vector.extract_strided_slice %217 {offsets = [0, 128], sizes = [8, 128], strides = [1, 1]} : vector<8x512xf32> to vector<8x128xf32>
    %225 = arith.negf %224 : vector<8x128xf32>
    %226 = math.exp %225 : vector<8x128xf32>
    %cst_83 = arith.constant 1.000000e+00 : f32
    %227 = vector.broadcast %cst_83 : f32 to vector<8x128xf32>
    %228 = arith.addf %227, %226 : vector<8x128xf32>
    %229 = arith.divf %227, %228 : vector<8x128xf32>
    %230 = vector.extract_strided_slice %217 {offsets = [0, 256], sizes = [8, 128], strides = [1, 1]} : vector<8x512xf32> to vector<8x128xf32>
    %231 = math.tanh %230 : vector<8x128xf32>
    %232 = vector.extract_strided_slice %217 {offsets = [0, 384], sizes = [8, 128], strides = [1, 1]} : vector<8x512xf32> to vector<8x128xf32>
    %233 = arith.negf %232 : vector<8x128xf32>
    %234 = math.exp %233 : vector<8x128xf32>
    %cst_84 = arith.constant 1.000000e+00 : f32
    %235 = vector.broadcast %cst_84 : f32 to vector<8x128xf32>
    %236 = arith.addf %235, %234 : vector<8x128xf32>
    %237 = arith.divf %235, %236 : vector<8x128xf32>
    %238 = arith.mulf %229, %200 : vector<8x128xf32>
    %239 = arith.mulf %223, %231 : vector<8x128xf32>
    %240 = arith.addf %238, %239 : vector<8x128xf32>
    %241 = math.tanh %240 : vector<8x128xf32>
    %242 = arith.mulf %237, %241 : vector<8x128xf32>
    %243 = arith.index_cast %c5_i32 : i32 to index
    %c0_85 = arith.constant 0 : index
    %c0_86 = arith.constant 0 : index
    %244 = vector.load %arg9[%243, %c0_85, %c0_86] : memref<7x8x128xf32, #tpu.memory_space<vmem>>, vector<1x8x128xf32>
    %245 = vector.shape_cast %244 : vector<1x8x128xf32> to vector<8x128xf32>
    %246 = vector.shape_cast %242 : vector<8x128xf32> to vector<1x8x128xf32>
    tpu.vector_store %arg9[%243, %c0_85, %c0_86], %246 {strides = array<i32>} : memref<7x8x128xf32, #tpu.memory_space<vmem>>, vector<1x8x128xf32>,
    %c6_i32 = arith.constant 6 : i32
    %247 = arith.index_cast %c6_i32 : i32 to index
    %c0_87 = arith.constant 0 : index
    %c0_88 = arith.constant 0 : index
    %248 = vector.load %arg8[%247, %c0_87, %c0_88] : memref<7x8x512xf32, #tpu.memory_space<vmem>>, vector<1x8x512xf32>
    %249 = vector.shape_cast %248 : vector<1x8x512xf32> to vector<8x512xf32>
    %c0_89 = arith.constant 0 : index
    %c0_90 = arith.constant 0 : index
    %c0_91 = arith.constant 0 : index
    %250 = vector.load %arg4[%c0_89, %c0_90, %c0_91] : memref<1x128x512xf32, #tpu.memory_space<vmem>>, vector<1x128x512xf32>
    %251 = vector.shape_cast %250 : vector<1x128x512xf32> to vector<128x512xf32>
    %cst_92 = arith.constant dense<0.000000e+00> : vector<8x512xf32>
    %252 = tpu.matmul %242, %251, %cst_92 {dimension_numbers = #tpu.dot_dimension_numbers<[1], [0], [0], [1], [0, 0, 1, 1], [], []>} : vector<8x128xf32>, vector<128x512xf32>, vector<8x512xf32> -> vector<8x512xf32>
    %253 = arith.addf %249, %252 : vector<8x512xf32>
    %c0_93 = arith.constant 0 : index
    %c0_94 = arith.constant 0 : index
    %c0_95 = arith.constant 0 : index
    %254 = vector.load %arg5[%c0_93, %c0_94, %c0_95] : memref<1x1x512xf32, #tpu.memory_space<vmem>>, vector<1x1x512xf32>
    %255 = vector.shape_cast %254 : vector<1x1x512xf32> to vector<1x512xf32>
    %256 = vector.broadcast %255 : vector<1x512xf32> to vector<8x512xf32>
    %257 = arith.addf %253, %256 : vector<8x512xf32>
    %258 = vector.extract_strided_slice %257 {offsets = [0, 0], sizes = [8, 128], strides = [1, 1]} : vector<8x512xf32> to vector<8x128xf32>
    %259 = arith.negf %258 : vector<8x128xf32>
    %260 = math.exp %259 : vector<8x128xf32>
    %cst_96 = arith.constant 1.000000e+00 : f32
    %261 = vector.broadcast %cst_96 : f32 to vector<8x128xf32>
    %262 = arith.addf %261, %260 : vector<8x128xf32>
    %263 = arith.divf %261, %262 : vector<8x128xf32>
    %264 = vector.extract_strided_slice %257 {offsets = [0, 128], sizes = [8, 128], strides = [1, 1]} : vector<8x512xf32> to vector<8x128xf32>
    %265 = arith.negf %264 : vector<8x128xf32>
    %266 = math.exp %265 : vector<8x128xf32>
    %cst_97 = arith.constant 1.000000e+00 : f32
    %267 = vector.broadcast %cst_97 : f32 to vector<8x128xf32>
    %268 = arith.addf %267, %266 : vector<8x128xf32>
    %269 = arith.divf %267, %268 : vector<8x128xf32>
    %270 = vector.extract_strided_slice %257 {offsets = [0, 256], sizes = [8, 128], strides = [1, 1]} : vector<8x512xf32> to vector<8x128xf32>
    %271 = math.tanh %270 : vector<8x128xf32>
    %272 = vector.extract_strided_slice %257 {offsets = [0, 384], sizes = [8, 128], strides = [1, 1]} : vector<8x512xf32> to vector<8x128xf32>
    %273 = arith.negf %272 : vector<8x128xf32>
    %274 = math.exp %273 : vector<8x128xf32>
    %cst_98 = arith.constant 1.000000e+00 : f32
    %275 = vector.broadcast %cst_98 : f32 to vector<8x128xf32>
    %276 = arith.addf %275, %274 : vector<8x128xf32>
    %277 = arith.divf %275, %276 : vector<8x128xf32>
    %278 = arith.mulf %269, %240 : vector<8x128xf32>
    %279 = arith.mulf %263, %271 : vector<8x128xf32>
    %280 = arith.addf %278, %279 : vector<8x128xf32>
    %281 = math.tanh %280 : vector<8x128xf32>
    %282 = arith.mulf %277, %281 : vector<8x128xf32>
    %283 = arith.index_cast %c6_i32 : i32 to index
    %c0_99 = arith.constant 0 : index
    %c0_100 = arith.constant 0 : index
    %284 = vector.load %arg9[%283, %c0_99, %c0_100] : memref<7x8x128xf32, #tpu.memory_space<vmem>>, vector<1x8x128xf32>
    %285 = vector.shape_cast %284 : vector<1x8x128xf32> to vector<8x128xf32>
    %286 = vector.shape_cast %282 : vector<8x128xf32> to vector<1x8x128xf32>
    tpu.vector_store %arg9[%283, %c0_99, %c0_100], %286 {strides = array<i32>} : memref<7x8x128xf32, #tpu.memory_space<vmem>>, vector<1x8x128xf32>,
    %c7_i32 = arith.constant 7 : i32
    %c0_101 = arith.constant 0 : index
    %c0_102 = arith.constant 0 : index
    %c0_103 = arith.constant 0 : index
    %287 = vector.load %arg6[%c0_101, %c0_102, %c0_103] : memref<1x8x128xf32, #tpu.memory_space<vmem>>, vector<1x8x128xf32>
    %288 = vector.shape_cast %287 : vector<1x8x128xf32> to vector<8x128xf32>
    %289 = vector.shape_cast %282 : vector<8x128xf32> to vector<1x8x128xf32>
    tpu.vector_store %arg6[%c0_101, %c0_102, %c0_103], %289 {strides = array<i32>} : memref<1x8x128xf32, #tpu.memory_space<vmem>>, vector<1x8x128xf32>,
    %c0_104 = arith.constant 0 : index
    %c0_105 = arith.constant 0 : index
    %c0_106 = arith.constant 0 : index
    %290 = vector.load %arg7[%c0_104, %c0_105, %c0_106] : memref<1x8x128xf32, #tpu.memory_space<vmem>>, vector<1x8x128xf32>
    %291 = vector.shape_cast %290 : vector<1x8x128xf32> to vector<8x128xf32>
    %292 = vector.shape_cast %280 : vector<8x128xf32> to vector<1x8x128xf32>
    tpu.vector_store %arg7[%c0_104, %c0_105, %c0_106], %292 {strides = array<i32>} : memref<1x8x128xf32, #tpu.memory_space<vmem>>, vector<1x8x128xf32>,
    return
  }
  func.func @transform_0(%arg0: i32, %arg1: i32) -> (i32, i32, i32) {
    %c0_i32 = arith.constant 0 : i32
    %c0_i32_0 = arith.constant 0 : i32
    %c0_i32_1 = arith.constant 0 : i32
    return %c0_i32, %arg0, %c0_i32_0 : i32, i32, i32
  }
  func.func @transform_1(%arg0: i32, %arg1: i32) -> (i32, i32, i32) {
    %c0_i32 = arith.constant 0 : i32
    %c0_i32_0 = arith.constant 0 : i32
    %c0_i32_1 = arith.constant 0 : i32
    return %arg1, %c0_i32, %c0_i32_0 : i32, i32, i32
  }
  func.func @transform_2(%arg0: i32, %arg1: i32) -> (i32, i32, i32) {
    %c0_i32 = arith.constant 0 : i32
    %c0_i32_0 = arith.constant 0 : i32
    %c0_i32_1 = arith.constant 0 : i32
    return %arg1, %c0_i32, %c0_i32_0 : i32, i32, i32
  }
  func.func @transform_3(%arg0: i32, %arg1: i32) -> (i32, i32, i32) {
    %c0_i32 = arith.constant 0 : i32
    %c0_i32_0 = arith.constant 0 : i32
    %c0_i32_1 = arith.constant 0 : i32
    return %arg1, %c0_i32, %c0_i32_0 : i32, i32, i32
  }
  func.func @transform_4(%arg0: i32, %arg1: i32) -> (i32, i32, i32) {
    %c0_i32 = arith.constant 0 : i32
    %c0_i32_0 = arith.constant 0 : i32
    return %arg1, %arg0, %c0_i32 : i32, i32, i32
  }
  func.func @transform_5(%arg0: i32, %arg1: i32) -> (i32, i32, i32) {
    %c0_i32 = arith.constant 0 : i32
    %c0_i32_0 = arith.constant 0 : i32
    return %arg1, %arg0, %c0_i32 : i32, i32, i32
  }
}

</mosaic_0001>

<bundles_post_ra>
// kernel: encoder_forward.1
= control target key start
LH: loop header
LB: loop body
LE: loop exit
PB: predicated region body
PF: predicated region fallthrough
CT: control target
= control target key end

     0   :  { %s4218_s0 = inlined_call_operand.vmem [shape: f32[7,8,128], index: 0, kind: input, shape index: {}]   ;;  %s4219_s1 = inlined_call_operand.hbm [shape: f32[2,128,512], index: 1, kind: input, shape index: {}]   ;;  %s4220_s2 = inlined_call_operand.hbm [shape: f32[2,128,512], index: 2, kind: input, shape index: {}]   ;;  %s4221_s3 = inlined_call_operand.vmem [shape: f32[2,1,512], index: 3, kind: input, shape index: {}]   ;;  %s4222_s4 = inlined_call_operand.vmem [shape: f32[2,8,128], index: 4, kind: output, shape index: {0}]   ;;  %s4223_s5 = inlined_call_operand.vmem [shape: f32[2,8,128], index: 5, kind: output, shape index: {1}]  }
   0x1   :  { %4256 = sst [smem:[#allocation31_spill]] %s4219_s1 }
   0x2   :  { %11 = vsyncpa [#allocation5], 0 }
   0x3   :  { %13 = vsyncpa [#allocation5 + $0x1], 0 }
   0x4   :  { %14 = vsyncpa [#allocation7], 0 }
   0x5   :  { %16 = vsyncpa [#allocation7 + $0x1], 0  ;;  %s3036_s18 = smov 0   ;;  %s3038_s19 = smov 0  }
   0x6   :  { %s3040_s20 = smov 0   ;;  %s3042_s21 = smov 0  }
   0x7   :  { %s3044_s22 = smov 0   ;;  %s3046_s23 = smov 0  }
   0x8 LB: > { %s2668_s24 = sadd.s32 4294967295, %s3001_s23   ;;  %s31_s25 = sadd.s32 1, %s2997_s22  ;;  %s3001_s23 = sphi %s3046_s23, %s22_s23   ;;  %s2997_s22 = sphi %s3044_s22, %s4309_s22   ;;  %s2993_s21 = sphi %s3042_s21, %s4308_s21   ;;  %s2989_s20 = sphi %s3040_s20, %s4307_s20   ;;  %s2985_s19 = sphi %s3038_s19, %s4306_s19   ;;  %s2981_s18 = sphi %s3036_s18, %s4305_s18  }
   0x9   : > { %p32_p0 = scmp.ge.s32.totalorder %s31_s25, 2  ;;  %s67_s26 = sadd.s32 1, %s2989_s20 }
   0xa   : > { %p74_p1 = scmp.ne.s32.totalorder %s2989_s20, %s2985_s19  ;;  %p75_p2 = scmp.eq.s32.totalorder %s3001_s23, 0 }
   0xb   : > { %s4311_s25 = smov (%p32_p0, %s31_s25), 0  ;;  %p80_p4 = scmp.ne.s32.totalorder %s2985_s19, %s2981_s18 }
   0xc   : > { %4257 = sst [smem:[#allocation10_spill]] %s4311_s25  ;;  %p3072_p3 = por %p75_p2, %p74_p1 }
   0xd   : > { %s64_s28 = ssub.s32 %s2997_s22, %s4311_s25  ;;  %p81_p5 = scmp.eq.s32.totalorder %s2668_s24, 0 }
   0xe   : > { %p65_p6 = scmp.eq.s32.totalorder %s64_s28, 0  ;;  %p2723_p8 = scmp.lt.s32.totalorder %s3001_s23, 2 }
   0xf   : > { %p3079_p7 = por %p81_p5, %p80_p4  ;;  %s3088_s6 = sand.u32 1, %s2989_s20  }
  0x10   : > { %s3085_s30 = scalar_select %p65_p6, %s2989_s20, %s67_s26  }
  0x11   : > { %s2710_s7 = sshll.u32 %s2997_s22, 9  ;;  %s2673_s8 = sshll.u32 %s3088_s6, 9 }
  0x12   : > { %s4260_s1 = sld [smem:[#allocation31_spill]]  ;;  %s223_s13 = scalar_lea.vmem [#allocation4], %s2673_s8 }
  0x13   : > { %s231_s14 = sshll.u32 %s223_s13, 4  ;;  %p3097_p9 = pnand %p2723_p8, %p3072_p3  ;;  %s232_s14 = int_to_ptr.vmem [resolvable:$true] %s231_s14 }
  0x14   : > { %p2679_p10 = scmp.ge.s32.totalorder %s3001_s23, 1  ;;  %p268_p11 = scmp.lt.s32.totalorder %s3001_s23, 3 }
  0x15   : > { %s220_s16 = scalar_lea.sflag [#allocation5], %s3088_s6  ;;  %s3003_s17 = smov 512  }
  0x16   : > { %s3004_s18 = smov 32   ;;  %p269_p12 = pnand %p2679_p10, %p268_p11 }
  0x17   : > { %s250_s28 = scalar_lea.hbm %s4220_s2, %s2710_s7  ;;  %s245_s27 = scalar_lea.vmem [#allocation6], %s2673_s8 }
  0x18   : > { %s228_s11 = scalar_lea.hbm %s4260_s1, %s2710_s7  ;;  %s251_s9 = sshll.u32 %s250_s28, 4  ;;  %s252_s9 = int_to_ptr.hbm [resolvable:$true] %s251_s9 }
  0x19   : > { %s229_s12 = sshll.u32 %s228_s11, 4  ;;  %s253_s10 = sshll.u32 %s245_s27, 4  ;;  %s230_s12 = int_to_ptr.hbm [resolvable:$true] %s229_s12  ;;  %s254_s10 = int_to_ptr.vmem [resolvable:$true] %s253_s10 }
  0x1a   : > { %2719 = dma.hbm_to_vmem [thread:$0]  (!%p3097_p9), %s230_s12, 8192, %s232_s14, %s220_s16, %s3003_s17, %s3003_s17, %s3004_s18  }
  0x1b   : > { %s242_s11 = scalar_lea.sflag [#allocation7], %s3088_s6  ;;  %272 = sbr.rel (%p269_p12) target bundleno = 1719 (0x6b7), region = 36 }
  0x1c   : > { %2722 = dma.hbm_to_vmem [thread:$0]  (!%p3097_p9), %s252_s9, 8192, %s254_s10, %s242_s11, %s3003_s17, %s3003_s17, %s3004_s18  }
  0x20   : > { %s274_s13 = sand.u32 1, %s2985_s19  }
  0x21   : > { %s2680_s1 = sshll.u32 %s274_s13, 9  ;;  %s275_s25 = scalar_lea.sflag [#allocation5], %s274_s13 }
  0x22   : > { %s3113_s12 = scalar_lea.vmem [#allocation4], %s2680_s1 }
  0x23   : > { %2972 = dma.done.wait (%p3079_p7), %s275_s25, 8192  }
  0x24   : > { %2974 = vsyncadd (%p3079_p7), %s275_s25, 4294959104  ;;  %s285_s7 = scalar_lea.sflag [#allocation7], %s274_s13  ;;  %s3119_s8 = scalar_lea.vmem [#allocation6], %s2680_s1 }
  0x25   : > { %2976 = dma.done.wait (%p3079_p7), %s285_s7, 8192  }
  0x26   : > { %2978 = vsyncadd (%p3079_p7), %s285_s7, 4294959104  ;;  %p342_p13 = scmp.lt.s32.totalorder %s2993_s21, 1  ;;  %p2685_p0 = scmp.ne.s32.totalorder %s2993_s21, 0 }
  0x28   : > { %s343_s6 = scalar_select %p342_p13, %s2993_s21, 1 }
  0x29   : > { %363 = sbr.rel (%p2685_p0) target bundleno = 260 (0x104), region = 48 }
  0x2a   : > { %s2682_s14 = sshll.u32 %s343_s6, 2  ;;  %s2683_s15 = sshll.u32 %s343_s6, 3 }
  0x2b   : > { %s3130_s18 = scalar_lea.vmem %s4221_s3, %s2682_s14  ;;  %s3135_s1 = scalar_lea.vmem %s4222_s4, %s2683_s15 }
  0x2c   : > { %s3140_s29 = scalar_lea.vmem %s4223_s5, %s2683_s15 }
  0x2e   : > { %v433_v0 = vld [vmem:[%s3113_s12 + $0x1f0] sm:$0xff]  ;;  %v434_v1 = vld [vmem:[%s3113_s12 + $0x1f8] sm:$0xff]  ;;  %v431_v6 = vld [vmem:[%s3113_s12 + $0x1e0] sm:$0xff] }
  0x2f   : > { %v429_v2 = vld [vmem:[%s3113_s12 + $0x1d0] sm:$0xff]  ;;  %511 = vmatpush.msra.mxu2 %v433_v0  ;;  %549 = vmatpush.msra.mxu3 %v434_v1  ;;  %v430_v3 = vld [vmem:[%s3113_s12 + $0x1d8] sm:$0xff]  ;;  %v432_v7 = vld [vmem:[%s3113_s12 + $0x1e8] sm:$0xff] }
  0x30   : > { %v425_v4 = vld [vmem:[%s3113_s12 + $0x1b0] sm:$0xff]  ;;  %v426_v5 = vld [vmem:[%s3113_s12 + $0x1b8] sm:$0xff]  ;;  %v427_v8 = vld [vmem:[%s3113_s12 + $0x1c0] sm:$0xff]  ;;  %435 = vmatpush.msra.mxu0 %v431_v6  ;;  %473 = vmatpush.msra.mxu1 %v432_v7 }
  0x31   : > { %512 = vmatpush.msra.mxu2 %v429_v2  ;;  %550 = vmatpush.msra.mxu3 %v430_v3  ;;  %v428_v9 = vld [vmem:[%s3113_s12 + $0x1c8] sm:$0xff]  ;;  %v421_v10 = vld [vmem:[%s3113_s12 + $0x190] sm:$0xff]  ;;  %v422_v11 = vld [vmem:[%s3113_s12 + $0x198] sm:$0xff] }
  0x32   : > { %v423_v12 = vld [vmem:[%s3113_s12 + $0x1a0] sm:$0xff]  ;;  %v424_v13 = vld [vmem:[%s3113_s12 + $0x1a8] sm:$0xff]  ;;  %436 = vmatpush.msra.mxu0 %v427_v8  ;;  %474 = vmatpush.msra.mxu1 %v428_v9  ;;  %v417_v14 = vld [vmem:[%s3113_s12 + $0x170] sm:$0xff] }
  0x33   : > { %513 = vmatpush.msra.mxu2 %v425_v4  ;;  %551 = vmatpush.msra.mxu3 %v426_v5  ;;  %v418_v15 = vld [vmem:[%s3113_s12 + $0x178] sm:$0xff]  ;;  %v419_v16 = vld [vmem:[%s3113_s12 + $0x180] sm:$0xff]  ;;  %v420_v17 = vld [vmem:[%s3113_s12 + $0x188] sm:$0xff] }
  0x34   : > { %437 = vmatpush.msra.mxu0 %v423_v12  ;;  %475 = vmatpush.msra.mxu1 %v424_v13  ;;  %v413_v18 = vld [vmem:[%s3113_s12 + $0x150] sm:$0xff]  ;;  %v414_v19 = vld [vmem:[%s3113_s12 + $0x158] sm:$0xff]  ;;  %v415_v20 = vld [vmem:[%s3113_s12 + $0x160] sm:$0xff] }
  0x35   : > { %514 = vmatpush.msra.mxu2 %v421_v10  ;;  %552 = vmatpush.msra.mxu3 %v422_v11  ;;  %v416_v21 = vld [vmem:[%s3113_s12 + $0x168] sm:$0xff]  ;;  %v409_v22 = vld [vmem:[%s3113_s12 + $0x130] sm:$0xff]  ;;  %v410_v23 = vld [vmem:[%s3113_s12 + $0x138] sm:$0xff] }
  0x36   : > { %438 = vmatpush.msra.mxu0 %v419_v16  ;;  %476 = vmatpush.msra.mxu1 %v420_v17  ;;  %v411_v24 = vld [vmem:[%s3113_s12 + $0x140] sm:$0xff]  ;;  %v412_v25 = vld [vmem:[%s3113_s12 + $0x148] sm:$0xff]  ;;  %v405_v26 = vld [vmem:[%s3113_s12 + $0x110] sm:$0xff] }
  0x37   : > { %515 = vmatpush.msra.mxu2 %v417_v14  ;;  %553 = vmatpush.msra.mxu3 %v418_v15  ;;  %v406_v27 = vld [vmem:[%s3113_s12 + $0x118] sm:$0xff]  ;;  %v407_v28 = vld [vmem:[%s3113_s12 + $0x120] sm:$0xff]  ;;  %v408_v29 = vld [vmem:[%s3113_s12 + $0x128] sm:$0xff] }
  0x38   : > { %439 = vmatpush.msra.mxu0 %v415_v20  ;;  %477 = vmatpush.msra.mxu1 %v416_v21  ;;  %v401_v30 = vld [vmem:[%s3113_s12 + $0xf0] sm:$0xff]  ;;  %v402_v31 = vld [vmem:[%s3113_s12 + $0xf8] sm:$0xff]  ;;  %v403_v32 = vld [vmem:[%s3113_s12 + $0x100] sm:$0xff] }
  0x39   : > { %516 = vmatpush.msra.mxu2 %v413_v18  ;;  %554 = vmatpush.msra.mxu3 %v414_v19  ;;  %v404_v33 = vld [vmem:[%s3113_s12 + $0x108] sm:$0xff]  ;;  %v397_v34 = vld [vmem:[%s3113_s12 + $0xd0] sm:$0xff]  ;;  %v398_v35 = vld [vmem:[%s3113_s12 + $0xd8] sm:$0xff] }
  0x3a   : > { %440 = vmatpush.msra.mxu0 %v411_v24  ;;  %478 = vmatpush.msra.mxu1 %v412_v25  ;;  %v399_v36 = vld [vmem:[%s3113_s12 + $0xe0] sm:$0xff]  ;;  %v400_v37 = vld [vmem:[%s3113_s12 + $0xe8] sm:$0xff]  ;;  %v393_v38 = vld [vmem:[%s3113_s12 + $0xb0] sm:$0xff] }
  0x3b   : > { %517 = vmatpush.msra.mxu2 %v409_v22  ;;  %555 = vmatpush.msra.mxu3 %v410_v23  ;;  %v394_v39 = vld [vmem:[%s3113_s12 + $0xb8] sm:$0xff]  ;;  %v395_v40 = vld [vmem:[%s3113_s12 + $0xc0] sm:$0xff]  ;;  %v396_v41 = vld [vmem:[%s3113_s12 + $0xc8] sm:$0xff] }
  0x3c   : > { %441 = vmatpush.msra.mxu0 %v407_v28  ;;  %479 = vmatpush.msra.mxu1 %v408_v29  ;;  %v389_v42 = vld [vmem:[%s3113_s12 + $0x90] sm:$0xff]  ;;  %v390_v43 = vld [vmem:[%s3113_s12 + $0x98] sm:$0xff]  ;;  %v391_v44 = vld [vmem:[%s3113_s12 + $0xa0] sm:$0xff] }
  0x3d   : > { %518 = vmatpush.msra.mxu2 %v405_v26  ;;  %556 = vmatpush.msra.mxu3 %v406_v27  ;;  %v392_v45 = vld [vmem:[%s3113_s12 + $0xa8] sm:$0xff]  ;;  %v385_v46 = vld [vmem:[%s3113_s12 + $0x70] sm:$0xff]  ;;  %v386_v47 = vld [vmem:[%s3113_s12 + $0x78] sm:$0xff] }
  0x3e   : > { %442 = vmatpush.msra.mxu0 %v403_v32  ;;  %480 = vmatpush.msra.mxu1 %v404_v33  ;;  %v387_v48 = vld [vmem:[%s3113_s12 + $0x80] sm:$0xff]  ;;  %v388_v49 = vld [vmem:[%s3113_s12 + $0x88] sm:$0xff]  ;;  %v381_v50 = vld [vmem:[%s3113_s12 + $0x50] sm:$0xff] }
  0x3f   : > { %519 = vmatpush.msra.mxu2 %v401_v30  ;;  %557 = vmatpush.msra.mxu3 %v402_v31  ;;  %v382_v51 = vld [vmem:[%s3113_s12 + $0x58] sm:$0xff]  ;;  %v383_v52 = vld [vmem:[%s3113_s12 + $0x60] sm:$0xff]  ;;  %v384_v53 = vld [vmem:[%s3113_s12 + $0x68] sm:$0xff] }
  0x40   : > { %443 = vmatpush.msra.mxu0 %v399_v36  ;;  %481 = vmatpush.msra.mxu1 %v400_v37  ;;  %v377_v54 = vld [vmem:[%s3113_s12 + $0x30] sm:$0xff]  ;;  %v378_v55 = vld [vmem:[%s3113_s12 + $0x38] sm:$0xff]  ;;  %v379_v56 = vld [vmem:[%s3113_s12 + $0x40] sm:$0xff] }
  0x41   : > { %520 = vmatpush.msra.mxu2 %v397_v34  ;;  %558 = vmatpush.msra.mxu3 %v398_v35  ;;  %v380_v57 = vld [vmem:[%s3113_s12 + $0x48] sm:$0xff]  ;;  %v373_v58 = vld [vmem:[%s3113_s12 + $0x10] sm:$0xff]  ;;  %v374_v59 = vld [vmem:[%s3113_s12 + $0x18] sm:$0xff] }
  0x42   : > { %444 = vmatpush.msra.mxu0 %v395_v40  ;;  %482 = vmatpush.msra.mxu1 %v396_v41  ;;  %v364_v60 = vld [vmem:[%s4218_s0] sm:$0xff]  ;;  %v375_v61 = vld [vmem:[%s3113_s12 + $0x20] sm:$0xff]  ;;  %v365_v1 = vld [vmem:[%s4218_s0 + $0x8] sm:$0xff] }
  0x43   : > { %521 = vmatpush.msra.mxu2 %v393_v38  ;;  %559 = vmatpush.msra.mxu3 %v394_v39  ;;  %v376_v62 = vld [vmem:[%s3113_s12 + $0x28] sm:$0xff]  ;;  %v371_v63 = vld [vmem:[%s3113_s12] sm:$0xff]  ;;  %v366_v2 = vld [vmem:[%s4218_s0 + $0x10] sm:$0xff] }
  0x44   : > { %445 = vmatpush.msra.mxu0 %v391_v44  ;;  %483 = vmatpush.msra.mxu1 %v392_v45  ;;  %v372_v0 = vld [vmem:[%s3113_s12 + $0x8] sm:$0xff]  ;;  %v367_v3 = vld [vmem:[%s4218_s0 + $0x18] sm:$0xff]  ;;  %v369_v5 = vld [vmem:[%s4218_s0 + $0x28] sm:$0xff] }
  0x45   : > { %522 = vmatpush.msra.mxu2 %v389_v42  ;;  %560 = vmatpush.msra.mxu3 %v390_v43  ;;  %v368_v4 = vld [vmem:[%s4218_s0 + $0x20] sm:$0xff]  ;;  %v370_v6 = vld [vmem:[%s4218_s0 + $0x30] sm:$0xff] }
  0x46   : > { %446 = vmatpush.msra.mxu0 %v387_v48  ;;  %484 = vmatpush.msra.mxu1 %v388_v49 }
  0x47   : > { %523 = vmatpush.msra.mxu2 %v385_v46  ;;  %561 = vmatpush.msra.mxu3 %v386_v47 }
  0x48   : > { %447 = vmatpush.msra.mxu0 %v383_v52  ;;  %485 = vmatpush.msra.mxu1 %v384_v53 }
  0x49   : > { %524 = vmatpush.msra.mxu2 %v381_v50  ;;  %562 = vmatpush.msra.mxu3 %v382_v51 }
  0x4a   : > { %448 = vmatpush.msra.mxu0 %v379_v56  ;;  %486 = vmatpush.msra.mxu1 %v380_v57 }
  0x4b   : > { %525 = vmatpush.msra.mxu2 %v377_v54  ;;  %563 = vmatpush.msra.mxu3 %v378_v55 }
  0x4c   : > { %449 = vmatpush.msra.mxu0 %v375_v61  ;;  %487 = vmatpush.msra.mxu1 %v376_v62 }
  0x4d   : > { %526 = vmatpush.msra.mxu2 %v373_v58  ;;  %564 = vmatpush.msra.mxu3 %v374_v59 }
  0x4e   : > { %527 = vmatmul.f32.vlgmr.msra.gmra.mxu2 %v364_v60  ;;  %565 = vmatmul.f32.vlgmr.msra.gmra.mxu3 %v364_v60 }
  0x4f   : > { %450 = vmatpush.msra.mxu0 %v371_v63  ;;  %488 = vmatpush.msra.mxu1 %v372_v0 }
  0x50   : > { %451 = vmatmul.f32.vlgmr.msra.gmra.mxu0 %v364_v60  ;;  %489 = vmatmul.f32.vlgmr.msra.gmra.mxu1 %v364_v60 }
  0x56   : > { %530 = vmatmul.f32.gmra.mxu2 %v365_v1  ;;  %568 = vmatmul.f32.gmra.mxu3 %v365_v1 }
  0x58   : > { %454 = vmatmul.f32.gmra.mxu0 %v365_v1  ;;  %492 = vmatmul.f32.gmra.mxu1 %v365_v1 }
  0x5e   : > { %533 = vmatmul.f32.gmra.mxu2 %v366_v2  ;;  %571 = vmatmul.f32.gmra.mxu3 %v366_v2 }
  0x60   : > { %457 = vmatmul.f32.gmra.mxu0 %v366_v2  ;;  %495 = vmatmul.f32.gmra.mxu1 %v366_v2 }
  0x66   : > { %536 = vmatmul.f32.gmra.mxu2 %v367_v3  ;;  %574 = vmatmul.f32.gmra.mxu3 %v367_v3 }
  0x68   : > { %460 = vmatmul.f32.gmra.mxu0 %v367_v3  ;;  %498 = vmatmul.f32.gmra.mxu1 %v367_v3 }
  0x6e   : > { %539 = vmatmul.f32.gmra.mxu2 %v368_v4  ;;  %577 = vmatmul.f32.gmra.mxu3 %v368_v4 }
  0x70   : > { %463 = vmatmul.f32.gmra.mxu0 %v368_v4  ;;  %501 = vmatmul.f32.gmra.mxu1 %v368_v4 }
  0x76   : > { %542 = vmatmul.f32.gmra.mxu2 %v369_v5  ;;  %580 = vmatmul.f32.gmra.mxu3 %v369_v5 }
  0x78   : > { %466 = vmatmul.f32.gmra.mxu0 %v369_v5  ;;  %504 = vmatmul.f32.gmra.mxu1 %v369_v5 }
  0x7e   : > { %545 = vmatmul.f32.gmra.mxu2 %v370_v6  ;;  %583 = vmatmul.f32.gmra.mxu3 %v370_v6 }
  0x80   : > { %469 = vmatmul.f32.gmra.mxu0 %v370_v6  ;;  %507 = vmatmul.f32.gmra.mxu1 %v370_v6 }
  0xcd   : > { %v452_v7 = vpop.f32.mrf.mxu0  ;;  %v490_v8 = vpop.f32.mrf.mxu1 }
  0xce   : > { %587 = vst [vmem:[#allocation2 + $0xb0] sm:$0xff] %v452_v7 }
  0xcf   : > { %588 = vst [vmem:[#allocation2] sm:$0xff] %v490_v8 }
  0xd1   : > { %v528_v9 = vpop.f32.mrf.mxu2  ;;  %v566_v10 = vpop.f32.mrf.mxu3 }
  0xd2   : > { %589 = vst [vmem:[#allocation2 + $0xd8] sm:$0xff] %v528_v9 }
  0xd3   : > { %590 = vst [vmem:[#allocation2 + $0x18] sm:$0xff] %v566_v10 }
  0xd5   : > { %v455_v11 = vpop.f32.mrf.mxu0  ;;  %v493_v12 = vpop.f32.mrf.mxu1 }
  0xd6   : > { %591 = vst [vmem:[#allocation2 + $0x50] sm:$0xff] %v455_v11 }
  0xd7   : > { %592 = vst [vmem:[#allocation2 + $0x68] sm:$0xff] %v493_v12 }
  0xd9   : > { %v531_v13 = vpop.f32.mrf.mxu2  ;;  %v569_v14 = vpop.f32.mrf.mxu3 }
  0xda   : > { %593 = vst [vmem:[#allocation2 + $0x30] sm:$0xff] %v531_v13 }
  0xdb   : > { %594 = vst [vmem:[#allocation2 + $0x48] sm:$0xff] %v569_v14 }
  0xdd   : > { %v458_v15 = vpop.f32.mrf.mxu0  ;;  %v496_v16 = vpop.f32.mrf.mxu1 }
  0xde   : > { %595 = vst [vmem:[#allocation2 + $0x80] sm:$0xff] %v458_v15 }
  0xdf   : > { %596 = vst [vmem:[#allocation2 + $0x88] sm:$0xff] %v496_v16 }
  0xe1   : > { %v534_v17 = vpop.f32.mrf.mxu2  ;;  %v572_v18 = vpop.f32.mrf.mxu3 }
  0xe2   : > { %597 = vst [vmem:[#allocation2 + $0x8] sm:$0xff] %v534_v17 }
  0xe3   : > { %598 = vst [vmem:[#allocation2 + $0x58] sm:$0xff] %v572_v18 }
  0xe5   : > { %v461_v19 = vpop.f32.mrf.mxu0  ;;  %v499_v20 = vpop.f32.mrf.mxu1 }
  0xe6   : > { %599 = vst [vmem:[#allocation2 + $0x38] sm:$0xff] %v461_v19 }
  0xe7   : > { %600 = vst [vmem:[#allocation2 + $0x90] sm:$0xff] %v499_v20 }
  0xe9   : > { %v537_v21 = vpop.f32.mrf.mxu2  ;;  %v575_v22 = vpop.f32.mrf.mxu3 }
  0xea   : > { %601 = vst [vmem:[#allocation2 + $0x78] sm:$0xff] %v537_v21 }
  0xeb   : > { %602 = vst [vmem:[#allocation2 + $0xb8] sm:$0xff] %v575_v22 }
  0xed   : > { %v464_v23 = vpop.f32.mrf.mxu0  ;;  %v502_v24 = vpop.f32.mrf.mxu1 }
  0xee   : > { %603 = vst [vmem:[#allocation2 + $0x40] sm:$0xff] %v464_v23 }
  0xef   : > { %604 = vst [vmem:[#allocation2 + $0x28] sm:$0xff] %v502_v24 }
  0xf1   : > { %v540_v25 = vpop.f32.mrf.mxu2  ;;  %v578_v26 = vpop.f32.mrf.mxu3 }
  0xf2   : > { %605 = vst [vmem:[#allocation2 + $0xc0] sm:$0xff] %v540_v25 }
  0xf3   : > { %606 = vst [vmem:[#allocation2 + $0x60] sm:$0xff] %v578_v26 }
  0xf5   : > { %v467_v27 = vpop.f32.mrf.mxu0  ;;  %v505_v28 = vpop.f32.mrf.mxu1 }
  0xf6   : > { %607 = vst [vmem:[#allocation2 + $0xd0] sm:$0xff] %v467_v27 }
  0xf7   : > { %608 = vst [vmem:[#allocation2 + $0xa8] sm:$0xff] %v505_v28 }
  0xf9   : > { %v543_v29 = vpop.f32.mrf.mxu2  ;;  %v581_v30 = vpop.f32.mrf.mxu3 }
  0xfa   : > { %609 = vst [vmem:[#allocation2 + $0x98] sm:$0xff] %v543_v29 }
  0xfb   : > { %610 = vst [vmem:[#allocation2 + $0xa0] sm:$0xff] %v581_v30 }
  0xfd   : > { %v470_v31 = vpop.f32.mrf.mxu0  ;;  %v508_v32 = vpop.f32.mrf.mxu1 }
  0xfe   : > { %611 = vst [vmem:[#allocation2 + $0x20] sm:$0xff] %v470_v31 }
  0xff   : > { %612 = vst [vmem:[#allocation2 + $0x10] sm:$0xff] %v508_v32 }
 0x101   : > { %v546_v33 = vpop.f32.mrf.mxu2  ;;  %v584_v34 = vpop.f32.mrf.mxu3 }
 0x102   : > { %613 = vst [vmem:[#allocation2 + $0xc8] sm:$0xff] %v546_v33 }
 0x103   : > { %614 = vst [vmem:[#allocation2 + $0x70] sm:$0xff] %v584_v34 }
 0x104 PF: > { %p2686_p1 = scmp.le.s32.totalorder %s2993_s21, 0 }
 0x106   : > { %618 = sbr.rel (%p2686_p1) target bundleno = 481 (0x1e1), region = 52 }
 0x10b   : > { %v688_v35 = vld [vmem:[%s3113_s12 + $0x1f0] sm:$0xff]  ;;  %v689_v36 = vld [vmem:[%s3113_s12 + $0x1f8] sm:$0xff]  ;;  %v686_v41 = vld [vmem:[%s3113_s12 + $0x1e0] sm:$0xff] }
 0x10c   : > { %v684_v37 = vld [vmem:[%s3113_s12 + $0x1d0] sm:$0xff]  ;;  %766 = vmatpush.msra.mxu2 %v688_v35  ;;  %804 = vmatpush.msra.mxu3 %v689_v36  ;;  %v685_v38 = vld [vmem:[%s3113_s12 + $0x1d8] sm:$0xff]  ;;  %v687_v42 = vld [vmem:[%s3113_s12 + $0x1e8] sm:$0xff] }
 0x10d   : > { %v680_v39 = vld [vmem:[%s3113_s12 + $0x1b0] sm:$0xff]  ;;  %v681_v40 = vld [vmem:[%s3113_s12 + $0x1b8] sm:$0xff]  ;;  %v682_v43 = vld [vmem:[%s3113_s12 + $0x1c0] sm:$0xff]  ;;  %690 = vmatpush.msra.mxu0 %v686_v41  ;;  %728 = vmatpush.msra.mxu1 %v687_v42 }
 0x10e   : > { %767 = vmatpush.msra.mxu2 %v684_v37  ;;  %805 = vmatpush.msra.mxu3 %v685_v38  ;;  %v683_v44 = vld [vmem:[%s3113_s12 + $0x1c8] sm:$0xff]  ;;  %v676_v45 = vld [vmem:[%s3113_s12 + $0x190] sm:$0xff]  ;;  %v677_v46 = vld [vmem:[%s3113_s12 + $0x198] sm:$0xff] }
 0x10f   : > { %v678_v47 = vld [vmem:[%s3113_s12 + $0x1a0] sm:$0xff]  ;;  %v679_v48 = vld [vmem:[%s3113_s12 + $0x1a8] sm:$0xff]  ;;  %691 = vmatpush.msra.mxu0 %v682_v43  ;;  %729 = vmatpush.msra.mxu1 %v683_v44  ;;  %v672_v49 = vld [vmem:[%s3113_s12 + $0x170] sm:$0xff] }
 0x110   : > { %768 = vmatpush.msra.mxu2 %v680_v39  ;;  %806 = vmatpush.msra.mxu3 %v681_v40  ;;  %v673_v50 = vld [vmem:[%s3113_s12 + $0x178] sm:$0xff]  ;;  %v674_v51 = vld [vmem:[%s3113_s12 + $0x180] sm:$0xff]  ;;  %v675_v52 = vld [vmem:[%s3113_s12 + $0x188] sm:$0xff] }
 0x111   : > { %692 = vmatpush.msra.mxu0 %v678_v47  ;;  %730 = vmatpush.msra.mxu1 %v679_v48  ;;  %v668_v53 = vld [vmem:[%s3113_s12 + $0x150] sm:$0xff]  ;;  %v669_v54 = vld [vmem:[%s3113_s12 + $0x158] sm:$0xff]  ;;  %v670_v55 = vld [vmem:[%s3113_s12 + $0x160] sm:$0xff] }
 0x112   : > { %769 = vmatpush.msra.mxu2 %v676_v45  ;;  %807 = vmatpush.msra.mxu3 %v677_v46  ;;  %v671_v56 = vld [vmem:[%s3113_s12 + $0x168] sm:$0xff]  ;;  %v664_v57 = vld [vmem:[%s3113_s12 + $0x130] sm:$0xff]  ;;  %v665_v58 = vld [vmem:[%s3113_s12 + $0x138] sm:$0xff] }
 0x113   : > { %693 = vmatpush.msra.mxu0 %v674_v51  ;;  %731 = vmatpush.msra.mxu1 %v675_v52  ;;  %v666_v59 = vld [vmem:[%s3113_s12 + $0x140] sm:$0xff]  ;;  %v667_v60 = vld [vmem:[%s3113_s12 + $0x148] sm:$0xff]  ;;  %v660_v61 = vld [vmem:[%s3113_s12 + $0x110] sm:$0xff] }
 0x114   : > { %770 = vmatpush.msra.mxu2 %v672_v49  ;;  %808 = vmatpush.msra.mxu3 %v673_v50  ;;  %v661_v62 = vld [vmem:[%s3113_s12 + $0x118] sm:$0xff]  ;;  %v662_v63 = vld [vmem:[%s3113_s12 + $0x120] sm:$0xff]  ;;  %v663_v0 = vld [vmem:[%s3113_s12 + $0x128] sm:$0xff] }
 0x115   : > { %694 = vmatpush.msra.mxu0 %v670_v55  ;;  %732 = vmatpush.msra.mxu1 %v671_v56  ;;  %v656_v1 = vld [vmem:[%s3113_s12 + $0xf0] sm:$0xff]  ;;  %v657_v2 = vld [vmem:[%s3113_s12 + $0xf8] sm:$0xff]  ;;  %v658_v3 = vld [vmem:[%s3113_s12 + $0x100] sm:$0xff] }
 0x116   : > { %771 = vmatpush.msra.mxu2 %v668_v53  ;;  %809 = vmatpush.msra.mxu3 %v669_v54  ;;  %v659_v4 = vld [vmem:[%s3113_s12 + $0x108] sm:$0xff]  ;;  %v652_v5 = vld [vmem:[%s3113_s12 + $0xd0] sm:$0xff]  ;;  %v653_v6 = vld [vmem:[%s3113_s12 + $0xd8] sm:$0xff] }
 0x117   : > { %695 = vmatpush.msra.mxu0 %v666_v59  ;;  %733 = vmatpush.msra.mxu1 %v667_v60  ;;  %v654_v7 = vld [vmem:[%s3113_s12 + $0xe0] sm:$0xff]  ;;  %v655_v8 = vld [vmem:[%s3113_s12 + $0xe8] sm:$0xff]  ;;  %v648_v9 = vld [vmem:[%s3113_s12 + $0xb0] sm:$0xff] }
 0x118   : > { %772 = vmatpush.msra.mxu2 %v664_v57  ;;  %810 = vmatpush.msra.mxu3 %v665_v58  ;;  %v649_v10 = vld [vmem:[%s3113_s12 + $0xb8] sm:$0xff]  ;;  %v650_v11 = vld [vmem:[%s3113_s12 + $0xc0] sm:$0xff]  ;;  %v651_v12 = vld [vmem:[%s3113_s12 + $0xc8] sm:$0xff] }
 0x119   : > { %696 = vmatpush.msra.mxu0 %v662_v63  ;;  %734 = vmatpush.msra.mxu1 %v663_v0  ;;  %v644_v13 = vld [vmem:[%s3113_s12 + $0x90] sm:$0xff]  ;;  %v645_v14 = vld [vmem:[%s3113_s12 + $0x98] sm:$0xff]  ;;  %v646_v15 = vld [vmem:[%s3113_s12 + $0xa0] sm:$0xff] }
 0x11a   : > { %773 = vmatpush.msra.mxu2 %v660_v61  ;;  %811 = vmatpush.msra.mxu3 %v661_v62  ;;  %v647_v16 = vld [vmem:[%s3113_s12 + $0xa8] sm:$0xff]  ;;  %v640_v17 = vld [vmem:[%s3113_s12 + $0x70] sm:$0xff]  ;;  %v641_v18 = vld [vmem:[%s3113_s12 + $0x78] sm:$0xff] }
 0x11b   : > { %697 = vmatpush.msra.mxu0 %v658_v3  ;;  %735 = vmatpush.msra.mxu1 %v659_v4  ;;  %v642_v19 = vld [vmem:[%s3113_s12 + $0x80] sm:$0xff]  ;;  %v643_v20 = vld [vmem:[%s3113_s12 + $0x88] sm:$0xff]  ;;  %v636_v21 = vld [vmem:[%s3113_s12 + $0x50] sm:$0xff] }
 0x11c   : > { %774 = vmatpush.msra.mxu2 %v656_v1  ;;  %812 = vmatpush.msra.mxu3 %v657_v2  ;;  %v637_v22 = vld [vmem:[%s3113_s12 + $0x58] sm:$0xff]  ;;  %v638_v23 = vld [vmem:[%s3113_s12 + $0x60] sm:$0xff]  ;;  %v639_v24 = vld [vmem:[%s3113_s12 + $0x68] sm:$0xff] }
 0x11d   : > { %698 = vmatpush.msra.mxu0 %v654_v7  ;;  %736 = vmatpush.msra.mxu1 %v655_v8  ;;  %v632_v25 = vld [vmem:[%s3113_s12 + $0x30] sm:$0xff]  ;;  %v633_v26 = vld [vmem:[%s3113_s12 + $0x38] sm:$0xff]  ;;  %v634_v27 = vld [vmem:[%s3113_s12 + $0x40] sm:$0xff] }
 0x11e   : > { %775 = vmatpush.msra.mxu2 %v652_v5  ;;  %813 = vmatpush.msra.mxu3 %v653_v6  ;;  %v635_v28 = vld [vmem:[%s3113_s12 + $0x48] sm:$0xff]  ;;  %v628_v29 = vld [vmem:[%s3113_s12 + $0x10] sm:$0xff]  ;;  %v629_v30 = vld [vmem:[%s3113_s12 + $0x18] sm:$0xff] }
 0x11f   : > { %699 = vmatpush.msra.mxu0 %v650_v11  ;;  %737 = vmatpush.msra.mxu1 %v651_v12  ;;  %v619_v31 = vld [vmem:[#allocation3] sm:$0xff]  ;;  %v630_v32 = vld [vmem:[%s3113_s12 + $0x20] sm:$0xff]  ;;  %v620_v36 = vld [vmem:[#allocation3 + $0x10] sm:$0xff] }
 0x120   : > { %776 = vmatpush.msra.mxu2 %v648_v9  ;;  %814 = vmatpush.msra.mxu3 %v649_v10  ;;  %v631_v33 = vld [vmem:[%s3113_s12 + $0x28] sm:$0xff]  ;;  %v626_v34 = vld [vmem:[%s3113_s12] sm:$0xff]  ;;  %v622_v38 = vld [vmem:[#allocation3 + $0x30] sm:$0xff] }
 0x121   : > { %700 = vmatpush.msra.mxu0 %v646_v15  ;;  %738 = vmatpush.msra.mxu1 %v647_v16  ;;  %v627_v35 = vld [vmem:[%s3113_s12 + $0x8] sm:$0xff]  ;;  %v621_v37 = vld [vmem:[#allocation3 + $0x18] sm:$0xff]  ;;  %v624_v40 = vld [vmem:[#allocation3 + $0x28] sm:$0xff] }
 0x122   : > { %777 = vmatpush.msra.mxu2 %v644_v13  ;;  %815 = vmatpush.msra.mxu3 %v645_v14  ;;  %v623_v39 = vld [vmem:[#allocation3 + $0x20] sm:$0xff]  ;;  %v625_v41 = vld [vmem:[#allocation3 + $0x8] sm:$0xff] }
 0x123   : > { %701 = vmatpush.msra.mxu0 %v642_v19  ;;  %739 = vmatpush.msra.mxu1 %v643_v20 }
 0x124   : > { %778 = vmatpush.msra.mxu2 %v640_v17  ;;  %816 = vmatpush.msra.mxu3 %v641_v18 }
 0x125   : > { %702 = vmatpush.msra.mxu0 %v638_v23  ;;  %740 = vmatpush.msra.mxu1 %v639_v24 }
 0x126   : > { %779 = vmatpush.msra.mxu2 %v636_v21  ;;  %817 = vmatpush.msra.mxu3 %v637_v22 }
 0x127   : > { %703 = vmatpush.msra.mxu0 %v634_v27  ;;  %741 = vmatpush.msra.mxu1 %v635_v28 }
 0x128   : > { %780 = vmatpush.msra.mxu2 %v632_v25  ;;  %818 = vmatpush.msra.mxu3 %v633_v26 }
 0x129   : > { %704 = vmatpush.msra.mxu0 %v630_v32  ;;  %742 = vmatpush.msra.mxu1 %v631_v33 }
 0x12a   : > { %781 = vmatpush.msra.mxu2 %v628_v29  ;;  %819 = vmatpush.msra.mxu3 %v629_v30 }
 0x12b   : > { %782 = vmatmul.f32.vlgmr.msra.gmra.mxu2 %v619_v31  ;;  %820 = vmatmul.f32.vlgmr.msra.gmra.mxu3 %v619_v31 }
 0x12c   : > { %705 = vmatpush.msra.mxu0 %v626_v34  ;;  %743 = vmatpush.msra.mxu1 %v627_v35 }
 0x12d   : > { %706 = vmatmul.f32.vlgmr.msra.gmra.mxu0 %v619_v31  ;;  %744 = vmatmul.f32.vlgmr.msra.gmra.mxu1 %v619_v31 }
 0x133   : > { %785 = vmatmul.f32.gmra.mxu2 %v620_v36  ;;  %823 = vmatmul.f32.gmra.mxu3 %v620_v36 }
 0x135   : > { %709 = vmatmul.f32.gmra.mxu0 %v620_v36  ;;  %747 = vmatmul.f32.gmra.mxu1 %v620_v36 }
 0x13b   : > { %788 = vmatmul.f32.gmra.mxu2 %v621_v37  ;;  %826 = vmatmul.f32.gmra.mxu3 %v621_v37 }
 0x13d   : > { %712 = vmatmul.f32.gmra.mxu0 %v621_v37  ;;  %750 = vmatmul.f32.gmra.mxu1 %v621_v37 }
 0x143   : > { %791 = vmatmul.f32.gmra.mxu2 %v622_v38  ;;  %829 = vmatmul.f32.gmra.mxu3 %v622_v38 }
 0x145   : > { %715 = vmatmul.f32.gmra.mxu0 %v622_v38  ;;  %753 = vmatmul.f32.gmra.mxu1 %v622_v38 }
 0x14b   : > { %794 = vmatmul.f32.gmra.mxu2 %v623_v39  ;;  %832 = vmatmul.f32.gmra.mxu3 %v623_v39 }
 0x14d   : > { %718 = vmatmul.f32.gmra.mxu0 %v623_v39  ;;  %756 = vmatmul.f32.gmra.mxu1 %v623_v39 }
 0x153   : > { %797 = vmatmul.f32.gmra.mxu2 %v624_v40  ;;  %835 = vmatmul.f32.gmra.mxu3 %v624_v40 }
 0x155   : > { %721 = vmatmul.f32.gmra.mxu0 %v624_v40  ;;  %759 = vmatmul.f32.gmra.mxu1 %v624_v40 }
 0x15b   : > { %800 = vmatmul.f32.gmra.mxu2 %v625_v41  ;;  %838 = vmatmul.f32.gmra.mxu3 %v625_v41 }
 0x15d   : > { %724 = vmatmul.f32.gmra.mxu0 %v625_v41  ;;  %762 = vmatmul.f32.gmra.mxu1 %v625_v41 }
 0x1aa   : > { %v707_v42 = vpop.f32.mrf.mxu0  ;;  %v745_v43 = vpop.f32.mrf.mxu1 }
 0x1ab   : > { %842 = vst [vmem:[#allocation2 + $0xb0] sm:$0xff] %v707_v42 }
 0x1ac   : > { %843 = vst [vmem:[#allocation2] sm:$0xff] %v745_v43 }
 0x1ae   : > { %v783_v44 = vpop.f32.mrf.mxu2  ;;  %v821_v45 = vpop.f32.mrf.mxu3 }
 0x1af   : > { %844 = vst [vmem:[#allocation2 + $0xd8] sm:$0xff] %v783_v44 }
 0x1b0   : > { %845 = vst [vmem:[#allocation2 + $0x18] sm:$0xff] %v821_v45 }
 0x1b2   : > { %v710_v46 = vpop.f32.mrf.mxu0  ;;  %v748_v47 = vpop.f32.mrf.mxu1 }
 0x1b3   : > { %846 = vst [vmem:[#allocation2 + $0x50] sm:$0xff] %v710_v46 }
 0x1b4   : > { %847 = vst [vmem:[#allocation2 + $0x68] sm:$0xff] %v748_v47 }
 0x1b6   : > { %v786_v48 = vpop.f32.mrf.mxu2  ;;  %v824_v49 = vpop.f32.mrf.mxu3 }
 0x1b7   : > { %848 = vst [vmem:[#allocation2 + $0x30] sm:$0xff] %v786_v48 }
 0x1b8   : > { %849 = vst [vmem:[#allocation2 + $0x48] sm:$0xff] %v824_v49 }
 0x1ba   : > { %v713_v50 = vpop.f32.mrf.mxu0  ;;  %v751_v51 = vpop.f32.mrf.mxu1 }
 0x1bb   : > { %850 = vst [vmem:[#allocation2 + $0x80] sm:$0xff] %v713_v50 }
 0x1bc   : > { %851 = vst [vmem:[#allocation2 + $0x88] sm:$0xff] %v751_v51 }
 0x1be   : > { %v789_v52 = vpop.f32.mrf.mxu2  ;;  %v827_v53 = vpop.f32.mrf.mxu3 }
 0x1bf   : > { %852 = vst [vmem:[#allocation2 + $0x8] sm:$0xff] %v789_v52 }
 0x1c0   : > { %853 = vst [vmem:[#allocation2 + $0x58] sm:$0xff] %v827_v53 }
 0x1c2   : > { %v716_v54 = vpop.f32.mrf.mxu0  ;;  %v754_v55 = vpop.f32.mrf.mxu1 }
 0x1c3   : > { %854 = vst [vmem:[#allocation2 + $0x38] sm:$0xff] %v716_v54 }
 0x1c4   : > { %855 = vst [vmem:[#allocation2 + $0x90] sm:$0xff] %v754_v55 }
 0x1c6   : > { %v792_v56 = vpop.f32.mrf.mxu2  ;;  %v830_v57 = vpop.f32.mrf.mxu3 }
 0x1c7   : > { %856 = vst [vmem:[#allocation2 + $0x78] sm:$0xff] %v792_v56 }
 0x1c8   : > { %857 = vst [vmem:[#allocation2 + $0xb8] sm:$0xff] %v830_v57 }
 0x1ca   : > { %v719_v58 = vpop.f32.mrf.mxu0  ;;  %v757_v59 = vpop.f32.mrf.mxu1 }
 0x1cb   : > { %858 = vst [vmem:[#allocation2 + $0x40] sm:$0xff] %v719_v58 }
 0x1cc   : > { %859 = vst [vmem:[#allocation2 + $0x28] sm:$0xff] %v757_v59 }
 0x1ce   : > { %v795_v60 = vpop.f32.mrf.mxu2  ;;  %v833_v61 = vpop.f32.mrf.mxu3 }
 0x1cf   : > { %860 = vst [vmem:[#allocation2 + $0xc0] sm:$0xff] %v795_v60 }
 0x1d0   : > { %861 = vst [vmem:[#allocation2 + $0x60] sm:$0xff] %v833_v61 }
 0x1d2   : > { %v722_v62 = vpop.f32.mrf.mxu0  ;;  %v760_v63 = vpop.f32.mrf.mxu1 }
 0x1d3   : > { %862 = vst [vmem:[#allocation2 + $0xd0] sm:$0xff] %v722_v62 }
 0x1d4   : > { %863 = vst [vmem:[#allocation2 + $0xa8] sm:$0xff] %v760_v63 }
 0x1d6   : > { %v798_v0 = vpop.f32.mrf.mxu2  ;;  %v836_v1 = vpop.f32.mrf.mxu3 }
 0x1d7   : > { %864 = vst [vmem:[#allocation2 + $0x98] sm:$0xff] %v798_v0 }
 0x1d8   : > { %865 = vst [vmem:[#allocation2 + $0xa0] sm:$0xff] %v836_v1 }
 0x1da   : > { %v725_v2 = vpop.f32.mrf.mxu0  ;;  %v763_v3 = vpop.f32.mrf.mxu1 }
 0x1db   : > { %866 = vst [vmem:[#allocation2 + $0x20] sm:$0xff] %v725_v2 }
 0x1dc   : > { %867 = vst [vmem:[#allocation2 + $0x10] sm:$0xff] %v763_v3 }
 0x1de   : > { %v801_v4 = vpop.f32.mrf.mxu2  ;;  %v839_v5 = vpop.f32.mrf.mxu3 }
 0x1df   : > { %868 = vst [vmem:[#allocation2 + $0xc8] sm:$0xff] %v801_v4 }
 0x1e0   : > { %869 = vst [vmem:[#allocation2 + $0x70] sm:$0xff] %v839_v5 }
 0x1e1 PF: > { %v3294_v6 = vld [vmem:[%s3119_s8 + $0x1e0] sm:$0xff]  ;;  %v3297_v7 = vld [vmem:[%s3119_s8 + $0x1e8] sm:$0xff]  ;;  %v3300_v8 = vld [vmem:[%s3119_s8 + $0x1f8] sm:$0xff]  ;;  %v3005_v2 = vmov 0.0  }
 0x1e2   : > { %4262 = vst [vmem:[#allocation11_spill] sm:$0xff] %v3294_v6  ;;  %938 = vmatpush.msra.mxu0 %v3294_v6  ;;  %958 = vmatpush.msra.mxu1 %v3297_v7  ;;  %v3305_v9 = vld [vmem:[%s3119_s8 + $0x1c0] sm:$0xff]  ;;  %v3308_v10 = vld [vmem:[%s3119_s8 + $0x1c8] sm:$0xff]  ;;  %v3311_v11 = vld [vmem:[%s3119_s8 + $0x1d8] sm:$0xff] }
 0x1e3   : > { %998 = vmatpush.msra.mxu3 %v3300_v8  ;;  %v3315_v12 = vld [vmem:[%s3119_s8 + $0x1a0] sm:$0xff]  ;;  %v3318_v13 = vld [vmem:[%s3119_s8 + $0x1a8] sm:$0xff]  ;;  %v3323_v14 = vld [vmem:[%s3119_s8 + $0x1b8] sm:$0xff] }
 0x1e4   : > { %939 = vmatpush.msra.mxu0 %v3305_v9  ;;  %959 = vmatpush.msra.mxu1 %v3308_v10  ;;  %v3327_v15 = vld [vmem:[%s3119_s8 + $0x180] sm:$0xff]  ;;  %v3330_v16 = vld [vmem:[%s3119_s8 + $0x188] sm:$0xff]  ;;  %v3335_v17 = vld [vmem:[%s3119_s8 + $0x198] sm:$0xff] }
 0x1e5   : > { %999 = vmatpush.msra.mxu3 %v3311_v11  ;;  %v3339_v18 = vld [vmem:[%s3119_s8 + $0x160] sm:$0xff]  ;;  %v3342_v19 = vld [vmem:[%s3119_s8 + $0x168] sm:$0xff]  ;;  %v3347_v20 = vld [vmem:[%s3119_s8 + $0x178] sm:$0xff] }
 0x1e6   : > { %940 = vmatpush.msra.mxu0 %v3315_v12  ;;  %960 = vmatpush.msra.mxu1 %v3318_v13  ;;  %v3351_v21 = vld [vmem:[%s3119_s8 + $0x140] sm:$0xff]  ;;  %v3354_v22 = vld [vmem:[%s3119_s8 + $0x148] sm:$0xff]  ;;  %v3357_v23 = vld [vmem:[%s3119_s8 + $0x1f0] sm:$0xff] }
 0x1e7   : > { %1000 = vmatpush.msra.mxu3 %v3323_v14  ;;  %v3362_v24 = vld [vmem:[%s3119_s8 + $0x158] sm:$0xff]  ;;  %v3365_v25 = vld [vmem:[%s3119_s8 + $0x1d0] sm:$0xff]  ;;  %v3369_v26 = vld [vmem:[%s3119_s8 + $0x120] sm:$0xff]  ;;  %978 = vmatpush.msra.mxu2 %v3357_v23 }
 0x1e8   : > { %941 = vmatpush.msra.mxu0 %v3327_v15  ;;  %961 = vmatpush.msra.mxu1 %v3330_v16  ;;  %v3372_v27 = vld [vmem:[%s3119_s8 + $0x128] sm:$0xff]  ;;  %v3378_v28 = vld [vmem:[%s3119_s8 + $0x138] sm:$0xff]  ;;  %v3381_v29 = vld [vmem:[%s3119_s8 + $0x1b0] sm:$0xff] }
 0x1e9   : > { %1001 = vmatpush.msra.mxu3 %v3335_v17  ;;  %v3385_v30 = vld [vmem:[%s3119_s8 + $0x100] sm:$0xff]  ;;  %v3388_v31 = vld [vmem:[%s3119_s8 + $0x108] sm:$0xff]  ;;  %979 = vmatpush.msra.mxu2 %v3365_v25  ;;  %v3394_v32 = vld [vmem:[%s3119_s8 + $0x118] sm:$0xff] }
 0x1ea   : > { %942 = vmatpush.msra.mxu0 %v3339_v18  ;;  %962 = vmatpush.msra.mxu1 %v3342_v19  ;;  %v3397_v33 = vld [vmem:[%s3119_s8 + $0x190] sm:$0xff]  ;;  %v3401_v34 = vld [vmem:[%s3119_s8 + $0xe0] sm:$0xff]  ;;  %v3404_v35 = vld [vmem:[%s3119_s8 + $0xe8] sm:$0xff] }
 0x1eb   : > { %1002 = vmatpush.msra.mxu3 %v3347_v20  ;;  %980 = vmatpush.msra.mxu2 %v3381_v29  ;;  %v3410_v36 = vld [vmem:[%s3119_s8 + $0xf8] sm:$0xff]  ;;  %v3413_v37 = vld [vmem:[%s3119_s8 + $0x170] sm:$0xff]  ;;  %v3417_v38 = vld [vmem:[%s3119_s8 + $0xc0] sm:$0xff] }
 0x1ec   : > { %943 = vmatpush.msra.mxu0 %v3351_v21  ;;  %963 = vmatpush.msra.mxu1 %v3354_v22  ;;  %v3420_v39 = vld [vmem:[%s3119_s8 + $0xc8] sm:$0xff]  ;;  %v3426_v40 = vld [vmem:[%s3119_s8 + $0xd8] sm:$0xff]  ;;  %v3429_v41 = vld [vmem:[%s3119_s8 + $0x150] sm:$0xff] }
 0x1ed   : > { %1003 = vmatpush.msra.mxu3 %v3362_v24  ;;  %981 = vmatpush.msra.mxu2 %v3397_v33  ;;  %v3433_v42 = vld [vmem:[%s3119_s8 + $0xa0] sm:$0xff]  ;;  %v3436_v43 = vld [vmem:[%s3119_s8 + $0xa8] sm:$0xff]  ;;  %v3442_v44 = vld [vmem:[%s3119_s8 + $0xb8] sm:$0xff] }
 0x1ee   : > { %944 = vmatpush.msra.mxu0 %v3369_v26  ;;  %964 = vmatpush.msra.mxu1 %v3372_v27  ;;  %v3445_v45 = vld [vmem:[%s3119_s8 + $0x130] sm:$0xff]  ;;  %v3449_v46 = vld [vmem:[%s3119_s8 + $0x80] sm:$0xff]  ;;  %v3452_v47 = vld [vmem:[%s3119_s8 + $0x88] sm:$0xff] }
 0x1ef   : > { %1004 = vmatpush.msra.mxu3 %v3378_v28  ;;  %982 = vmatpush.msra.mxu2 %v3413_v37  ;;  %v3458_v48 = vld [vmem:[%s3119_s8 + $0x98] sm:$0xff]  ;;  %v3461_v49 = vld [vmem:[%s3119_s8 + $0x110] sm:$0xff]  ;;  %v3465_v50 = vld [vmem:[%s3119_s8 + $0x60] sm:$0xff] }
 0x1f0   : > { %945 = vmatpush.msra.mxu0 %v3385_v30  ;;  %965 = vmatpush.msra.mxu1 %v3388_v31  ;;  %v3468_v51 = vld [vmem:[%s3119_s8 + $0x68] sm:$0xff]  ;;  %v3474_v52 = vld [vmem:[%s3119_s8 + $0x78] sm:$0xff]  ;;  %v3477_v53 = vld [vmem:[%s3119_s8 + $0xf0] sm:$0xff] }
 0x1f1   : > { %1005 = vmatpush.msra.mxu3 %v3394_v32  ;;  %983 = vmatpush.msra.mxu2 %v3429_v41  ;;  %v3481_v54 = vld [vmem:[%s3119_s8 + $0x40] sm:$0xff]  ;;  %v3484_v55 = vld [vmem:[%s3119_s8 + $0x48] sm:$0xff]  ;;  %v3490_v56 = vld [vmem:[%s3119_s8 + $0x58] sm:$0xff] }
 0x1f2   : > { %946 = vmatpush.msra.mxu0 %v3401_v34  ;;  %966 = vmatpush.msra.mxu1 %v3404_v35  ;;  %v3493_v57 = vld [vmem:[%s3119_s8 + $0xd0] sm:$0xff]  ;;  %v3497_v58 = vld [vmem:[%s3119_s8 + $0x20] sm:$0xff]  ;;  %v3500_v59 = vld [vmem:[%s3119_s8 + $0x28] sm:$0xff] }
 0x1f3   : > { %1006 = vmatpush.msra.mxu3 %v3410_v36  ;;  %984 = vmatpush.msra.mxu2 %v3445_v45  ;;  %v3506_v60 = vld [vmem:[%s3119_s8 + $0x38] sm:$0xff]  ;;  %v3509_v61 = vld [vmem:[%s3119_s8 + $0xb0] sm:$0xff]  ;;  %v3513_v62 = vld [vmem:[%s3119_s8] sm:$0xff] }
 0x1f4   : > { %947 = vmatpush.msra.mxu0 %v3417_v38  ;;  %967 = vmatpush.msra.mxu1 %v3420_v39  ;;  %v3516_v63 = vld [vmem:[%s3119_s8 + $0x8] sm:$0xff]  ;;  %v3522_v0 = vld [vmem:[%s3119_s8 + $0x18] sm:$0xff]  ;;  %v3529_v1 = vld [vmem:[%s3119_s8 + $0x90] sm:$0xff] }
 0x1f5   : > { %1007 = vmatpush.msra.mxu3 %v3426_v40  ;;  %985 = vmatpush.msra.mxu2 %v3461_v49  ;;  %v3533_v3 = vld [vmem:[%s3119_s8 + $0x70] sm:$0xff] }
 0x1f6   : > { %948 = vmatpush.msra.mxu0 %v3433_v42  ;;  %968 = vmatpush.msra.mxu1 %v3436_v43  ;;  %v3538_v4 = vld [vmem:[%s3119_s8 + $0x50] sm:$0xff] }
 0x1f7   : > { %1008 = vmatpush.msra.mxu3 %v3442_v44  ;;  %986 = vmatpush.msra.mxu2 %v3477_v53  ;;  %v3545_v5 = vld [vmem:[%s3119_s8 + $0x30] sm:$0xff] }
 0x1f8   : > { %949 = vmatpush.msra.mxu0 %v3449_v46  ;;  %969 = vmatpush.msra.mxu1 %v3452_v47 }
 0x1f9   : > { %1009 = vmatpush.msra.mxu3 %v3458_v48  ;;  %987 = vmatpush.msra.mxu2 %v3493_v57 }
 0x1fa   : > { %950 = vmatpush.msra.mxu0 %v3465_v50  ;;  %970 = vmatpush.msra.mxu1 %v3468_v51 }
 0x1fb   : > { %1010 = vmatpush.msra.mxu3 %v3474_v52  ;;  %988 = vmatpush.msra.mxu2 %v3509_v61 }
 0x1fc   : > { %951 = vmatpush.msra.mxu0 %v3481_v54  ;;  %971 = vmatpush.msra.mxu1 %v3484_v55 }
 0x1fd   : > { %1011 = vmatpush.msra.mxu3 %v3490_v56  ;;  %989 = vmatpush.msra.mxu2 %v3529_v1 }
 0x1fe   : > { %952 = vmatpush.msra.mxu0 %v3497_v58  ;;  %972 = vmatpush.msra.mxu1 %v3500_v59 }
 0x1ff   : > { %1012 = vmatpush.msra.mxu3 %v3506_v60  ;;  %990 = vmatpush.msra.mxu2 %v3533_v3 }
 0x200   : > { %953 = vmatpush.msra.mxu0 %v3513_v62  ;;  %973 = vmatpush.msra.mxu1 %v3516_v63 }
 0x201   : > { %1013 = vmatpush.msra.mxu3 %v3522_v0  ;;  %954 = vmatmul.f32.vlgmr.msra.gmra.mxu0 %v3005_v2 }
 0x202   : > { %974 = vmatmul.f32.vlgmr.msra.gmra.mxu1 %v3005_v2  ;;  %1014 = vmatmul.f32.vlgmr.msra.gmra.mxu3 %v3005_v2 }
 0x203   : > { %1169 = vmatpush.msrb.mxu0 %v3294_v6  ;;  %1189 = vmatpush.msrb.mxu1 %v3297_v7  ;;  %v3552_v6 = vld [vmem:[%s3119_s8 + $0x10] sm:$0xff] }
 0x204   : > { %1229 = vmatpush.msrb.mxu3 %v3300_v8  ;;  %991 = vmatpush.msra.mxu2 %v3538_v4 }
 0x205   : > { %1170 = vmatpush.msrb.mxu0 %v3305_v9  ;;  %1190 = vmatpush.msrb.mxu1 %v3308_v10 }
 0x206   : > { %1230 = vmatpush.msrb.mxu3 %v3311_v11  ;;  %992 = vmatpush.msra.mxu2 %v3545_v5 }
 0x207   : > { %1171 = vmatpush.msrb.mxu0 %v3315_v12  ;;  %1191 = vmatpush.msrb.mxu1 %v3318_v13 }
 0x208   : > { %1231 = vmatpush.msrb.mxu3 %v3323_v14  ;;  %993 = vmatpush.msra.mxu2 %v3552_v6 }
 0x209   : > { %1172 = vmatpush.msrb.mxu0 %v3327_v15  ;;  %1192 = vmatpush.msrb.mxu1 %v3330_v16 }
 0x20a   : > { %1232 = vmatpush.msrb.mxu3 %v3335_v17  ;;  %994 = vmatmul.f32.vlgmr.msra.gmra.mxu2 %v3005_v2  ;;  %v4263_v2 = vld [vmem:[#allocation11_spill] sm:$0xff] }
 0x20b   : > { %1173 = vmatpush.msrb.mxu0 %v3339_v18  ;;  %1193 = vmatpush.msrb.mxu1 %v3342_v19 }
 0x20c   : > { %1209 = vmatpush.msrb.mxu2 %v3357_v23  ;;  %1233 = vmatpush.msrb.mxu3 %v3347_v20 }
 0x20d   : > { %1174 = vmatpush.msrb.mxu0 %v3351_v21  ;;  %1194 = vmatpush.msrb.mxu1 %v3354_v22 }
 0x20e   : > { %1210 = vmatpush.msrb.mxu2 %v3365_v25  ;;  %1234 = vmatpush.msrb.mxu3 %v3362_v24 }
 0x20f   : > { %1175 = vmatpush.msrb.mxu0 %v3369_v26  ;;  %1195 = vmatpush.msrb.mxu1 %v3372_v27 }
 0x210   : > { %1211 = vmatpush.msrb.mxu2 %v3381_v29  ;;  %1235 = vmatpush.msrb.mxu3 %v3378_v28 }
 0x211   : > { %1176 = vmatpush.msrb.mxu0 %v3385_v30  ;;  %1196 = vmatpush.msrb.mxu1 %v3388_v31 }
 0x212   : > { %1212 = vmatpush.msrb.mxu2 %v3397_v33  ;;  %1236 = vmatpush.msrb.mxu3 %v3394_v32 }
 0x213   : > { %1177 = vmatpush.msrb.mxu0 %v3401_v34  ;;  %1197 = vmatpush.msrb.mxu1 %v3404_v35 }
 0x214   : > { %1213 = vmatpush.msrb.mxu2 %v3413_v37  ;;  %1237 = vmatpush.msrb.mxu3 %v3410_v36 }
 0x215   : > { %1178 = vmatpush.msrb.mxu0 %v3417_v38  ;;  %1198 = vmatpush.msrb.mxu1 %v3420_v39 }
 0x216   : > { %1214 = vmatpush.msrb.mxu2 %v3429_v41  ;;  %1238 = vmatpush.msrb.mxu3 %v3426_v40 }
 0x217   : > { %1179 = vmatpush.msrb.mxu0 %v3433_v42  ;;  %1199 = vmatpush.msrb.mxu1 %v3436_v43 }
 0x218   : > { %1215 = vmatpush.msrb.mxu2 %v3445_v45  ;;  %1239 = vmatpush.msrb.mxu3 %v3442_v44 }
 0x219   : > { %1180 = vmatpush.msrb.mxu0 %v3449_v46  ;;  %1200 = vmatpush.msrb.mxu1 %v3452_v47 }
 0x21a   : > { %1216 = vmatpush.msrb.mxu2 %v3461_v49  ;;  %1240 = vmatpush.msrb.mxu3 %v3458_v48 }
 0x21b   : > { %1181 = vmatpush.msrb.mxu0 %v3465_v50  ;;  %1201 = vmatpush.msrb.mxu1 %v3468_v51 }
 0x21c   : > { %1217 = vmatpush.msrb.mxu2 %v3477_v53  ;;  %1241 = vmatpush.msrb.mxu3 %v3474_v52 }
 0x21d   : > { %1182 = vmatpush.msrb.mxu0 %v3481_v54  ;;  %1202 = vmatpush.msrb.mxu1 %v3484_v55 }
 0x21e   : > { %1218 = vmatpush.msrb.mxu2 %v3493_v57  ;;  %1242 = vmatpush.msrb.mxu3 %v3490_v56 }
 0x21f   : > { %1183 = vmatpush.msrb.mxu0 %v3497_v58  ;;  %1203 = vmatpush.msrb.mxu1 %v3500_v59 }
 0x220   : > { %1219 = vmatpush.msrb.mxu2 %v3509_v61  ;;  %1243 = vmatpush.msrb.mxu3 %v3506_v60 }
 0x221   : > { %1184 = vmatpush.msrb.mxu0 %v3513_v62  ;;  %1204 = vmatpush.msrb.mxu1 %v3516_v63 }
 0x222   : > { %1220 = vmatpush.msrb.mxu2 %v3529_v1  ;;  %1244 = vmatpush.msrb.mxu3 %v3522_v0 }
 0x223   : > { %1401 = vmatpush.msra.mxu0 %v4263_v2  ;;  %1421 = vmatpush.msra.mxu1 %v3297_v7  ;;  %v1022_v7 = vld [vmem:[%s3130_s18] sm:$0xf] }
 0x224   : > { %1221 = vmatpush.msrb.mxu2 %v3533_v3  ;;  %1461 = vmatpush.msra.mxu3 %v3300_v8  ;;  %v870_v8 = vld [vmem:[#allocation2 + $0xb0] sm:$0xff] }
 0x225   : > { %1402 = vmatpush.msra.mxu0 %v3305_v9  ;;  %1422 = vmatpush.msra.mxu1 %v3308_v10  ;;  %v1024_v9 = vperm.slane %v1022_v7, 0  ;;  %v871_v10 = vld [vmem:[#allocation2] sm:$0xff] }
 0x226   : > { %1222 = vmatpush.msrb.mxu2 %v3538_v4  ;;  %1462 = vmatpush.msra.mxu3 %v3311_v11 }
 0x227   : > { %1403 = vmatpush.msra.mxu0 %v3315_v12  ;;  %1423 = vmatpush.msra.mxu1 %v3318_v13  ;;  %v1025_v12 = vperm.slane %v1022_v7, 1 }
 0x228   : > { %1223 = vmatpush.msrb.mxu2 %v3545_v5  ;;  %1463 = vmatpush.msra.mxu3 %v3323_v14 }
 0x229   : > { %1404 = vmatpush.msra.mxu0 %v3327_v15  ;;  %1424 = vmatpush.msra.mxu1 %v3330_v16 }
 0x22a   : > { %1224 = vmatpush.msrb.mxu2 %v3552_v6  ;;  %1464 = vmatpush.msra.mxu3 %v3335_v17 }
 0x22b   : > { %1405 = vmatpush.msra.mxu0 %v3339_v18  ;;  %1425 = vmatpush.msra.mxu1 %v3342_v19  ;;  %v873_v19 = vld [vmem:[#allocation2 + $0x18] sm:$0xff] }
 0x22c   : > { %1441 = vmatpush.msra.mxu2 %v3357_v23  ;;  %1465 = vmatpush.msra.mxu3 %v3347_v20 }
 0x22d   : > { %1406 = vmatpush.msra.mxu0 %v3351_v21  ;;  %1426 = vmatpush.msra.mxu1 %v3354_v22  ;;  %v1027_v21 = vperm.slane %v1022_v7, 3 }
 0x22e   : > { %1442 = vmatpush.msra.mxu2 %v3365_v25  ;;  %1466 = vmatpush.msra.mxu3 %v3362_v24 }
 0x22f   : > { %1407 = vmatpush.msra.mxu0 %v3369_v26  ;;  %1427 = vmatpush.msra.mxu1 %v3372_v27 }
 0x230   : > { %1443 = vmatpush.msra.mxu2 %v3381_v29  ;;  %1467 = vmatpush.msra.mxu3 %v3378_v28  ;;  %v872_v29 = vld [vmem:[#allocation2 + $0xd8] sm:$0xff] }
 0x231   : > { %1408 = vmatpush.msra.mxu0 %v3385_v30  ;;  %1428 = vmatpush.msra.mxu1 %v3388_v31  ;;  %v1026_v30 = vperm.slane %v1022_v7, 2 }
 0x232   : > { %1444 = vmatpush.msra.mxu2 %v3397_v33  ;;  %1468 = vmatpush.msra.mxu3 %v3394_v32 }
 0x233   : > { %1409 = vmatpush.msra.mxu0 %v3401_v34  ;;  %1429 = vmatpush.msra.mxu1 %v3404_v35 }
 0x234   : > { %1445 = vmatpush.msra.mxu2 %v3413_v37  ;;  %1469 = vmatpush.msra.mxu3 %v3410_v36 }
 0x235   : > { %1410 = vmatpush.msra.mxu0 %v3417_v38  ;;  %1430 = vmatpush.msra.mxu1 %v3420_v39 }
 0x236   : > { %1446 = vmatpush.msra.mxu2 %v3429_v41  ;;  %1470 = vmatpush.msra.mxu3 %v3426_v40 }
 0x237   : > { %1411 = vmatpush.msra.mxu0 %v3433_v42  ;;  %1431 = vmatpush.msra.mxu1 %v3436_v43 }
 0x238   : > { %1447 = vmatpush.msra.mxu2 %v3445_v45  ;;  %1471 = vmatpush.msra.mxu3 %v3442_v44 }
 0x239   : > { %1412 = vmatpush.msra.mxu0 %v3449_v46  ;;  %1432 = vmatpush.msra.mxu1 %v3452_v47 }
 0x23a   : > { %1448 = vmatpush.msra.mxu2 %v3461_v49  ;;  %1472 = vmatpush.msra.mxu3 %v3458_v48 }
 0x23b   : > { %1413 = vmatpush.msra.mxu0 %v3465_v50  ;;  %1433 = vmatpush.msra.mxu1 %v3468_v51 }
 0x23c   : > { %1449 = vmatpush.msra.mxu2 %v3477_v53  ;;  %1473 = vmatpush.msra.mxu3 %v3474_v52 }
 0x23d   : > { %1414 = vmatpush.msra.mxu0 %v3481_v54  ;;  %1434 = vmatpush.msra.mxu1 %v3484_v55 }
 0x23e   : > { %1450 = vmatpush.msra.mxu2 %v3493_v57  ;;  %1474 = vmatpush.msra.mxu3 %v3490_v56 }
 0x23f   : > { %1415 = vmatpush.msra.mxu0 %v3497_v58  ;;  %1435 = vmatpush.msra.mxu1 %v3500_v59 }
 0x240   : > { %1451 = vmatpush.msra.mxu2 %v3509_v61  ;;  %1475 = vmatpush.msra.mxu3 %v3506_v60 }
 0x241   : > { %1416 = vmatpush.msra.mxu0 %v3513_v62  ;;  %1436 = vmatpush.msra.mxu1 %v3516_v63 }
 0x242   : > { %1452 = vmatpush.msra.mxu2 %v3529_v1  ;;  %1476 = vmatpush.msra.mxu3 %v3522_v0 }
 0x244   : > { %1453 = vmatpush.msra.mxu2 %v3533_v3 }
 0x246   : > { %1454 = vmatpush.msra.mxu2 %v3538_v4 }
 0x248   : > { %1455 = vmatpush.msra.mxu2 %v3545_v5 }
 0x24a   : > { %1456 = vmatpush.msra.mxu2 %v3552_v6 }
 0x27e   : > { %v955_v11 = vpop.f32.mrf.mxu0 }
 0x27f   : > { %v1018_v13 = vadd.f32 %v955_v11, %v870_v8  ;;  %v975_v14 = vpop.f32.mrf.mxu1  ;;  %v1102_v11 = vld [vmem:[#allocation2 + $0x68] sm:$0xff] }
 0x280   : > { %v1019_v15 = vadd.f32 %v975_v14, %v871_v10  ;;  %v1101_v10 = vld [vmem:[#allocation2 + $0x50] sm:$0xff] }
 0x281   : > { %v1032_v16 = vadd.f32 %v1024_v9, %v1018_v13  ;;  %v1253_v9 = vld [vmem:[%s3130_s18] sm:$0xf] }
 0x282   : > { %v1033_v17 = vadd.f32 %v1025_v12, %v1019_v15  ;;  %v1255_v12 = vperm.slane %v1253_v9, 0  ;;  %v1256_v13 = vperm.slane %v1253_v9, 1 }
 0x283   : > { %v2687_v18 = vmul.f32 -1.442695, %v1032_v16 }
 0x284   : > { %v2688_v20 = vmul.f32 -1.442695, %v1033_v17 }
 0x285   : > { %2775 = vpow2.f32 %v2687_v18  ;;  %v1015_v22 = vpop.f32.mrf.mxu3 }
 0x286   : > { %2777 = vpow2.f32 %v2688_v20  ;;  %v1021_v23 = vadd.f32 %v1015_v22, %v873_v19  ;;  %v1104_v22 = vld [vmem:[#allocation2 + $0x48] sm:$0xff] }
 0x288   : > { %v1035_v6 = vadd.f32 %v1027_v21, %v1021_v23  ;;  %v1258_v23 = vperm.slane %v1253_v9, 3 }
 0x28a   : > { %v2689_v24 = vmul.f32 -1.442695, %v1035_v6 }
 0x28b   : > { %v2776_v25 = vpop.eup %2775 }
 0x28c   : > { %v2778_v26 = vpop.eup %2777  ;;  %v1039_v27 = vadd.f32 1.0, %v2776_v25  ;;  %2779 = vpow2.f32 %v2689_v24 }
 0x28d   : > { %v1058_v28 = vadd.f32 1.0, %v2778_v26  ;;  %v995_v31 = vpop.f32.mrf.mxu2 }
 0x28e   : > { %2781 = vrcp.f32 %v1039_v27  ;;  %v1020_v32 = vadd.f32 %v995_v31, %v872_v29  ;;  %v1051_v42 = vand.u32 2147483648, %v1039_v27  ;;  %v1049_v45 = vand.u32 2147483647, %v1039_v27  ;;  %v1103_v31 = vld [vmem:[#allocation2 + $0x30] sm:$0xff] }
 0x28f   : > { %2783 = vrcp.f32 %v1058_v28  ;;  %v1070_v43 = vand.u32 2147483648, %v1058_v28  ;;  %v1068_v47 = vand.u32 2147483647, %v1058_v28  ;;  %vm1045_vm2 = vweird.f32 %v1039_v27 }
 0x290   : > { %v1034_v34 = vadd.f32 %v1026_v30, %v1020_v32  ;;  %vm1064_vm3 = vweird.f32 %v1058_v28  ;;  %v1052_v52 = vor.u32 1.1754944e-38, %v1051_v42  ;;  %vm1050_vm5 = vcmp.eq.f32.partialorder %v1049_v45, 8.507059e+37 }
 0x291   : > { %v1071_v54 = vor.u32 1.1754944e-38, %v1070_v43  ;;  %vm1069_vm7 = vcmp.eq.f32.partialorder %v1068_v47, 8.507059e+37 }
 0x292   : > { %v2780_v33 = vpop.eup %2779 }
 0x293   : > { %v1078_v35 = vadd.f32 1.0, %v2780_v33 }
 0x294   : > { %v2782_v36 = vpop.eup %2781 }
 0x295   : > { %v2784_v37 = vpop.eup %2783  ;;  %v1041_v38 = vmul.f32 %v2782_v36, %v1039_v27  ;;  %2785 = vrcp.f32 %v1078_v35  ;;  %vm1046_vm0 = vweird.f32 %v2782_v36  ;;  %v1090_v1 = vand.u32 2147483648, %v1078_v35 }
 0x296   : > { %v1060_v39 = vmul.f32 %v2784_v37, %v1058_v28  ;;  %2787 = vtanh.f32 %v1034_v34  ;;  %vm1065_vm1 = vweird.f32 %v2784_v37  ;;  %vm1047_vm4 = vmor %vm1045_vm2, %vm1046_vm0  ;;  %vm1084_vm9 = vweird.f32 %v1078_v35 }
 0x297   : > { %v1042_v40 = vsub.f32 1.0, %v1041_v38  ;;  %vm1066_vm6 = vmor %vm1064_vm3, %vm1065_vm1  ;;  %v1088_v3 = vand.u32 2147483647, %v1078_v35  ;;  %v1091_v5 = vor.u32 1.1754944e-38, %v1090_v1  ;;  %v1257_v34 = vperm.slane %v1253_v9, 2 }
 0x298   : > { %v1061_v41 = vsub.f32 1.0, %v1060_v39 }
 0x299   : > { %v1043_v44 = vmul.f32 %v2782_v36, %v1042_v40  ;;  %vm1089_vm11 = vcmp.eq.f32.partialorder %v1088_v3, 8.507059e+37 }
 0x29a   : > { %v1062_v46 = vmul.f32 %v2784_v37, %v1061_v41 }
 0x29b   : > { %v2786_v48 = vpop.eup %2785  ;;  %v1044_v49 = vadd.f32 %v2782_v36, %v1043_v44 }
 0x29c   : > { %v2788_v50 = vpop.eup %2787  ;;  %v1080_v51 = vmul.f32 %v2786_v48, %v1078_v35  ;;  %v1063_v53 = vadd.f32 %v2784_v37, %v1062_v46  ;;  %vm1085_vm8 = vweird.f32 %v2786_v48 }
 0x29d   : > { %v1048_v55 = vsel %vm1047_vm4, %v2782_v36, %v1044_v49  ;;  %vm1086_vm10 = vmor %vm1084_vm9, %vm1085_vm8 }
 0x29e   : > { %v1081_v56 = vsub.f32 1.0, %v1080_v51  ;;  %v1053_v57 = vsel %vm1050_vm5, %v1052_v52, %v1048_v55  ;;  %v1067_v58 = vsel %vm1066_vm6, %v2784_v37, %v1063_v53 }
 0x29f   : > { %v1072_v59 = vsel %vm1069_vm7, %v1071_v54, %v1067_v58  ;;  %v1095_v60 = vmul.f32 %v2788_v50, %v1053_v57 }
 0x2a0   : > { %v1082_v61 = vmul.f32 %v2786_v48, %v1081_v56  ;;  %v1094_v62 = vmul.f32 0.0, %v1072_v59 }
 0x2a2   : > { %v3678_v63 = vadd.f32 %v1095_v60, %v1094_v62  ;;  %v1083_v0 = vadd.f32 %v2786_v48, %v1082_v61 }
 0x2a4   : > { %2789 = vtanh.f32 %v3678_v63  ;;  %v1087_v4 = vsel %vm1086_vm10, %v2786_v48, %v1083_v0 }
 0x2a5   : > { %v1092_v7 = vsel %vm1089_vm11, %v1091_v5, %v1087_v4 }
 0x2aa   : > { %v2790_v2 = vpop.eup %2789 }
 0x2ab   : > { %v1098_v8 = vmul.f32 %v2790_v2, %v1092_v7 }
 0x2ad   : > { %1099 = vst [vmem:[#allocation3] sm:$0xff] %v1098_v8  ;;  %1185 = vmatmul.f32.vlgmr.msrb.gmra.mxu0 %v1098_v8  ;;  %1205 = vmatmul.f32.vlgmr.msrb.gmra.mxu1 %v1098_v8 }
 0x2ae   : > { %1225 = vmatmul.f32.vlgmr.msrb.gmra.mxu2 %v1098_v8  ;;  %1245 = vmatmul.f32.vlgmr.msrb.gmra.mxu3 %v1098_v8 }
 0x32a   : > { %v1186_v14 = vpop.f32.mrf.mxu0  ;;  %v1206_v15 = vpop.f32.mrf.mxu1 }
 0x32b   : > { %v1249_v16 = vadd.f32 %v1186_v14, %v1101_v10  ;;  %v1250_v17 = vadd.f32 %v1206_v15, %v1102_v11  ;;  %v3687_v11 = vld [vmem:[%s3119_s8 + $0x1e0] sm:$0xff]  ;;  %v3698_v14 = vld [vmem:[%s3119_s8 + $0x1f8] sm:$0xff] }
 0x32c   : > { %1633 = vmatpush.msrb.mxu0 %v3687_v11  ;;  %1693 = vmatpush.msrb.mxu3 %v3698_v14  ;;  %v3703_v15 = vld [vmem:[%s3119_s8 + $0x1c0] sm:$0xff] }
 0x32d   : > { %v1263_v18 = vadd.f32 %v1255_v12, %v1249_v16  ;;  %v1264_v19 = vadd.f32 %v1256_v13, %v1250_v17  ;;  %v3690_v12 = vld [vmem:[%s3119_s8 + $0x1e8] sm:$0xff]  ;;  %v3693_v13 = vld [vmem:[%s3119_s8 + $0x1f0] sm:$0xff] }
 0x32e   : > { %1653 = vmatpush.msrb.mxu1 %v3690_v12  ;;  %1673 = vmatpush.msrb.mxu2 %v3693_v13  ;;  %v3706_v16 = vld [vmem:[%s3119_s8 + $0x1c8] sm:$0xff]  ;;  %v3709_v17 = vld [vmem:[%s3119_s8 + $0x1d0] sm:$0xff] }
 0x32f   : > { %v2690_v20 = vmul.f32 -1.442695, %v1263_v18  ;;  %v2691_v21 = vmul.f32 -1.442695, %v1264_v19  ;;  %4264 = vst [vmem:[#allocation11_spill] sm:$0xff] %v3706_v16  ;;  %1634 = vmatpush.msrb.mxu0 %v3703_v15  ;;  %v3714_v18 = vld [vmem:[%s3119_s8 + $0x1d8] sm:$0xff] }
 0x330   : > { %1654 = vmatpush.msrb.mxu1 %v3706_v16  ;;  %1674 = vmatpush.msrb.mxu2 %v3709_v17  ;;  %v3719_v19 = vld [vmem:[%s3119_s8 + $0x1a0] sm:$0xff] }
 0x331   : > { %2791 = vpow2.f32 %v2690_v20  ;;  %v1246_v6 = vpop.f32.mrf.mxu3  ;;  %v1226_v32 = vpop.f32.mrf.mxu2  ;;  %1694 = vmatpush.msrb.mxu3 %v3714_v18  ;;  %v3722_v20 = vld [vmem:[%s3119_s8 + $0x1a8] sm:$0xff]  ;;  %1635 = vmatpush.msrb.mxu0 %v3719_v19 }
 0x332   : > { %2793 = vpow2.f32 %v2691_v21  ;;  %v1252_v24 = vadd.f32 %v1246_v6, %v1104_v22  ;;  %v1251_v33 = vadd.f32 %v1226_v32, %v1103_v31  ;;  %v3725_v21 = vld [vmem:[%s3119_s8 + $0x1b0] sm:$0xff]  ;;  %1655 = vmatpush.msrb.mxu1 %v3722_v20  ;;  %v3730_v22 = vld [vmem:[%s3119_s8 + $0x1b8] sm:$0xff]  ;;  %v3738_v6 = vld [vmem:[%s3119_s8 + $0x188] sm:$0xff] }
 0x333   : > { %4265 = vst [vmem:[#allocation12_spill] sm:$0xff] %v3730_v22  ;;  %1675 = vmatpush.msrb.mxu2 %v3725_v21  ;;  %1695 = vmatpush.msrb.mxu3 %v3730_v22  ;;  %v3770_v31 = vld [vmem:[%s3119_s8 + $0x148] sm:$0xff]  ;;  %v3773_v32 = vld [vmem:[%s3119_s8 + $0x150] sm:$0xff] }
 0x334   : > { %v1266_v25 = vadd.f32 %v1258_v23, %v1252_v24  ;;  %v1265_v38 = vadd.f32 %v1257_v34, %v1251_v33  ;;  %v3735_v23 = vld [vmem:[%s3119_s8 + $0x180] sm:$0xff]  ;;  %4267 = vst [vmem:[#allocation14_spill] sm:$0xff] %v3738_v6  ;;  %v3741_v24 = vld [vmem:[%s3119_s8 + $0x190] sm:$0xff]  ;;  %1656 = vmatpush.msrb.mxu1 %v3738_v6  ;;  %v3776_v33 = vld [vmem:[%s3130_s18] sm:$0xf] }
 0x335   : > { %4266 = vst [vmem:[#allocation13_spill] sm:$0xff] %v3735_v23  ;;  %1636 = vmatpush.msrb.mxu0 %v3735_v23  ;;  %1676 = vmatpush.msrb.mxu2 %v3741_v24  ;;  %v3781_v34 = vld [vmem:[%s3119_s8 + $0x158] sm:$0xff] }
 0x336   : > { %v2692_v26 = vmul.f32 -1.442695, %v1266_v25  ;;  %4268 = vst [vmem:[#allocation15_spill] sm:$0xff] %v3741_v24  ;;  %v3746_v25 = vld [vmem:[%s3119_s8 + $0x198] sm:$0xff] }
 0x337   : > { %v2792_v27 = vpop.eup %2791  ;;  %1696 = vmatpush.msrb.mxu3 %v3746_v25  ;;  %4270 = vst [vmem:[#allocation17_spill] sm:$0xff] %v3773_v32 }
 0x338   : > { %v2794_v28 = vpop.eup %2793  ;;  %v1270_v29 = vadd.f32 1.0, %v2792_v27  ;;  %2795 = vpow2.f32 %v2692_v26  ;;  %v3751_v26 = vld [vmem:[%s3119_s8 + $0x160] sm:$0xff]  ;;  %v3754_v27 = vld [vmem:[%s3119_s8 + $0x168] sm:$0xff] }
 0x339   : > { %v1289_v30 = vadd.f32 1.0, %v2794_v28  ;;  %v3757_v28 = vld [vmem:[%s3119_s8 + $0x170] sm:$0xff]  ;;  %1637 = vmatpush.msrb.mxu0 %v3751_v26  ;;  %1657 = vmatpush.msrb.mxu1 %v3754_v27 }
 0x33a   : > { %2797 = vrcp.f32 %v1270_v29  ;;  %v1282_v44 = vand.u32 2147483648, %v1270_v29  ;;  %v1280_v47 = vand.u32 2147483647, %v1270_v29  ;;  %vm1276_vm14 = vweird.f32 %v1270_v29  ;;  %1677 = vmatpush.msrb.mxu2 %v3757_v28 }
 0x33b   : > { %2799 = vrcp.f32 %v1289_v30  ;;  %v1301_v45 = vand.u32 2147483648, %v1289_v30  ;;  %v1299_v49 = vand.u32 2147483647, %v1289_v30  ;;  %vm1295_vm15 = vweird.f32 %v1289_v30  ;;  %1658 = vmatpush.msrb.mxu1 %v3770_v31 }
 0x33c   : > { %v1283_v52 = vor.u32 1.1754944e-38, %v1282_v44  ;;  %vm1281_vm2 = vcmp.eq.f32.partialorder %v1280_v47, 8.507059e+37  ;;  %1678 = vmatpush.msrb.mxu2 %v3773_v32  ;;  %v1487_v44 = vperm.slane %v3776_v33, 0 }
 0x33d   : > { %v1302_v55 = vor.u32 1.1754944e-38, %v1301_v45  ;;  %vm1300_vm3 = vcmp.eq.f32.partialorder %v1299_v49, 8.507059e+37  ;;  %v1488_v45 = vperm.slane %v3776_v33, 1  ;;  %v3820_v49 = vld [vmem:[%s3119_s8 + $0xe0] sm:$0xff] }
 0x33e   : > { %v2796_v35 = vpop.eup %2795 }
 0x33f   : > { %v1309_v36 = vadd.f32 1.0, %v2796_v35  ;;  %v3786_v35 = vld [vmem:[%s3119_s8 + $0x120] sm:$0xff] }
 0x340   : > { %v2798_v37 = vpop.eup %2797 }
 0x341   : > { %v2800_v39 = vpop.eup %2799  ;;  %v1272_v40 = vmul.f32 %v2798_v37, %v1270_v29  ;;  %2801 = vrcp.f32 %v1309_v36  ;;  %vm1277_vm12 = vweird.f32 %v2798_v37  ;;  %v1321_v5 = vand.u32 2147483648, %v1309_v36  ;;  %v3762_v29 = vld [vmem:[%s3119_s8 + $0x178] sm:$0xff] }
 0x342   : > { %v1291_v41 = vmul.f32 %v2800_v39, %v1289_v30  ;;  %2803 = vtanh.f32 %v1265_v38  ;;  %vm1296_vm13 = vweird.f32 %v2800_v39  ;;  %vm1278_vm0 = vmor %vm1276_vm14, %vm1277_vm12  ;;  %vm1315_vm5 = vweird.f32 %v1309_v36  ;;  %4269 = vst [vmem:[#allocation16_spill] sm:$0xff] %v3762_v29  ;;  %1697 = vmatpush.msrb.mxu3 %v3762_v29  ;;  %v3767_v30 = vld [vmem:[%s3119_s8 + $0x140] sm:$0xff]  ;;  %v1333_v38 = vld [vmem:[#allocation2 + $0x80] sm:$0xff] }
 0x343   : > { %v1273_v42 = vsub.f32 1.0, %v1272_v40  ;;  %vm1297_vm1 = vmor %vm1295_vm15, %vm1296_vm13  ;;  %v1319_v2 = vand.u32 2147483647, %v1309_v36  ;;  %v1322_v8 = vor.u32 1.1754944e-38, %v1321_v5  ;;  %1638 = vmatpush.msrb.mxu0 %v3767_v30  ;;  %v3797_v40 = vld [vmem:[%s3119_s8 + $0x138] sm:$0xff]  ;;  %v1336_v5 = vld [vmem:[#allocation2 + $0x58] sm:$0xff] }
 0x344   : > { %v1292_v43 = vsub.f32 1.0, %v1291_v41  ;;  %1698 = vmatpush.msrb.mxu3 %v3781_v34  ;;  %4273 = vst [vmem:[#allocation20_spill] sm:$0xff] %v3797_v40  ;;  %v3802_v41 = vld [vmem:[%s3119_s8 + $0x100] sm:$0xff] }
 0x345   : > { %v1274_v46 = vmul.f32 %v2798_v37, %v1273_v42  ;;  %vm1320_vm7 = vcmp.eq.f32.partialorder %v1319_v2, 8.507059e+37  ;;  %1639 = vmatpush.msrb.mxu0 %v3786_v35  ;;  %v3805_v42 = vld [vmem:[%s3119_s8 + $0x108] sm:$0xff]  ;;  %v3863_v2 = vld [vmem:[%s3119_s8 + $0xb8] sm:$0xff] }
 0x346   : > { %v1293_v48 = vmul.f32 %v2800_v39, %v1292_v43  ;;  %1699 = vmatpush.msrb.mxu3 %v3797_v40  ;;  %v3808_v43 = vld [vmem:[%s3119_s8 + $0x110] sm:$0xff] }
 0x347   : > { %v2802_v50 = vpop.eup %2801  ;;  %v1275_v51 = vadd.f32 %v2798_v37, %v1274_v46  ;;  %1640 = vmatpush.msrb.mxu0 %v3802_v41  ;;  %v3815_v46 = vld [vmem:[%s3119_s8 + $0x118] sm:$0xff] }
 0x348   : > { %v1294_v53 = vadd.f32 %v2800_v39, %v1293_v48  ;;  %v1311_v54 = vmul.f32 %v2802_v50, %v1309_v36  ;;  %v2804_v57 = vpop.eup %2803  ;;  %vm1316_vm4 = vweird.f32 %v2802_v50  ;;  %v3789_v36 = vld [vmem:[%s3119_s8 + $0x128] sm:$0xff]  ;;  %1700 = vmatpush.msrb.mxu3 %v3815_v46 }
 0x349   : > { %v1279_v56 = vsel %vm1278_vm0, %v2798_v37, %v1275_v51  ;;  %vm1317_vm6 = vmor %vm1315_vm5, %vm1316_vm4  ;;  %4271 = vst [vmem:[#allocation18_spill] sm:$0xff] %v3789_v36  ;;  %v3792_v37 = vld [vmem:[%s3119_s8 + $0x130] sm:$0xff]  ;;  %1659 = vmatpush.msrb.mxu1 %v3789_v36  ;;  %1641 = vmatpush.msrb.mxu0 %v3820_v49 }
 0x34a   : > { %v1284_v58 = vsel %vm1281_vm2, %v1283_v52, %v1279_v56  ;;  %v1298_v59 = vsel %vm1297_vm1, %v2800_v39, %v1294_v53  ;;  %v1312_v60 = vsub.f32 1.0, %v1311_v54  ;;  %4272 = vst [vmem:[#allocation19_spill] sm:$0xff] %v3792_v37  ;;  %v1334_v39 = vld [vmem:[#allocation2 + $0x88] sm:$0xff]  ;;  %1679 = vmatpush.msrb.mxu2 %v3792_v37  ;;  %v3831_v54 = vld [vmem:[%s3119_s8 + $0xf8] sm:$0xff]  ;;  %v3839_v56 = vld [vmem:[%s3119_s8 + $0xc8] sm:$0xff] }
 0x34b   : > { %v1303_v61 = vsel %vm1300_vm3, %v1302_v55, %v1298_v59  ;;  %v1326_v62 = vmul.f32 %v2804_v57, %v1284_v58  ;;  %1660 = vmatpush.msrb.mxu1 %v3805_v42  ;;  %v3826_v51 = vld [vmem:[%s3119_s8 + $0xf0] sm:$0xff]  ;;  %1701 = vmatpush.msrb.mxu3 %v3831_v54  ;;  %v3836_v55 = vld [vmem:[%s3119_s8 + $0xc0] sm:$0xff] }
 0x34c   : > { %v1325_v0 = vmul.f32 %v1303_v61, %v3678_v63  ;;  %v1313_v1 = vmul.f32 %v2802_v50, %v1312_v60  ;;  %1680 = vmatpush.msrb.mxu2 %v3808_v43  ;;  %v3842_v57 = vld [vmem:[%s3119_s8 + $0xd0] sm:$0xff]  ;;  %1642 = vmatpush.msrb.mxu0 %v3836_v55  ;;  %v3847_v60 = vld [vmem:[%s3119_s8 + $0xd8] sm:$0xff]  ;;  %v3852_v61 = vld [vmem:[%s3119_s8 + $0xa0] sm:$0xff] }
 0x34d   : > { %1702 = vmatpush.msrb.mxu3 %v3847_v60 }
 0x34e   : > { %v3683_v3 = vadd.f32 %v1326_v62, %v1325_v0  ;;  %v1314_v4 = vadd.f32 %v2802_v50, %v1313_v1  ;;  %1681 = vmatpush.msrb.mxu2 %v3826_v51  ;;  %v3855_v62 = vld [vmem:[%s3119_s8 + $0xa8] sm:$0xff]  ;;  %v3858_v0 = vld [vmem:[%s3119_s8 + $0xb0] sm:$0xff]  ;;  %1643 = vmatpush.msrb.mxu0 %v3852_v61 }
 0x34f   : > { %1703 = vmatpush.msrb.mxu3 %v3863_v2 }
 0x350   : > { %2805 = vtanh.f32 %v3683_v3  ;;  %v1318_v7 = vsel %vm1317_vm6, %v2802_v50, %v1314_v4  ;;  %v3823_v50 = vld [vmem:[%s3119_s8 + $0xe8] sm:$0xff]  ;;  %1682 = vmatpush.msrb.mxu2 %v3842_v57 }
 0x351   : > { %v1323_v63 = vsel %vm1320_vm7, %v1322_v8, %v1318_v7  ;;  %1661 = vmatpush.msrb.mxu1 %v3823_v50  ;;  %v1490_v7 = vperm.slane %v3776_v33, 3  ;;  %v3869_v8 = vld [vmem:[%s3119_s8 + $0x80] sm:$0xff] }
 0x352   : > { %1683 = vmatpush.msrb.mxu2 %v3858_v0  ;;  %1644 = vmatpush.msrb.mxu0 %v3869_v8 }
 0x353   : > { %1662 = vmatpush.msrb.mxu1 %v3839_v56 }
 0x355   : > { %1663 = vmatpush.msrb.mxu1 %v3855_v62 }
 0x356   : > { %v2806_v9 = vpop.eup %2805 }
 0x357   : > { %v1329_v10 = vmul.f32 %v2806_v9, %v1323_v63  ;;  %v3872_v9 = vld [vmem:[%s3119_s8 + $0x88] sm:$0xff]  ;;  %v3875_v63 = vld [vmem:[%s3119_s8 + $0x90] sm:$0xff] }
 0x358   : > { %1664 = vmatpush.msrb.mxu1 %v3872_v9  ;;  %1684 = vmatpush.msrb.mxu2 %v3875_v63 }
 0x359   : > { %1331 = vst [vmem:[#allocation3 + $0x10] sm:$0xff] %v1329_v10  ;;  %1417 = vmatmul.f32.vlgmr.msra.gmra.mxu0 %v1329_v10  ;;  %1437 = vmatmul.f32.vlgmr.msra.gmra.mxu1 %v1329_v10 }
 0x35a   : > { %1457 = vmatmul.f32.vlgmr.msra.gmra.mxu2 %v1329_v10  ;;  %1477 = vmatmul.f32.vlgmr.msra.gmra.mxu3 %v1329_v10 }
 0x3d6   : > { %v1418_v47 = vpop.f32.mrf.mxu0  ;;  %v1438_v48 = vpop.f32.mrf.mxu1 }
 0x3d7   : > { %v1481_v52 = vadd.f32 %v1418_v47, %v1333_v38  ;;  %v1482_v53 = vadd.f32 %v1438_v48, %v1334_v39  ;;  %v3880_v38 = vld [vmem:[%s3119_s8 + $0x98] sm:$0xff]  ;;  %v3883_v39 = vld [vmem:[%s3119_s8 + $0x60] sm:$0xff]  ;;  %v3891_v47 = vld [vmem:[%s3119_s8 + $0x70] sm:$0xff] }
 0x3d8   : > { %4274 = vst [vmem:[#allocation21_spill] sm:$0xff] %v3880_v38  ;;  %1704 = vmatpush.msrb.mxu3 %v3880_v38  ;;  %v3894_v48 = vld [vmem:[%s3119_s8 + $0x78] sm:$0xff]  ;;  %1645 = vmatpush.msrb.mxu0 %v3883_v39 }
 0x3d9   : > { %v1495_v58 = vadd.f32 %v1487_v44, %v1481_v52  ;;  %v1496_v59 = vadd.f32 %v1488_v45, %v1482_v53  ;;  %4275 = vst [vmem:[#allocation22_spill] sm:$0xff] %v3883_v39  ;;  %v3886_v44 = vld [vmem:[%s3119_s8 + $0x68] sm:$0xff]  ;;  %v3897_v52 = vld [vmem:[%s3119_s8 + $0x40] sm:$0xff]  ;;  %1685 = vmatpush.msrb.mxu2 %v3891_v47 }
 0x3da   : > { %4276 = vst [vmem:[#allocation23_spill] sm:$0xff] %v3886_v44  ;;  %1665 = vmatpush.msrb.mxu1 %v3886_v44  ;;  %v3902_v53 = vld [vmem:[%s3119_s8 + $0x48] sm:$0xff]  ;;  %1705 = vmatpush.msrb.mxu3 %v3894_v48  ;;  %v3924_v44 = vld [vmem:[%s3119_s8 + $0x38] sm:$0xff] }
 0x3db   : > { %v2693_v1 = vmul.f32 -1.442695, %v1495_v58  ;;  %v2694_v4 = vmul.f32 -1.442695, %v1496_v59  ;;  %4277 = vst [vmem:[#allocation24_spill] sm:$0xff] %v3891_v47  ;;  %v3905_v58 = vld [vmem:[%s3119_s8 + $0x50] sm:$0xff]  ;;  %1646 = vmatpush.msrb.mxu0 %v3897_v52 }
 0x3dc   : > { %4278 = vst [vmem:[#allocation25_spill] sm:$0xff] %v3894_v48  ;;  %v3908_v59 = vld [vmem:[%s3119_s8 + $0x58] sm:$0xff]  ;;  %1666 = vmatpush.msrb.mxu1 %v3902_v53  ;;  %1686 = vmatpush.msrb.mxu2 %v3905_v58 }
 0x3dd   : > { %2807 = vpow2.f32 %v2693_v1  ;;  %v1478_v10 = vpop.f32.mrf.mxu3  ;;  %4279 = vst [vmem:[#allocation26_spill] sm:$0xff] %v3897_v52  ;;  %1706 = vmatpush.msrb.mxu3 %v3908_v59  ;;  %v3937_v52 = vld [vmem:[%s3119_s8 + $0x10] sm:$0xff] }
 0x3de   : > { %2809 = vpow2.f32 %v2694_v4  ;;  %v1484_v45 = vadd.f32 %v1478_v10, %v1336_v5  ;;  %4280 = vst [vmem:[#allocation27_spill] sm:$0xff] %v3902_v53  ;;  %v3913_v4 = vld [vmem:[%s3119_s8 + $0x20] sm:$0xff]  ;;  %v3916_v5 = vld [vmem:[%s3119_s8 + $0x28] sm:$0xff]  ;;  %v3921_v10 = vld [vmem:[%s3119_s8 + $0x30] sm:$0xff] }
 0x3df   : > { %4281 = vst [vmem:[#allocation28_spill] sm:$0xff] %v3905_v58  ;;  %1647 = vmatpush.msrb.mxu0 %v3913_v4  ;;  %1667 = vmatpush.msrb.mxu1 %v3916_v5  ;;  %v3940_v53 = vld [vmem:[%s3119_s8 + $0x18] sm:$0xff]  ;;  %v1458_v58 = vpop.f32.mrf.mxu2 }
 0x3e0   : > { %4282 = vst [vmem:[#allocation29_spill] sm:$0xff] %v3908_v59  ;;  %v1498_v1 = vadd.f32 %v1490_v7, %v1484_v45  ;;  %v3929_v7 = vld [vmem:[%s3119_s8] sm:$0xff]  ;;  %v3932_v45 = vld [vmem:[%s3119_s8 + $0x8] sm:$0xff]  ;;  %1687 = vmatpush.msrb.mxu2 %v3921_v10  ;;  %1707 = vmatpush.msrb.mxu3 %v3924_v44  ;;  %v1335_v59 = vld [vmem:[#allocation2 + $0x8] sm:$0xff] }
 0x3e1   : > { %4283 = vst [vmem:[#allocation30_spill] sm:$0xff] %v3940_v53  ;;  %1648 = vmatpush.msrb.mxu0 %v3929_v7  ;;  %1668 = vmatpush.msrb.mxu1 %v3932_v45 }
 0x3e2   : > { %v2695_v39 = vmul.f32 -1.442695, %v1498_v1  ;;  %1688 = vmatpush.msrb.mxu2 %v3937_v52  ;;  %1708 = vmatpush.msrb.mxu3 %v3940_v53 }
 0x3e3   : > { %v2808_v48 = vpop.eup %2807  ;;  %1865 = vmatpush.msra.mxu0 %v3687_v11  ;;  %1885 = vmatpush.msra.mxu1 %v3690_v12 }
 0x3e4   : > { %v2810_v47 = vpop.eup %2809  ;;  %v3942_v38 = vadd.f32 1.0, %v2808_v48  ;;  %2811 = vpow2.f32 %v2695_v39  ;;  %v1483_v39 = vadd.f32 %v1458_v58, %v1335_v59  ;;  %1905 = vmatpush.msra.mxu2 %v3693_v13  ;;  %1925 = vmatpush.msra.mxu3 %v3698_v14 }
 0x3e5   : > { %v3946_v1 = vadd.f32 1.0, %v2810_v47  ;;  %v1489_v47 = vperm.slane %v3776_v33, 2  ;;  %1866 = vmatpush.msra.mxu0 %v3703_v15  ;;  %1886 = vmatpush.msra.mxu1 %v3706_v16 }
 0x3e6   : > { %2813 = vrcp.f32 %v3942_v38  ;;  %1906 = vmatpush.msra.mxu2 %v3709_v17  ;;  %1926 = vmatpush.msra.mxu3 %v3714_v18  ;;  %vm1508_vm10 = vweird.f32 %v3942_v38 }
 0x3e7   : > { %2815 = vrcp.f32 %v3946_v1  ;;  %1867 = vmatpush.msra.mxu0 %v3719_v19  ;;  %1887 = vmatpush.msra.mxu1 %v3722_v20  ;;  %v1497_v58 = vadd.f32 %v1489_v47, %v1483_v39  ;;  %vm1527_vm11 = vweird.f32 %v3946_v1 }
 0x3e8   : > { %1907 = vmatpush.msra.mxu2 %v3725_v21  ;;  %1927 = vmatpush.msra.mxu3 %v3730_v22  ;;  %v1514_v22 = vand.u32 2147483648, %v3942_v38 }
 0x3e9   : > { %1868 = vmatpush.msra.mxu0 %v3735_v23  ;;  %1888 = vmatpush.msra.mxu1 %v3738_v6  ;;  %v1533_v6 = vand.u32 2147483648, %v3946_v1 }
 0x3ea   : > { %v2812_v48 = vpop.eup %2811  ;;  %1908 = vmatpush.msra.mxu2 %v3741_v24  ;;  %1928 = vmatpush.msra.mxu3 %v3746_v25  ;;  %v1512_v24 = vand.u32 2147483647, %v3942_v38 }
 0x3eb   : > { %v3963_v53 = vadd.f32 1.0, %v2812_v48  ;;  %1869 = vmatpush.msra.mxu0 %v3751_v26  ;;  %1889 = vmatpush.msra.mxu1 %v3754_v27 }
 0x3ec   : > { %v2814_v33 = vpop.eup %2813  ;;  %1909 = vmatpush.msra.mxu2 %v3757_v28  ;;  %1929 = vmatpush.msra.mxu3 %v3762_v29  ;;  %vm1513_vm14 = vcmp.eq.f32.partialorder %v1512_v24, 8.507059e+37 }
 0x3ed   : > { %v2816_v59 = vpop.eup %2815  ;;  %v1504_v16 = vmul.f32 %v2814_v33, %v3942_v38  ;;  %2817 = vrcp.f32 %v3963_v53  ;;  %vm1509_vm8 = vweird.f32 %v2814_v33  ;;  %1870 = vmatpush.msra.mxu0 %v3767_v30  ;;  %1890 = vmatpush.msra.mxu1 %v3770_v31  ;;  %vm1547_vm1 = vweird.f32 %v3963_v53 }
 0x3ee   : > { %v1523_v48 = vmul.f32 %v2816_v59, %v3946_v1  ;;  %2819 = vtanh.f32 %v1497_v58  ;;  %vm1528_vm9 = vweird.f32 %v2816_v59  ;;  %1910 = vmatpush.msra.mxu2 %v3773_v32  ;;  %1930 = vmatpush.msra.mxu3 %v3781_v34  ;;  %vm1510_vm12 = vmor %vm1508_vm10, %vm1509_vm8 }
 0x3ef   : > { %v1505_v39 = vsub.f32 1.0, %v1504_v16  ;;  %1871 = vmatpush.msra.mxu0 %v3786_v35  ;;  %1891 = vmatpush.msra.mxu1 %v3789_v36  ;;  %vm1529_vm13 = vmor %vm1527_vm11, %vm1528_vm9 }
 0x3f0   : > { %v1524_v47 = vsub.f32 1.0, %v1523_v48  ;;  %v1531_v48 = vand.u32 2147483647, %v3946_v1  ;;  %1911 = vmatpush.msra.mxu2 %v3792_v37  ;;  %1931 = vmatpush.msra.mxu3 %v3797_v40 }
 0x3f1   : > { %v1506_v23 = vmul.f32 %v2814_v33, %v1505_v39  ;;  %v1515_v39 = vor.u32 1.1754944e-38, %v1514_v22  ;;  %1872 = vmatpush.msra.mxu0 %v3802_v41  ;;  %1892 = vmatpush.msra.mxu1 %v3805_v42 }
 0x3f2   : > { %v1525_v16 = vmul.f32 %v2816_v59, %v1524_v47  ;;  %vm1532_vm15 = vcmp.eq.f32.partialorder %v1531_v48, 8.507059e+37  ;;  %1912 = vmatpush.msra.mxu2 %v3808_v43  ;;  %1932 = vmatpush.msra.mxu3 %v3815_v46 }
 0x3f3   : > { %v3988_v58 = vpop.eup %2817  ;;  %v1507_v29 = vadd.f32 %v2814_v33, %v1506_v23  ;;  %v1534_v23 = vor.u32 1.1754944e-38, %v1533_v6  ;;  %1873 = vmatpush.msra.mxu0 %v3820_v49  ;;  %1893 = vmatpush.msra.mxu1 %v3823_v50 }
 0x3f4   : > { %v1526_v47 = vadd.f32 %v2816_v59, %v1525_v16  ;;  %v1543_v32 = vmul.f32 %v3988_v58, %v3963_v53  ;;  %v2820_v1 = vpop.eup %2819  ;;  %1913 = vmatpush.msra.mxu2 %v3826_v51  ;;  %1933 = vmatpush.msra.mxu3 %v3831_v54  ;;  %vm1548_vm0 = vweird.f32 %v3988_v58 }
 0x3f5   : > { %v1511_v38 = vsel %vm1510_vm12, %v2814_v33, %v1507_v29  ;;  %1874 = vmatpush.msra.mxu0 %v3836_v55  ;;  %1894 = vmatpush.msra.mxu1 %v3839_v56  ;;  %vm1549_vm2 = vmor %vm1547_vm1, %vm1548_vm0  ;;  %v4285_v33 = vld [vmem:[#allocation22_spill] sm:$0xff] }
 0x3f6   : > { %v1516_v36 = vsel %vm1513_vm14, %v1515_v39, %v1511_v38  ;;  %v1530_v22 = vsel %vm1529_vm13, %v2816_v59, %v1526_v47  ;;  %v1544_v16 = vsub.f32 1.0, %v1543_v32  ;;  %1914 = vmatpush.msra.mxu2 %v3842_v57  ;;  %1934 = vmatpush.msra.mxu3 %v3847_v60  ;;  %v4286_v59 = vld [vmem:[#allocation23_spill] sm:$0xff]  ;;  %v4287_v39 = vld [vmem:[#allocation24_spill] sm:$0xff]  ;;  %v4288_v47 = vld [vmem:[#allocation25_spill] sm:$0xff] }
 0x3f7   : > { %v1535_v37 = vsel %vm1532_vm15, %v1534_v23, %v1530_v22  ;;  %v1558_v40 = vmul.f32 %v2820_v1, %v1516_v36  ;;  %1875 = vmatpush.msra.mxu0 %v3852_v61  ;;  %1895 = vmatpush.msra.mxu1 %v3855_v62  ;;  %v1551_v36 = vand.u32 2147483647, %v3963_v53  ;;  %v4290_v23 = vld [vmem:[#allocation27_spill] sm:$0xff]  ;;  %v4291_v22 = vld [vmem:[#allocation28_spill] sm:$0xff] }
 0x3f8   : > { %v1557_v6 = vmul.f32 %v1535_v37, %v3683_v3  ;;  %v1545_v24 = vmul.f32 %v3988_v58, %v1544_v16  ;;  %v1553_v3 = vand.u32 2147483648, %v3963_v53  ;;  %1915 = vmatpush.msra.mxu2 %v3858_v0  ;;  %1935 = vmatpush.msra.mxu3 %v3863_v2  ;;  %v4284_v37 = vld [vmem:[#allocation21_spill] sm:$0xff]  ;;  %v4289_v53 = vld [vmem:[#allocation26_spill] sm:$0xff] }
 0x3f9   : > { %1876 = vmatpush.msra.mxu0 %v3869_v8  ;;  %1896 = vmatpush.msra.mxu1 %v3872_v9  ;;  %vm1552_vm3 = vcmp.eq.f32.partialorder %v1551_v36, 8.507059e+37  ;;  %v4292_v16 = vld [vmem:[#allocation29_spill] sm:$0xff] }
 0x3fa   : > { %v4012_v29 = vadd.f32 %v1558_v40, %v1557_v6  ;;  %v1546_v32 = vadd.f32 %v3988_v58, %v1545_v24  ;;  %1916 = vmatpush.msra.mxu2 %v3875_v63  ;;  %1936 = vmatpush.msra.mxu3 %v4284_v37  ;;  %v1554_v48 = vor.u32 1.1754944e-38, %v1553_v3  ;;  %v4293_v6 = vld [vmem:[#allocation30_spill] sm:$0xff]  ;;  %v4294_v24 = vld [vmem:[#allocation11_spill] sm:$0xff] }
 0x3fb   : > { %1877 = vmatpush.msra.mxu0 %v4285_v33  ;;  %1897 = vmatpush.msra.mxu1 %v4286_v59 }
 0x3fc   : > { %2821 = vtanh.f32 %v4012_v29  ;;  %v1550_v40 = vsel %vm1549_vm2, %v3988_v58, %v1546_v32  ;;  %1917 = vmatpush.msra.mxu2 %v4287_v39  ;;  %1937 = vmatpush.msra.mxu3 %v4288_v47 }
 0x3fd   : > { %1878 = vmatpush.msra.mxu0 %v4289_v53  ;;  %1898 = vmatpush.msra.mxu1 %v4290_v23  ;;  %v1555_v1 = vsel %vm1552_vm3, %v1554_v48, %v1550_v40 }
 0x3fe   : > { %1918 = vmatpush.msra.mxu2 %v4291_v22  ;;  %1938 = vmatpush.msra.mxu3 %v4292_v16 }
 0x3ff   : > { %1879 = vmatpush.msra.mxu0 %v3913_v4  ;;  %1899 = vmatpush.msra.mxu1 %v3916_v5 }
 0x400   : > { %1919 = vmatpush.msra.mxu2 %v3921_v10  ;;  %1939 = vmatpush.msra.mxu3 %v3924_v44 }
 0x401   : > { %1880 = vmatpush.msra.mxu0 %v3929_v7  ;;  %1900 = vmatpush.msra.mxu1 %v3932_v45 }
 0x402   : > { %v2822_v38 = vpop.eup %2821  ;;  %1920 = vmatpush.msra.mxu2 %v3937_v52  ;;  %1940 = vmatpush.msra.mxu3 %v4293_v6 }
 0x403   : > { %v1561_v58 = vmul.f32 %v2822_v38, %v1555_v1 }
 0x405   : > { %1563 = vst [vmem:[#allocation3 + $0x18] sm:$0xff] %v1561_v58  ;;  %1649 = vmatmul.f32.vlgmr.msrb.gmra.mxu0 %v1561_v58  ;;  %1669 = vmatmul.f32.vlgmr.msrb.gmra.mxu1 %v1561_v58 }
 0x406   : > { %1689 = vmatmul.f32.vlgmr.msrb.gmra.mxu2 %v1561_v58  ;;  %1709 = vmatmul.f32.vlgmr.msrb.gmra.mxu3 %v1561_v58 }
 0x407   : > { %2097 = vmatpush.msrb.mxu0 %v3687_v11  ;;  %2117 = vmatpush.msrb.mxu1 %v3690_v12  ;;  %v4295_v11 = vld [vmem:[#allocation12_spill] sm:$0xff]  ;;  %v4296_v12 = vld [vmem:[#allocation13_spill] sm:$0xff] }
 0x408   : > { %2137 = vmatpush.msrb.mxu2 %v3693_v13  ;;  %2157 = vmatpush.msrb.mxu3 %v3698_v14  ;;  %v4297_v13 = vld [vmem:[#allocation14_spill] sm:$0xff]  ;;  %v4298_v14 = vld [vmem:[#allocation15_spill] sm:$0xff] }
 0x409   : > { %2098 = vmatpush.msrb.mxu0 %v3703_v15  ;;  %2118 = vmatpush.msrb.mxu1 %v4294_v24  ;;  %v4299_v15 = vld [vmem:[#allocation16_spill] sm:$0xff] }
 0x40a   : > { %2138 = vmatpush.msrb.mxu2 %v3709_v17  ;;  %2158 = vmatpush.msrb.mxu3 %v3714_v18  ;;  %v4300_v17 = vld [vmem:[#allocation17_spill] sm:$0xff]  ;;  %v4301_v18 = vld [vmem:[#allocation18_spill] sm:$0xff] }
 0x40b   : > { %2099 = vmatpush.msrb.mxu0 %v3719_v19  ;;  %2119 = vmatpush.msrb.mxu1 %v3722_v20  ;;  %v4302_v19 = vld [vmem:[#allocation19_spill] sm:$0xff]  ;;  %v4303_v20 = vld [vmem:[#allocation20_spill] sm:$0xff] }
 0x40c   : > { %2139 = vmatpush.msrb.mxu2 %v3725_v21  ;;  %2159 = vmatpush.msrb.mxu3 %v4295_v11  ;;  %v1717_v21 = vld [vmem:[%s3130_s18] sm:$0xf] }
 0x40d   : > { %2100 = vmatpush.msrb.mxu0 %v4296_v12  ;;  %2120 = vmatpush.msrb.mxu1 %v4297_v13 }
 0x40e   : > { %2140 = vmatpush.msrb.mxu2 %v4298_v14  ;;  %2160 = vmatpush.msrb.mxu3 %v3746_v25  ;;  %v1565_v25 = vld [vmem:[#allocation2 + $0x38] sm:$0xff] }
 0x40f   : > { %2101 = vmatpush.msrb.mxu0 %v3751_v26  ;;  %2121 = vmatpush.msrb.mxu1 %v3754_v27  ;;  %v1566_v26 = vld [vmem:[#allocation2 + $0x90] sm:$0xff]  ;;  %v1719_v27 = vperm.slane %v1717_v21, 0 }
 0x410   : > { %2141 = vmatpush.msrb.mxu2 %v3757_v28  ;;  %2161 = vmatpush.msrb.mxu3 %v4299_v15  ;;  %v1720_v28 = vperm.slane %v1717_v21, 1 }
 0x411   : > { %2102 = vmatpush.msrb.mxu0 %v3767_v30  ;;  %2122 = vmatpush.msrb.mxu1 %v3770_v31 }
 0x412   : > { %2142 = vmatpush.msrb.mxu2 %v4300_v17  ;;  %2162 = vmatpush.msrb.mxu3 %v3781_v34 }
 0x413   : > { %2103 = vmatpush.msrb.mxu0 %v3786_v35  ;;  %2123 = vmatpush.msrb.mxu1 %v4301_v18 }
 0x414   : > { %2143 = vmatpush.msrb.mxu2 %v4302_v19  ;;  %2163 = vmatpush.msrb.mxu3 %v4303_v20 }
 0x415   : > { %2104 = vmatpush.msrb.mxu0 %v3802_v41  ;;  %2124 = vmatpush.msrb.mxu1 %v3805_v42 }
 0x416   : > { %2144 = vmatpush.msrb.mxu2 %v3808_v43  ;;  %2164 = vmatpush.msrb.mxu3 %v3815_v46 }
 0x417   : > { %2105 = vmatpush.msrb.mxu0 %v3820_v49  ;;  %2125 = vmatpush.msrb.mxu1 %v3823_v50  ;;  %v1568_v49 = vld [vmem:[#allocation2 + $0xb8] sm:$0xff]  ;;  %v1722_v50 = vperm.slane %v1717_v21, 3 }
 0x418   : > { %2145 = vmatpush.msrb.mxu2 %v3826_v51  ;;  %2165 = vmatpush.msrb.mxu3 %v3831_v54 }
 0x419   : > { %2106 = vmatpush.msrb.mxu0 %v3836_v55  ;;  %2126 = vmatpush.msrb.mxu1 %v3839_v56 }
 0x41a   : > { %2146 = vmatpush.msrb.mxu2 %v3842_v57  ;;  %2166 = vmatpush.msrb.mxu3 %v3847_v60 }
 0x41b   : > { %2107 = vmatpush.msrb.mxu0 %v3852_v61  ;;  %2127 = vmatpush.msrb.mxu1 %v3855_v62 }
 0x41c   : > { %2147 = vmatpush.msrb.mxu2 %v3858_v0  ;;  %2167 = vmatpush.msrb.mxu3 %v3863_v2  ;;  %v1567_v0 = vld [vmem:[#allocation2 + $0x78] sm:$0xff] }
 0x41d   : > { %2108 = vmatpush.msrb.mxu0 %v3869_v8  ;;  %2128 = vmatpush.msrb.mxu1 %v3872_v9  ;;  %v1721_v9 = vperm.slane %v1717_v21, 2 }
 0x41e   : > { %2148 = vmatpush.msrb.mxu2 %v3875_v63  ;;  %2168 = vmatpush.msrb.mxu3 %v4284_v37 }
 0x41f   : > { %2109 = vmatpush.msrb.mxu0 %v4285_v33  ;;  %2129 = vmatpush.msrb.mxu1 %v4286_v59 }
 0x420   : > { %2149 = vmatpush.msrb.mxu2 %v4287_v39  ;;  %2169 = vmatpush.msrb.mxu3 %v4288_v47 }
 0x421   : > { %2110 = vmatpush.msrb.mxu0 %v4289_v53  ;;  %2130 = vmatpush.msrb.mxu1 %v4290_v23 }
 0x422   : > { %2150 = vmatpush.msrb.mxu2 %v4291_v22  ;;  %2170 = vmatpush.msrb.mxu3 %v4292_v16 }
 0x423   : > { %2111 = vmatpush.msrb.mxu0 %v3913_v4  ;;  %2131 = vmatpush.msrb.mxu1 %v3916_v5 }
 0x424   : > { %2151 = vmatpush.msrb.mxu2 %v3921_v10  ;;  %2171 = vmatpush.msrb.mxu3 %v3924_v44 }
 0x425   : > { %2112 = vmatpush.msrb.mxu0 %v3929_v7  ;;  %2132 = vmatpush.msrb.mxu1 %v3932_v45 }
 0x426   : > { %2152 = vmatpush.msrb.mxu2 %v3937_v52  ;;  %2172 = vmatpush.msrb.mxu3 %v4293_v6 }
 0x482   : > { %v1650_v30 = vpop.f32.mrf.mxu0  ;;  %v1670_v31 = vpop.f32.mrf.mxu1 }
 0x483   : > { %v1713_v34 = vadd.f32 %v1650_v30, %v1565_v25  ;;  %v1714_v35 = vadd.f32 %v1670_v31, %v1566_v26 }
 0x485   : > { %v1727_v41 = vadd.f32 %v1719_v27, %v1713_v34  ;;  %v1728_v42 = vadd.f32 %v1720_v28, %v1714_v35  ;;  %v1797_v27 = vld [vmem:[#allocation2 + $0x40] sm:$0xff]  ;;  %v1798_v28 = vld [vmem:[#allocation2 + $0x28] sm:$0xff] }
 0x487   : > { %v2696_v43 = vmul.f32 -1.442695, %v1727_v41  ;;  %v2697_v46 = vmul.f32 -1.442695, %v1728_v42 }
 0x489   : > { %2823 = vpow2.f32 %v2696_v43  ;;  %v1710_v51 = vpop.f32.mrf.mxu3  ;;  %v1690_v2 = vpop.f32.mrf.mxu2 }
 0x48a   : > { %2825 = vpow2.f32 %v2697_v46  ;;  %v1716_v54 = vadd.f32 %v1710_v51, %v1568_v49  ;;  %v1715_v8 = vadd.f32 %v1690_v2, %v1567_v0  ;;  %v1800_v51 = vld [vmem:[#allocation2 + $0x60] sm:$0xff] }
 0x48c   : > { %v1730_v55 = vadd.f32 %v1722_v50, %v1716_v54  ;;  %v1729_v4 = vadd.f32 %v1721_v9, %v1715_v8  ;;  %v1799_v8 = vld [vmem:[#allocation2 + $0xc0] sm:$0xff] }
 0x48e   : > { %v2698_v56 = vmul.f32 -1.442695, %v1730_v55 }
 0x48f   : > { %v2824_v57 = vpop.eup %2823 }
 0x490   : > { %v2826_v60 = vpop.eup %2825  ;;  %v1734_v61 = vadd.f32 1.0, %v2824_v57  ;;  %2827 = vpow2.f32 %v2698_v56 }
 0x491   : > { %v1753_v62 = vadd.f32 1.0, %v2826_v60 }
 0x492   : > { %2829 = vrcp.f32 %v1734_v61  ;;  %v1746_v3 = vand.u32 2147483648, %v1734_v61  ;;  %v1744_v40 = vand.u32 2147483647, %v1734_v61  ;;  %vm1740_vm6 = vweird.f32 %v1734_v61 }
 0x493   : > { %2831 = vrcp.f32 %v1753_v62  ;;  %v1765_v36 = vand.u32 2147483648, %v1753_v62  ;;  %v1763_v59 = vand.u32 2147483647, %v1753_v62  ;;  %vm1759_vm7 = vweird.f32 %v1753_v62 }
 0x494   : > { %v1747_v47 = vor.u32 1.1754944e-38, %v1746_v3  ;;  %vm1745_vm10 = vcmp.eq.f32.partialorder %v1744_v40, 8.507059e+37 }
 0x495   : > { %v1766_v38 = vor.u32 1.1754944e-38, %v1765_v36  ;;  %vm1764_vm11 = vcmp.eq.f32.partialorder %v1763_v59, 8.507059e+37 }
 0x496   : > { %v2828_v63 = vpop.eup %2827 }
 0x497   : > { %v1773_v44 = vadd.f32 1.0, %v2828_v63 }
 0x498   : > { %v2830_v52 = vpop.eup %2829 }
 0x499   : > { %v2832_v5 = vpop.eup %2831  ;;  %v1736_v10 = vmul.f32 %v2830_v52, %v1734_v61  ;;  %2833 = vrcp.f32 %v1773_v44  ;;  %vm1741_vm4 = vweird.f32 %v2830_v52  ;;  %v1785_v17 = vand.u32 2147483648, %v1773_v44 }
 0x49a   : > { %v1755_v7 = vmul.f32 %v2832_v5, %v1753_v62  ;;  %2835 = vtanh.f32 %v1729_v4  ;;  %vm1760_vm5 = vweird.f32 %v2832_v5  ;;  %vm1742_vm8 = vmor %vm1740_vm6, %vm1741_vm4  ;;  %vm1779_vm13 = vweird.f32 %v1773_v44 }
 0x49b   : > { %v1737_v45 = vsub.f32 1.0, %v1736_v10  ;;  %vm1761_vm9 = vmor %vm1759_vm7, %vm1760_vm5  ;;  %v1783_v18 = vand.u32 2147483647, %v1773_v44  ;;  %v1786_v20 = vor.u32 1.1754944e-38, %v1785_v17 }
 0x49c   : > { %v1756_v32 = vsub.f32 1.0, %v1755_v7 }
 0x49d   : > { %v1738_v37 = vmul.f32 %v2830_v52, %v1737_v45  ;;  %vm1784_vm15 = vcmp.eq.f32.partialorder %v1783_v18, 8.507059e+37 }
 0x49e   : > { %v1757_v33 = vmul.f32 %v2832_v5, %v1756_v32 }
 0x49f   : > { %v2834_v48 = vpop.eup %2833  ;;  %v1739_v39 = vadd.f32 %v2830_v52, %v1738_v37 }
 0x4a0   : > { %v1758_v53 = vadd.f32 %v2832_v5, %v1757_v33  ;;  %v1775_v23 = vmul.f32 %v2834_v48, %v1773_v44  ;;  %v2836_v22 = vpop.eup %2835  ;;  %vm1780_vm12 = vweird.f32 %v2834_v48 }
 0x4a1   : > { %v1743_v1 = vsel %vm1742_vm8, %v2830_v52, %v1739_v39  ;;  %vm1781_vm14 = vmor %vm1779_vm13, %vm1780_vm12 }
 0x4a2   : > { %v1748_v16 = vsel %vm1745_vm10, %v1747_v47, %v1743_v1  ;;  %v1762_v58 = vsel %vm1761_vm9, %v2832_v5, %v1758_v53  ;;  %v1776_v6 = vsub.f32 1.0, %v1775_v23 }
 0x4a3   : > { %v1767_v24 = vsel %vm1764_vm11, %v1766_v38, %v1762_v58  ;;  %v1790_v11 = vmul.f32 %v2836_v22, %v1748_v16 }
 0x4a4   : > { %v1789_v12 = vmul.f32 %v1767_v24, %v4012_v29  ;;  %v1777_v13 = vmul.f32 %v2834_v48, %v1776_v6  ;;  %v1949_v29 = vld [vmem:[%s3130_s18] sm:$0xf] }
 0x4a5   : > { %v1951_v30 = vperm.slane %v1949_v29, 0  ;;  %v1952_v31 = vperm.slane %v1949_v29, 1  ;;  %v1954_v54 = vperm.slane %v1949_v29, 3  ;;  %v1953_v44 = vperm.slane %v1949_v29, 2 }
 0x4a6   : > { %v4113_v14 = vadd.f32 %v1790_v11, %v1789_v12  ;;  %v1778_v15 = vadd.f32 %v2834_v48, %v1777_v13 }
 0x4a8   : > { %2837 = vtanh.f32 %v4113_v14  ;;  %v1782_v19 = vsel %vm1781_vm14, %v2834_v48, %v1778_v15 }
 0x4a9   : > { %v1787_v25 = vsel %vm1784_vm15, %v1786_v20, %v1782_v19 }
 0x4ae   : > { %v2838_v21 = vpop.eup %2837 }
 0x4af   : > { %v1793_v26 = vmul.f32 %v2838_v21, %v1787_v25 }
 0x4b1   : > { %1795 = vst [vmem:[#allocation3 + $0x30] sm:$0xff] %v1793_v26  ;;  %1881 = vmatmul.f32.vlgmr.msra.gmra.mxu0 %v1793_v26  ;;  %1901 = vmatmul.f32.vlgmr.msra.gmra.mxu1 %v1793_v26 }
 0x4b2   : > { %1921 = vmatmul.f32.vlgmr.msra.gmra.mxu2 %v1793_v26  ;;  %1941 = vmatmul.f32.vlgmr.msra.gmra.mxu3 %v1793_v26 }
 0x52e   : > { %v1882_v34 = vpop.f32.mrf.mxu0  ;;  %v1902_v35 = vpop.f32.mrf.mxu1 }
 0x52f   : > { %v1945_v41 = vadd.f32 %v1882_v34, %v1797_v27  ;;  %v1946_v42 = vadd.f32 %v1902_v35, %v1798_v28  ;;  %v2325_v28 = vld [vmem:[%s3119_s8 + $0x1e0] sm:$0xff]  ;;  %v2328_v34 = vld [vmem:[%s3119_s8 + $0x1f8] sm:$0xff] }
 0x530   : > { %2329 = vmatpush.msra.mxu0 %v2325_v28  ;;  %2389 = vmatpush.msra.mxu3 %v2328_v34  ;;  %v2321_v35 = vld [vmem:[%s3119_s8 + $0x1c0] sm:$0xff]  ;;  %v2284_v28 = vld [vmem:[%s3119_s8 + $0x98] sm:$0xff] }
 0x531   : > { %v1959_v43 = vadd.f32 %v1951_v30, %v1945_v41  ;;  %v1960_v46 = vadd.f32 %v1952_v31, %v1946_v42  ;;  %v2326_v30 = vld [vmem:[%s3119_s8 + $0x1e8] sm:$0xff]  ;;  %v2327_v31 = vld [vmem:[%s3119_s8 + $0x1f0] sm:$0xff] }
 0x532   : > { %2349 = vmatpush.msra.mxu1 %v2326_v30  ;;  %2369 = vmatpush.msra.mxu2 %v2327_v31  ;;  %v2322_v41 = vld [vmem:[%s3119_s8 + $0x1c8] sm:$0xff]  ;;  %v2323_v42 = vld [vmem:[%s3119_s8 + $0x1d0] sm:$0xff]  ;;  %v2277_v30 = vld [vmem:[%s3119_s8 + $0x60] sm:$0xff] }
 0x533   : > { %v2699_v49 = vmul.f32 -1.442695, %v1959_v43  ;;  %v2700_v50 = vmul.f32 -1.442695, %v1960_v46  ;;  %2330 = vmatpush.msra.mxu0 %v2321_v35  ;;  %v2324_v43 = vld [vmem:[%s3119_s8 + $0x1d8] sm:$0xff]  ;;  %v2317_v46 = vld [vmem:[%s3119_s8 + $0x1a0] sm:$0xff] }
 0x534   : > { %2350 = vmatpush.msra.mxu1 %v2322_v41  ;;  %2370 = vmatpush.msra.mxu2 %v2323_v42  ;;  %v2278_v31 = vld [vmem:[%s3119_s8 + $0x68] sm:$0xff]  ;;  %v2279_v35 = vld [vmem:[%s3119_s8 + $0x70] sm:$0xff]  ;;  %v2280_v41 = vld [vmem:[%s3119_s8 + $0x78] sm:$0xff] }
 0x535   : > { %2839 = vpow2.f32 %v2699_v49  ;;  %v1942_v55 = vpop.f32.mrf.mxu3  ;;  %v1922_v9 = vpop.f32.mrf.mxu2  ;;  %2390 = vmatpush.msra.mxu3 %v2324_v43  ;;  %v2318_v49 = vld [vmem:[%s3119_s8 + $0x1a8] sm:$0xff]  ;;  %2331 = vmatpush.msra.mxu0 %v2317_v46  ;;  %v2273_v42 = vld [vmem:[%s3119_s8 + $0x40] sm:$0xff]  ;;  %v2275_v46 = vld [vmem:[%s3119_s8 + $0x50] sm:$0xff] }
 0x536   : > { %2841 = vpow2.f32 %v2700_v50  ;;  %v1948_v56 = vadd.f32 %v1942_v55, %v1800_v51  ;;  %v1947_v63 = vadd.f32 %v1922_v9, %v1799_v8  ;;  %v2319_v50 = vld [vmem:[%s3119_s8 + $0x1b0] sm:$0xff]  ;;  %2351 = vmatpush.msra.mxu1 %v2318_v49  ;;  %v2320_v51 = vld [vmem:[%s3119_s8 + $0x1b8] sm:$0xff]  ;;  %v2314_v55 = vld [vmem:[%s3119_s8 + $0x188] sm:$0xff] }
 0x537   : > { %2371 = vmatpush.msra.mxu2 %v2319_v50  ;;  %2391 = vmatpush.msra.mxu3 %v2320_v51  ;;  %v2306_v8 = vld [vmem:[%s3119_s8 + $0x148] sm:$0xff]  ;;  %v2307_v9 = vld [vmem:[%s3119_s8 + $0x150] sm:$0xff]  ;;  %v2276_v49 = vld [vmem:[%s3119_s8 + $0x58] sm:$0xff] }
 0x538   : > { %v1962_v57 = vadd.f32 %v1954_v54, %v1948_v56  ;;  %v1961_v10 = vadd.f32 %v1953_v44, %v1947_v63  ;;  %v2313_v54 = vld [vmem:[%s3119_s8 + $0x180] sm:$0xff]  ;;  %v2315_v56 = vld [vmem:[%s3119_s8 + $0x190] sm:$0xff]  ;;  %2352 = vmatpush.msra.mxu1 %v2314_v55  ;;  %v4145_v63 = vld [vmem:[%s3130_s18] sm:$0xf] }
 0x539   : > { %2332 = vmatpush.msra.mxu0 %v2313_v54  ;;  %2372 = vmatpush.msra.mxu2 %v2315_v56  ;;  %v2308_v44 = vld [vmem:[%s3119_s8 + $0x158] sm:$0xff]  ;;  %v2274_v43 = vld [vmem:[%s3119_s8 + $0x48] sm:$0xff]  ;;  %v2269_v51 = vld [vmem:[%s3119_s8 + $0x20] sm:$0xff] }
 0x53a   : > { %v2701_v60 = vmul.f32 -1.442695, %v1962_v57  ;;  %v2316_v57 = vld [vmem:[%s3119_s8 + $0x198] sm:$0xff]  ;;  %v2270_v54 = vld [vmem:[%s3119_s8 + $0x28] sm:$0xff]  ;;  %v2271_v55 = vld [vmem:[%s3119_s8 + $0x30] sm:$0xff] }
 0x53b   : > { %v2840_v61 = vpop.eup %2839  ;;  %2392 = vmatpush.msra.mxu3 %v2316_v57  ;;  %v2272_v56 = vld [vmem:[%s3119_s8 + $0x38] sm:$0xff] }
 0x53c   : > { %v2842_v62 = vpop.eup %2841  ;;  %v1966_v0 = vadd.f32 1.0, %v2840_v61  ;;  %2843 = vpow2.f32 %v2701_v60  ;;  %v2309_v60 = vld [vmem:[%s3119_s8 + $0x160] sm:$0xff]  ;;  %v2310_v61 = vld [vmem:[%s3119_s8 + $0x168] sm:$0xff] }
 0x53d   : > { %v1985_v2 = vadd.f32 1.0, %v2842_v62  ;;  %v2311_v62 = vld [vmem:[%s3119_s8 + $0x170] sm:$0xff]  ;;  %2333 = vmatpush.msra.mxu0 %v2309_v60  ;;  %2353 = vmatpush.msra.mxu1 %v2310_v61  ;;  %v2265_v60 = vld [vmem:[%s3119_s8] sm:$0xff]  ;;  %v2266_v61 = vld [vmem:[%s3119_s8 + $0x8] sm:$0xff] }
 0x53e   : > { %2845 = vrcp.f32 %v1966_v0  ;;  %v1978_v37 = vand.u32 2147483648, %v1966_v0  ;;  %v1976_v59 = vand.u32 2147483647, %v1966_v0  ;;  %vm1972_vm2 = vweird.f32 %v1966_v0  ;;  %2373 = vmatpush.msra.mxu2 %v2311_v62 }
 0x53f   : > { %2847 = vrcp.f32 %v1985_v2  ;;  %v1997_v40 = vand.u32 2147483648, %v1985_v2  ;;  %v1995_v39 = vand.u32 2147483647, %v1985_v2  ;;  %vm1991_vm3 = vweird.f32 %v1985_v2  ;;  %2354 = vmatpush.msra.mxu1 %v2306_v8 }
 0x540   : > { %v1979_v23 = vor.u32 1.1754944e-38, %v1978_v37  ;;  %vm1977_vm6 = vcmp.eq.f32.partialorder %v1976_v59, 8.507059e+37  ;;  %2374 = vmatpush.msra.mxu2 %v2307_v9  ;;  %v2183_v37 = vperm.slane %v4145_v63, 0 }
 0x541   : > { %v1998_v22 = vor.u32 1.1754944e-38, %v1997_v40  ;;  %vm1996_vm7 = vcmp.eq.f32.partialorder %v1995_v39, 8.507059e+37  ;;  %v2184_v40 = vperm.slane %v4145_v63, 1  ;;  %v2293_v39 = vld [vmem:[%s3119_s8 + $0xe0] sm:$0xff] }
 0x542   : > { %v2844_v52 = vpop.eup %2843 }
 0x543   : > { %v2005_v4 = vadd.f32 1.0, %v2844_v52  ;;  %v2301_v52 = vld [vmem:[%s3119_s8 + $0x120] sm:$0xff] }
 0x544   : > { %v2846_v5 = vpop.eup %2845 }
 0x545   : > { %v2848_v7 = vpop.eup %2847  ;;  %v1968_v45 = vmul.f32 %v2846_v5, %v1966_v0  ;;  %2849 = vrcp.f32 %v2005_v4  ;;  %vm1973_vm0 = vweird.f32 %v2846_v5  ;;  %v2017_v20 = vand.u32 2147483648, %v2005_v4  ;;  %v2312_v0 = vld [vmem:[%s3119_s8 + $0x178] sm:$0xff] }
 0x546   : > { %v1987_v32 = vmul.f32 %v2848_v7, %v1985_v2  ;;  %2851 = vtanh.f32 %v1961_v10  ;;  %vm1992_vm1 = vweird.f32 %v2848_v7  ;;  %vm1974_vm4 = vmor %vm1972_vm2, %vm1973_vm0  ;;  %vm2011_vm9 = vweird.f32 %v2005_v4  ;;  %2393 = vmatpush.msra.mxu3 %v2312_v0  ;;  %v2305_v2 = vld [vmem:[%s3119_s8 + $0x140] sm:$0xff]  ;;  %v2029_v10 = vld [vmem:[#allocation2 + $0xd0] sm:$0xff] }
 0x547   : > { %v1969_v3 = vsub.f32 1.0, %v1968_v45  ;;  %vm1993_vm5 = vmor %vm1991_vm3, %vm1992_vm1  ;;  %v2015_v21 = vand.u32 2147483647, %v2005_v4  ;;  %v2018_v26 = vor.u32 1.1754944e-38, %v2017_v20  ;;  %2334 = vmatpush.msra.mxu0 %v2305_v2  ;;  %v2304_v45 = vld [vmem:[%s3119_s8 + $0x138] sm:$0xff]  ;;  %v2032_v20 = vld [vmem:[#allocation2 + $0xa0] sm:$0xff] }
 0x548   : > { %v1988_v36 = vsub.f32 1.0, %v1987_v32  ;;  %2394 = vmatpush.msra.mxu3 %v2308_v44  ;;  %v2297_v32 = vld [vmem:[%s3119_s8 + $0x100] sm:$0xff]  ;;  %v2267_v0 = vld [vmem:[%s3119_s8 + $0x10] sm:$0xff]  ;;  %v2268_v2 = vld [vmem:[%s3119_s8 + $0x18] sm:$0xff] }
 0x549   : > { %v1970_v33 = vmul.f32 %v2846_v5, %v1969_v3  ;;  %vm2016_vm11 = vcmp.eq.f32.partialorder %v2015_v21, 8.507059e+37  ;;  %2335 = vmatpush.msra.mxu0 %v2301_v52  ;;  %v2298_v3 = vld [vmem:[%s3119_s8 + $0x108] sm:$0xff]  ;;  %v2288_v21 = vld [vmem:[%s3119_s8 + $0xb8] sm:$0xff]  ;;  %v2031_v52 = vld [vmem:[#allocation2 + $0x98] sm:$0xff] }
 0x54a   : > { %v1989_v48 = vmul.f32 %v2848_v7, %v1988_v36  ;;  %2395 = vmatpush.msra.mxu3 %v2304_v45  ;;  %v2299_v36 = vld [vmem:[%s3119_s8 + $0x110] sm:$0xff] }
 0x54b   : > { %v2850_v47 = vpop.eup %2849  ;;  %v1971_v53 = vadd.f32 %v2846_v5, %v1970_v33  ;;  %2336 = vmatpush.msra.mxu0 %v2297_v32  ;;  %v2300_v33 = vld [vmem:[%s3119_s8 + $0x118] sm:$0xff] }
 0x54c   : > { %v1990_v38 = vadd.f32 %v2848_v7, %v1989_v48  ;;  %v2007_v1 = vmul.f32 %v2850_v47, %v2005_v4  ;;  %v2852_v58 = vpop.eup %2851  ;;  %vm2012_vm8 = vweird.f32 %v2850_v47  ;;  %v2302_v4 = vld [vmem:[%s3119_s8 + $0x128] sm:$0xff]  ;;  %2396 = vmatpush.msra.mxu3 %v2300_v33 }
 0x54d   : > { %v1975_v16 = vsel %vm1974_vm4, %v2846_v5, %v1971_v53  ;;  %vm2013_vm10 = vmor %vm2011_vm9, %vm2012_vm8  ;;  %v2303_v5 = vld [vmem:[%s3119_s8 + $0x130] sm:$0xff]  ;;  %2355 = vmatpush.msra.mxu1 %v2302_v4  ;;  %2337 = vmatpush.msra.mxu0 %v2293_v39 }
 0x54e   : > { %v1980_v6 = vsel %vm1977_vm6, %v1979_v23, %v1975_v16  ;;  %v1994_v24 = vsel %vm1993_vm5, %v2848_v7, %v1990_v38  ;;  %v2008_v11 = vsub.f32 1.0, %v2007_v1  ;;  %v2030_v7 = vld [vmem:[#allocation2 + $0xa8] sm:$0xff]  ;;  %2375 = vmatpush.msra.mxu2 %v2303_v5  ;;  %v2296_v1 = vld [vmem:[%s3119_s8 + $0xf8] sm:$0xff]  ;;  %v2290_v16 = vld [vmem:[%s3119_s8 + $0xc8] sm:$0xff] }
 0x54f   : > { %v1999_v12 = vsel %vm1996_vm7, %v1998_v22, %v1994_v24  ;;  %v2022_v13 = vmul.f32 %v2852_v58, %v1980_v6  ;;  %2356 = vmatpush.msra.mxu1 %v2298_v3  ;;  %v2295_v53 = vld [vmem:[%s3119_s8 + $0xf0] sm:$0xff]  ;;  %2397 = vmatpush.msra.mxu3 %v2296_v1  ;;  %v2289_v22 = vld [vmem:[%s3119_s8 + $0xc0] sm:$0xff] }
 0x550   : > { %v2021_v15 = vmul.f32 %v1999_v12, %v4113_v14  ;;  %v2009_v17 = vmul.f32 %v2850_v47, %v2008_v11  ;;  %2376 = vmatpush.msra.mxu2 %v2299_v36  ;;  %v2291_v58 = vld [vmem:[%s3119_s8 + $0xd0] sm:$0xff]  ;;  %2338 = vmatpush.msra.mxu0 %v2289_v22  ;;  %v2292_v11 = vld [vmem:[%s3119_s8 + $0xd8] sm:$0xff]  ;;  %v2285_v12 = vld [vmem:[%s3119_s8 + $0xa0] sm:$0xff] }
 0x551   : > { %2398 = vmatpush.msra.mxu3 %v2292_v11 }
 0x552   : > { %v4118_v18 = vadd.f32 %v2022_v13, %v2021_v15  ;;  %v2010_v19 = vadd.f32 %v2850_v47, %v2009_v17  ;;  %2377 = vmatpush.msra.mxu2 %v2295_v53  ;;  %v2286_v13 = vld [vmem:[%s3119_s8 + $0xa8] sm:$0xff]  ;;  %v2287_v15 = vld [vmem:[%s3119_s8 + $0xb0] sm:$0xff]  ;;  %2339 = vmatpush.msra.mxu0 %v2285_v12 }
 0x553   : > { %2399 = vmatpush.msra.mxu3 %v2288_v21 }
 0x554   : > { %2853 = vtanh.f32 %v4118_v18  ;;  %v2014_v25 = vsel %vm2013_vm10, %v2850_v47, %v2010_v19  ;;  %v2294_v47 = vld [vmem:[%s3119_s8 + $0xe8] sm:$0xff]  ;;  %2378 = vmatpush.msra.mxu2 %v2291_v58 }
 0x555   : > { %v2019_v14 = vsel %vm2016_vm11, %v2018_v26, %v2014_v25  ;;  %2357 = vmatpush.msra.mxu1 %v2294_v47  ;;  %v2186_v25 = vperm.slane %v4145_v63, 3  ;;  %v2281_v26 = vld [vmem:[%s3119_s8 + $0x80] sm:$0xff]  ;;  %2400 = vmatpush.msra.mxu3 %v2284_v28 }
 0x556   : > { %2379 = vmatpush.msra.mxu2 %v2287_v15  ;;  %2340 = vmatpush.msra.mxu0 %v2281_v26 }
 0x557   : > { %2358 = vmatpush.msra.mxu1 %v2290_v16  ;;  %2401 = vmatpush.msra.mxu3 %v2280_v41  ;;  %v2262_v41 = vld [vmem:[#allocation2 + $0x10] sm:$0xff] }
 0x558   : > { %2341 = vmatpush.msra.mxu0 %v2277_v30 }
 0x559   : > { %2359 = vmatpush.msra.mxu1 %v2286_v13  ;;  %2402 = vmatpush.msra.mxu3 %v2276_v49 }
 0x55a   : > { %v2854_v29 = vpop.eup %2853  ;;  %2342 = vmatpush.msra.mxu0 %v2273_v42 }
 0x55b   : > { %v2025_v27 = vmul.f32 %v2854_v29, %v2019_v14  ;;  %v2282_v29 = vld [vmem:[%s3119_s8 + $0x88] sm:$0xff]  ;;  %v2283_v14 = vld [vmem:[%s3119_s8 + $0x90] sm:$0xff]  ;;  %2403 = vmatpush.msra.mxu3 %v2272_v56 }
 0x55c   : > { %2360 = vmatpush.msra.mxu1 %v2282_v29  ;;  %2380 = vmatpush.msra.mxu2 %v2283_v14 }
 0x55d   : > { %2027 = vst [vmem:[#allocation3 + $0x20] sm:$0xff] %v2025_v27  ;;  %2113 = vmatmul.f32.vlgmr.msrb.gmra.mxu0 %v2025_v27  ;;  %2133 = vmatmul.f32.vlgmr.msrb.gmra.mxu1 %v2025_v27 }
 0x55e   : > { %2153 = vmatmul.f32.vlgmr.msrb.gmra.mxu2 %v2025_v27  ;;  %2173 = vmatmul.f32.vlgmr.msrb.gmra.mxu3 %v2025_v27 }
 0x55f   : > { %2361 = vmatpush.msra.mxu1 %v2278_v31  ;;  %2381 = vmatpush.msra.mxu2 %v2279_v35  ;;  %v2261_v35 = vld [vmem:[#allocation2 + $0x20] sm:$0xff] }
 0x560   : > { %2343 = vmatpush.msra.mxu0 %v2269_v51  ;;  %2404 = vmatpush.msra.mxu3 %v2268_v2 }
 0x561   : > { %2362 = vmatpush.msra.mxu1 %v2274_v43  ;;  %2382 = vmatpush.msra.mxu2 %v2275_v46 }
 0x562   : > { %2344 = vmatpush.msra.mxu0 %v2265_v60  ;;  %v2264_v60 = vld [vmem:[#allocation2 + $0x70] sm:$0xff] }
 0x563   : > { %2363 = vmatpush.msra.mxu1 %v2270_v54  ;;  %2383 = vmatpush.msra.mxu2 %v2271_v55 }
 0x565   : > { %2364 = vmatpush.msra.mxu1 %v2266_v61  ;;  %2384 = vmatpush.msra.mxu2 %v2267_v0 }
 0x5da   : > { %v2114_v59 = vpop.f32.mrf.mxu0  ;;  %v2134_v48 = vpop.f32.mrf.mxu1 }
 0x5db   : > { %v2177_v23 = vadd.f32 %v2114_v59, %v2029_v10  ;;  %v2178_v38 = vadd.f32 %v2134_v48, %v2030_v7  ;;  %v2185_v10 = vperm.slane %v4145_v63, 2 }
 0x5dd   : > { %v2191_v6 = vadd.f32 %v2183_v37, %v2177_v23  ;;  %v2192_v24 = vadd.f32 %v2184_v40, %v2178_v38 }
 0x5df   : > { %v2702_v17 = vmul.f32 -1.442695, %v2191_v6  ;;  %v2703_v19 = vmul.f32 -1.442695, %v2192_v24 }
 0x5e1   : > { %2855 = vpow2.f32 %v2702_v17  ;;  %v2174_v27 = vpop.f32.mrf.mxu3  ;;  %v2154_v4 = vpop.f32.mrf.mxu2 }
 0x5e2   : > { %2857 = vpow2.f32 %v2703_v19  ;;  %v2180_v34 = vadd.f32 %v2174_v27, %v2032_v20  ;;  %v2179_v5 = vadd.f32 %v2154_v4, %v2031_v52 }
 0x5e4   : > { %v2194_v50 = vadd.f32 %v2186_v25, %v2180_v34  ;;  %v2193_v3 = vadd.f32 %v2185_v10, %v2179_v5  ;;  %v2263_v5 = vld [vmem:[#allocation2 + $0xc8] sm:$0xff] }
 0x5e6   : > { %v2704_v57 = vmul.f32 -1.442695, %v2194_v50 }
 0x5e7   : > { %v2856_v62 = vpop.eup %2855 }
 0x5e8   : > { %v2858_v8 = vpop.eup %2857  ;;  %v2198_v9 = vadd.f32 1.0, %v2856_v62  ;;  %2859 = vpow2.f32 %v2704_v57 }
 0x5e9   : > { %v2217_v44 = vadd.f32 1.0, %v2858_v8 }
 0x5ea   : > { %2861 = vrcp.f32 %v2198_v9  ;;  %v2210_v48 = vand.u32 2147483648, %v2198_v9  ;;  %v2208_v53 = vand.u32 2147483647, %v2198_v9  ;;  %vm2204_vm14 = vweird.f32 %v2198_v9 }
 0x5eb   : > { %2863 = vrcp.f32 %v2217_v44  ;;  %v2229_v39 = vand.u32 2147483648, %v2217_v44  ;;  %v2227_v38 = vand.u32 2147483647, %v2217_v44  ;;  %vm2223_vm15 = vweird.f32 %v2217_v44 }
 0x5ec   : > { %v2211_v22 = vor.u32 1.1754944e-38, %v2210_v48  ;;  %vm2209_vm2 = vcmp.eq.f32.partialorder %v2208_v53, 8.507059e+37 }
 0x5ed   : > { %v2230_v6 = vor.u32 1.1754944e-38, %v2229_v39  ;;  %vm2228_vm3 = vcmp.eq.f32.partialorder %v2227_v38, 8.507059e+37 }
 0x5ee   : > { %v2860_v7 = vpop.eup %2859 }
 0x5ef   : > { %v2237_v45 = vadd.f32 1.0, %v2860_v7 }
 0x5f0   : > { %v2862_v32 = vpop.eup %2861 }
 0x5f1   : > { %v2864_v36 = vpop.eup %2863  ;;  %v2200_v37 = vmul.f32 %v2862_v32, %v2198_v9  ;;  %2865 = vrcp.f32 %v2237_v45  ;;  %vm2205_vm12 = vweird.f32 %v2862_v32  ;;  %v2249_v29 = vand.u32 2147483648, %v2237_v45 }
 0x5f2   : > { %v2219_v40 = vmul.f32 %v2864_v36, %v2217_v44  ;;  %2867 = vtanh.f32 %v2193_v3  ;;  %vm2224_vm13 = vweird.f32 %v2864_v36  ;;  %vm2206_vm0 = vmor %vm2204_vm14, %vm2205_vm12  ;;  %vm2243_vm5 = vweird.f32 %v2237_v45 }
 0x5f3   : > { %v2201_v33 = vsub.f32 1.0, %v2200_v37  ;;  %vm2225_vm1 = vmor %vm2223_vm15, %vm2224_vm13  ;;  %v2247_v14 = vand.u32 2147483647, %v2237_v45  ;;  %v2250_v28 = vor.u32 1.1754944e-38, %v2249_v29 }
 0x5f4   : > { %v2220_v59 = vsub.f32 1.0, %v2219_v40 }
 0x5f5   : > { %v2202_v47 = vmul.f32 %v2862_v32, %v2201_v33  ;;  %vm2248_vm7 = vcmp.eq.f32.partialorder %v2247_v14, 8.507059e+37 }
 0x5f6   : > { %v2221_v23 = vmul.f32 %v2864_v36, %v2220_v59 }
 0x5f7   : > { %v2866_v63 = vpop.eup %2865  ;;  %v2203_v1 = vadd.f32 %v2862_v32, %v2202_v47 }
 0x5f8   : > { %v2222_v16 = vadd.f32 %v2864_v36, %v2221_v23  ;;  %v2239_v58 = vmul.f32 %v2866_v63, %v2237_v45  ;;  %v2868_v11 = vpop.eup %2867  ;;  %vm2244_vm4 = vweird.f32 %v2866_v63 }
 0x5f9   : > { %v2207_v24 = vsel %vm2206_vm0, %v2862_v32, %v2203_v1  ;;  %vm2245_vm6 = vmor %vm2243_vm5, %vm2244_vm4 }
 0x5fa   : > { %v2212_v12 = vsel %vm2209_vm2, %v2211_v22, %v2207_v24  ;;  %v2226_v13 = vsel %vm2225_vm1, %v2864_v36, %v2222_v16  ;;  %v2240_v15 = vsub.f32 1.0, %v2239_v58 }
 0x5fb   : > { %v2231_v17 = vsel %vm2228_vm3, %v2230_v6, %v2226_v13  ;;  %v2254_v19 = vmul.f32 %v2868_v11, %v2212_v12 }
 0x5fc   : > { %v2253_v20 = vmul.f32 %v2231_v17, %v4118_v18  ;;  %v2241_v21 = vmul.f32 %v2866_v63, %v2240_v15  ;;  %v2413_v18 = vld [vmem:[%s3130_s18] sm:$0xf] }
 0x5fd   : > { %v2415_v42 = vperm.slane %v2413_v18, 0  ;;  %v2416_v43 = vperm.slane %v2413_v18, 1  ;;  %v2418_v61 = vperm.slane %v2413_v18, 3  ;;  %v2417_v45 = vperm.slane %v2413_v18, 2 }
 0x5fe   : > { %v4193_v25 = vadd.f32 %v2254_v19, %v2253_v20  ;;  %v2242_v26 = vadd.f32 %v2866_v63, %v2241_v21 }
 0x600   : > { %2869 = vtanh.f32 %v4193_v25  ;;  %v2246_v27 = vsel %vm2245_vm6, %v2866_v63, %v2242_v26 }
 0x601   : > { %v2251_v31 = vsel %vm2248_vm7, %v2250_v28, %v2246_v27 }
 0x606   : > { %v2870_v30 = vpop.eup %2869 }
 0x607   : > { %v2257_v34 = vmul.f32 %v2870_v30, %v2251_v31 }
 0x609   : > { %2259 = vst [vmem:[#allocation3 + $0x28] sm:$0xff] %v2257_v34  ;;  %2345 = vmatmul.f32.vlgmr.msra.gmra.mxu0 %v2257_v34  ;;  %2365 = vmatmul.f32.vlgmr.msra.gmra.mxu1 %v2257_v34 }
 0x60a   : > { %2385 = vmatmul.f32.vlgmr.msra.gmra.mxu2 %v2257_v34  ;;  %2405 = vmatmul.f32.vlgmr.msra.gmra.mxu3 %v2257_v34 }
 0x686   : > { %v2346_v46 = vpop.f32.mrf.mxu0  ;;  %v2366_v49 = vpop.f32.mrf.mxu1 }
 0x687   : > { %v2409_v50 = vadd.f32 %v2346_v46, %v2261_v35  ;;  %v2410_v51 = vadd.f32 %v2366_v49, %v2262_v41 }
 0x689   : > { %v2423_v54 = vadd.f32 %v2415_v42, %v2409_v50  ;;  %v2424_v55 = vadd.f32 %v2416_v43, %v2410_v51 }
 0x68b   : > { %v2705_v56 = vmul.f32 -1.442695, %v2423_v54  ;;  %v2706_v57 = vmul.f32 -1.442695, %v2424_v55 }
 0x68d   : > { %2871 = vpow2.f32 %v2705_v56  ;;  %v2406_v62 = vpop.f32.mrf.mxu3  ;;  %v2386_v10 = vpop.f32.mrf.mxu2 }
 0x68e   : > { %2873 = vpow2.f32 %v2706_v57  ;;  %v2412_v0 = vadd.f32 %v2406_v62, %v2264_v60  ;;  %v2411_v7 = vadd.f32 %v2386_v10, %v2263_v5 }
 0x690   : > { %v2426_v2 = vadd.f32 %v2418_v61, %v2412_v0  ;;  %v2425_v37 = vadd.f32 %v2417_v45, %v2411_v7 }
 0x692   : > { %v2707_v8 = vmul.f32 -1.442695, %v2426_v2 }
 0x693   : > { %v2872_v9 = vpop.eup %2871 }
 0x694   : > { %v2874_v44 = vpop.eup %2873  ;;  %v2430_v52 = vadd.f32 1.0, %v2872_v9  ;;  %2875 = vpow2.f32 %v2707_v8 }
 0x695   : > { %v2449_v4 = vadd.f32 1.0, %v2874_v44 }
 0x696   : > { %2877 = vrcp.f32 %v2430_v52  ;;  %v2442_v47 = vand.u32 2147483648, %v2430_v52  ;;  %v2440_v38 = vand.u32 2147483647, %v2430_v52  ;;  %vm2436_vm10 = vweird.f32 %v2430_v52 }
 0x697   : > { %2879 = vrcp.f32 %v2449_v4  ;;  %v2461_v53 = vand.u32 2147483648, %v2449_v4  ;;  %v2459_v1 = vand.u32 2147483647, %v2449_v4  ;;  %vm2455_vm11 = vweird.f32 %v2449_v4 }
 0x698   : > { %v2443_v58 = vor.u32 1.1754944e-38, %v2442_v47  ;;  %vm2441_vm14 = vcmp.eq.f32.partialorder %v2440_v38, 8.507059e+37 }
 0x699   : > { %v2462_v11 = vor.u32 1.1754944e-38, %v2461_v53  ;;  %vm2460_vm15 = vcmp.eq.f32.partialorder %v2459_v1, 8.507059e+37 }
 0x69a   : > { %v2876_v32 = vpop.eup %2875 }
 0x69b   : > { %v2469_v3 = vadd.f32 1.0, %v2876_v32 }
 0x69c   : > { %v2878_v36 = vpop.eup %2877 }
 0x69d   : > { %v2880_v40 = vpop.eup %2879  ;;  %v2432_v33 = vmul.f32 %v2878_v36, %v2430_v52  ;;  %2881 = vrcp.f32 %v2469_v3  ;;  %vm2437_vm8 = vweird.f32 %v2878_v36  ;;  %v2481_v28 = vand.u32 2147483648, %v2469_v3 }
 0x69e   : > { %v2451_v59 = vmul.f32 %v2880_v40, %v2449_v4  ;;  %2883 = vtanh.f32 %v2425_v37  ;;  %vm2456_vm9 = vweird.f32 %v2880_v40  ;;  %vm2438_vm12 = vmor %vm2436_vm10, %vm2437_vm8  ;;  %vm2475_vm1 = vweird.f32 %v2469_v3 }
 0x69f   : > { %v2433_v48 = vsub.f32 1.0, %v2432_v33  ;;  %vm2457_vm13 = vmor %vm2455_vm11, %vm2456_vm9  ;;  %v2479_v30 = vand.u32 2147483647, %v2469_v3  ;;  %v2482_v34 = vor.u32 1.1754944e-38, %v2481_v28 }
 0x6a0   : > { %v2452_v39 = vsub.f32 1.0, %v2451_v59 }
 0x6a1   : > { %v2434_v23 = vmul.f32 %v2878_v36, %v2433_v48  ;;  %vm2480_vm3 = vcmp.eq.f32.partialorder %v2479_v30, 8.507059e+37 }
 0x6a2   : > { %v2453_v63 = vmul.f32 %v2880_v40, %v2452_v39 }
 0x6a3   : > { %v2882_v22 = vpop.eup %2881  ;;  %v2435_v16 = vadd.f32 %v2878_v36, %v2434_v23 }
 0x6a4   : > { %v2454_v6 = vadd.f32 %v2880_v40, %v2453_v63  ;;  %v2471_v24 = vmul.f32 %v2882_v22, %v2469_v3  ;;  %v2884_v13 = vpop.eup %2883  ;;  %vm2476_vm0 = vweird.f32 %v2882_v22 }
 0x6a5   : > { %v2439_v12 = vsel %vm2438_vm12, %v2878_v36, %v2435_v16  ;;  %vm2477_vm2 = vmor %vm2475_vm1, %vm2476_vm0 }
 0x6a6   : > { %v2444_v15 = vsel %vm2441_vm14, %v2443_v58, %v2439_v12  ;;  %v2458_v17 = vsel %vm2457_vm13, %v2880_v40, %v2454_v6  ;;  %v2472_v19 = vsub.f32 1.0, %v2471_v24 }
 0x6a7   : > { %v2463_v20 = vsel %vm2460_vm15, %v2462_v11, %v2458_v17  ;;  %v2486_v21 = vmul.f32 %v2884_v13, %v2444_v15 }
 0x6a8   : > { %v2485_v26 = vmul.f32 %v2463_v20, %v4193_v25  ;;  %v2473_v29 = vmul.f32 %v2882_v22, %v2472_v19 }
 0x6aa   : > { %v2487_v14 = vadd.f32 %v2486_v21, %v2485_v26  ;;  %v2474_v27 = vadd.f32 %v2882_v22, %v2473_v29 }
 0x6ac   : > { %2885 = vtanh.f32 %v2487_v14  ;;  %2493 = vst [vmem:[%s3140_s29] sm:$0xff] %v2487_v14  ;;  %v2478_v31 = vsel %vm2477_vm2, %v2882_v22, %v2474_v27 }
 0x6ad   : > { %v2483_v35 = vsel %vm2480_vm3, %v2482_v34, %v2478_v31 }
 0x6b2   : > { %v2886_v18 = vpop.eup %2885 }
 0x6b3   : > { %v2489_v41 = vmul.f32 %v2886_v18, %v2483_v35 }
 0x6b5   : > { %2491 = vst [vmem:[#allocation3 + $0x8] sm:$0xff] %v2489_v41 }
 0x6b6   : > { %2492 = vst [vmem:[%s3135_s1] sm:$0xff] %v2489_v41 }
 0x6b7 PF: > { %s22_s23 = sadd.s32 1, %s3001_s23   ;;  %s4304_s12 = sld [smem:[#allocation10_spill]] }
 0x6b8   : > { %p19_p2 = scmp.ge.s32.totalorder %s22_s23, 4   ;;  %s4305_s18 = smov %s2985_s19 }
 0x6b9   : > { %s4306_s19 = smov %s2989_s20  ;;  %s4307_s20 = smov %s3085_s30 }
 0x6ba   : > { %s4308_s21 = smov %s2997_s22  ;;  %21 = sbr.rel (!%p19_p2) target bundleno = 8 (0x8), region = 127 }
 0x6bd   : > { %s4309_s22 = smov %s4304_s12 }
 0x6bf   :  { %2539 = vsyncpa [#allocation5], 1 }
 0x6c0   :  { %2541 = vsyncpa [#allocation5 + $0x1], 1 }
 0x6c1   :  { %2542 = vsyncpa [#allocation7], 1 }
 0x6c2   :  { %2544 = vsyncpa [#allocation7 + $0x1], 1 }

</bundles_post_ra>
